<compile_context>
chip_gen: v5e
topology: v5e:2x2
jax: 0.10.0
libtpu: 0.0.40
codegen_flags: <defaults>
</compile_context>

<pallas_src>
import functools

import jax
import jax.numpy as jnp
from jax.experimental import pallas as pl
from jax.experimental.pallas import tpu as pltpu


def _masked_conv2d_kernel(x_ref, w_ref, b_ref, o_ref, *, KH, KW, H_out, W_out):
    """One grid step processes a block of NB batch elements.

    x_ref: (NB, H_out+KH-1, W_out+KW-1, Cin)  zero-padded input block (VMEM)
    w_ref: (KH*KW, Cin, Cout_pad)             pre-masked, reshaped, lane-padded weights
    b_ref: (1, Cout_pad)                      lane-padded bias
    o_ref: (NB*H_out*W_out, Cout_pad)         flat, lane-dense output block
    """
    NB, _, _, Cin = x_ref.shape
    Cout_pad = o_ref.shape[-1]
    M = NB * H_out * W_out

    acc = jnp.zeros((M, Cout_pad), dtype=jnp.float32)
    for kh in range(KH):                      # static, fully unrolled (KH*KW taps)
        for kw in range(KW):
            # Static ref slice of the shifted window (loads only the window).
            patch = x_ref[:, kh:kh + H_out, kw:kw + W_out, :]      # (NB,H,W,Cin)
            patch2d = patch.reshape(M, Cin)                        # collapse leading dims
            acc = acc + jnp.dot(patch2d, w_ref[kh * KW + kw],
                                preferred_element_type=jnp.float32)
    acc = acc + b_ref[...]                                         # broadcast bias
    o_ref[...] = acc.astype(o_ref.dtype)


def masked_conv2d(x_nchw, w_oihw, mask_oihw, bias, padding=1, *, batch_block=None):
    """Forward pass of MaskedConv2d: conv2d(x, weight * mask) + bias (stride=1).

    x_nchw:    (N, Cin, H, W) float32
    w_oihw:    (Cout, Cin, KH, KW)
    mask_oihw: (Cout, Cin, KH, KW)
    bias:      (Cout,)
    Returns    (N, Cout, H_out, W_out)
    """
    N, Cin, H, W = x_nchw.shape
    Cout, Cin_w, KH, KW = w_oihw.shape
    assert Cin_w == Cin
    P = padding
    H_out = H + 2 * P - KH + 1
    W_out = W + 2 * P - KW + 1
    Hp, Wp = H + 2 * P, W + 2 * P

    LANES = 128
    Cout_pad = ((Cout + LANES - 1) // LANES) * LANES

    # forward(): self.conv.weight.data *= self.mask  -- constant across the
    # grid, so applied once here instead of every kernel step.
    w_masked = w_oihw * mask_oihw.astype(w_oihw.dtype)

    # Layout glue (once, plain JAX): NCHW->NHWC + zero pad; OIHW->(KH*KW,Cin,Cout_pad).
    x_nhwc = jnp.transpose(x_nchw, (0, 2, 3, 1))
    x_pad = jnp.pad(x_nhwc, ((0, 0), (P, P), (P, P), (0, 0)))
    w_taps = jnp.transpose(w_masked, (2, 3, 1, 0)).reshape(KH * KW, Cin, Cout)
    w_taps = jnp.pad(w_taps, ((0, 0), (0, 0), (0, Cout_pad - Cout)))
    b_pad = jnp.pad(bias, (0, Cout_pad - Cout)).reshape(1, Cout_pad)

    # Pick the largest batch block (divisor of N) that fits a modest VMEM budget,
    # so small batches are handled in a single grid step (amortizes step overhead)
    # while large batches still tile.
    if batch_block is None:
        per_elem_bytes = 4 * (Hp * Wp * max(Cin, LANES)          # lane-padded input block
                              + 3 * H_out * W_out * Cout_pad)     # acc + double-buffered out
        budget = 8 * 1024 * 1024
        batch_block = 1
        for d in range(N, 0, -1):
            if N % d == 0 and d * per_elem_bytes <= budget:
                batch_block = d
                break
    NB = batch_block
    assert N % NB == 0, (N, NB)
    M_blk = NB * H_out * W_out

    kernel = functools.partial(_masked_conv2d_kernel,
                               KH=KH, KW=KW, H_out=H_out, W_out=W_out)

    out_flat = pl.pallas_call(
        kernel,
        out_shape=jax.ShapeDtypeStruct((N * H_out * W_out, Cout_pad), x_nchw.dtype),
        grid=(N // NB,),
        in_specs=[
            pl.BlockSpec((NB, Hp, Wp, Cin), lambda n: (n, 0, 0, 0)),
            pl.BlockSpec((KH * KW, Cin, Cout_pad), lambda n: (0, 0, 0)),
            pl.BlockSpec((1, Cout_pad), lambda n: (0, 0)),
        ],
        out_specs=pl.BlockSpec((M_blk, Cout_pad), lambda n: (n, 0)),
        compiler_params=pltpu.CompilerParams(
            dimension_semantics=("parallel",),
            vmem_limit_bytes=32 * 1024 * 1024,
        ),
    )(x_pad, w_taps, b_pad)

    out_nhwc = out_flat.reshape(N, H_out, W_out, Cout_pad)[..., :Cout]
    return jnp.transpose(out_nhwc, (0, 3, 1, 2))                  # back to NCHW


def compute_mask_local(w_oihw, pruning_rate=0.1):
    """get_mask(|W|, 'local', q): mask = |W| > quantile(|W|, q)."""
    aw = jnp.abs(w_oihw)
    threshold = jnp.quantile(aw.reshape(-1), pruning_rate)
    return (aw > threshold).astype(jnp.float32)


if __name__ == "__main__":
    key = jax.random.PRNGKey(0)
    k_x, k_w, k_b = jax.random.split(key, 3)

    # Small Conv2d: Cin=4 -> Cout=8, 3x3 kernel, stride=1, padding=1.
    N, Cin, H, W = 2, 4, 16, 16
    Cout, KH, KW = 8, 3, 3

    x = jax.random.normal(k_x, (N, Cin, H, W), dtype=jnp.float32)
    w = jax.random.normal(k_w, (Cout, Cin, KH, KW), dtype=jnp.float32) * 0.1
    b = jax.random.normal(k_b, (Cout,), dtype=jnp.float32) * 0.1

    # compute_mask(strategy='local', pruning_rate=0.1)
    mask = compute_mask_local(w, pruning_rate=0.1)

    out = masked_conv2d(x, w, mask, b, padding=1)
    out = jax.block_until_ready(out)

    # Pure-JAX reference (conv with masked weights), f32 HIGHEST precision.
    w_masked = w * mask
    ref = jax.lax.conv_general_dilated(
        x, w_masked, window_strides=(1, 1), padding=((1, 1), (1, 1)),
        dimension_numbers=("NCHW", "OIHW", "NCHW"),
        precision=jax.lax.Precision.HIGHEST,
    ) + b.reshape(1, Cout, 1, 1)

    assert out.shape == (N, Cout, H, W), out.shape
    max_err = float(jnp.max(jnp.abs(out - ref)))
    # Tolerance loosened: kernel uses default MXU precision (not HIGHEST).
    assert max_err < 5e-2, max_err

    print("KERNEL_OK")
</pallas_src>

<mosaic_0001>
module attributes {stable_mosaic.version = 11 : i64} {
  func.func @_masked_conv2d_kernel(%arg0: i32, %arg1: memref<2x18x18x4xf32, #tpu.memory_space<vmem>>, %arg2: memref<9x4x128xf32, #tpu.memory_space<vmem>>, %arg3: memref<1x128xf32, #tpu.memory_space<vmem>>, %arg4: memref<512x128xf32, #tpu.memory_space<vmem>>) attributes {dimension_semantics = [#tpu.dimension_semantics<parallel>], iteration_bounds = array<i64: 1>, scalar_prefetch = 0 : i64, scratch_operands = 0 : i64, tpu.core_type = #tpu.core_type<tc>, window_params = [{transform_indices = @transform_0, window_bounds = array<i64: 2, 18, 18, 4>}, {pipeline_mode = #tpu.pipeline_mode<synchronous>, transform_indices = @transform_1, window_bounds = array<i64: 9, 4, 128>}, {pipeline_mode = #tpu.pipeline_mode<synchronous>, transform_indices = @transform_2, window_bounds = array<i64: 1, 128>}, {transform_indices = @transform_3, window_bounds = array<i64: 512, 128>}]} {
    %cst = arith.constant 0.000000e+00 : f32
    %0 = vector.broadcast %cst : f32 to vector<512x128xf32>
    %c0 = arith.constant 0 : index
    %c0_0 = arith.constant 0 : index
    %c0_1 = arith.constant 0 : index
    %c0_2 = arith.constant 0 : index
    %1 = vector.load %arg1[%c0, %c0_0, %c0_1, %c0_2] : memref<2x18x18x4xf32, #tpu.memory_space<vmem>>, vector<2x16x16x4xf32>
    %2 = vector.shape_cast %1 : vector<2x16x16x4xf32> to vector<512x4xf32>
    %c0_3 = arith.constant 0 : index
    %c0_4 = arith.constant 0 : index
    %c0_5 = arith.constant 0 : index
    %3 = vector.load %arg2[%c0_3, %c0_4, %c0_5] : memref<9x4x128xf32, #tpu.memory_space<vmem>>, vector<1x4x128xf32>
    %4 = vector.shape_cast %3 : vector<1x4x128xf32> to vector<4x128xf32>
    %cst_6 = arith.constant dense<0.000000e+00> : vector<512x128xf32>
    %5 = tpu.matmul %2, %4, %cst_6 {dimension_numbers = #tpu.dot_dimension_numbers<[1], [0], [0], [1], [0, 0, 1, 1], [], []>} : vector<512x4xf32>, vector<4x128xf32>, vector<512x128xf32> -> vector<512x128xf32>
    %6 = arith.addf %0, %5 : vector<512x128xf32>
    %c0_7 = arith.constant 0 : index
    %c0_8 = arith.constant 0 : index
    %c1 = arith.constant 1 : index
    %c0_9 = arith.constant 0 : index
    %7 = vector.load %arg1[%c0_7, %c0_8, %c1, %c0_9] : memref<2x18x18x4xf32, #tpu.memory_space<vmem>>, vector<2x16x16x4xf32>
    %8 = vector.shape_cast %7 : vector<2x16x16x4xf32> to vector<512x4xf32>
    %c1_10 = arith.constant 1 : index
    %c0_11 = arith.constant 0 : index
    %c0_12 = arith.constant 0 : index
    %9 = vector.load %arg2[%c1_10, %c0_11, %c0_12] : memref<9x4x128xf32, #tpu.memory_space<vmem>>, vector<1x4x128xf32>
    %10 = vector.shape_cast %9 : vector<1x4x128xf32> to vector<4x128xf32>
    %cst_13 = arith.constant dense<0.000000e+00> : vector<512x128xf32>
    %11 = tpu.matmul %8, %10, %cst_13 {dimension_numbers = #tpu.dot_dimension_numbers<[1], [0], [0], [1], [0, 0, 1, 1], [], []>} : vector<512x4xf32>, vector<4x128xf32>, vector<512x128xf32> -> vector<512x128xf32>
    %12 = arith.addf %6, %11 : vector<512x128xf32>
    %c0_14 = arith.constant 0 : index
    %c0_15 = arith.constant 0 : index
    %c2 = arith.constant 2 : index
    %c0_16 = arith.constant 0 : index
    %13 = vector.load %arg1[%c0_14, %c0_15, %c2, %c0_16] : memref<2x18x18x4xf32, #tpu.memory_space<vmem>>, vector<2x16x16x4xf32>
    %14 = vector.shape_cast %13 : vector<2x16x16x4xf32> to vector<512x4xf32>
    %c2_17 = arith.constant 2 : index
    %c0_18 = arith.constant 0 : index
    %c0_19 = arith.constant 0 : index
    %15 = vector.load %arg2[%c2_17, %c0_18, %c0_19] : memref<9x4x128xf32, #tpu.memory_space<vmem>>, vector<1x4x128xf32>
    %16 = vector.shape_cast %15 : vector<1x4x128xf32> to vector<4x128xf32>
    %cst_20 = arith.constant dense<0.000000e+00> : vector<512x128xf32>
    %17 = tpu.matmul %14, %16, %cst_20 {dimension_numbers = #tpu.dot_dimension_numbers<[1], [0], [0], [1], [0, 0, 1, 1], [], []>} : vector<512x4xf32>, vector<4x128xf32>, vector<512x128xf32> -> vector<512x128xf32>
    %18 = arith.addf %12, %17 : vector<512x128xf32>
    %c0_21 = arith.constant 0 : index
    %c1_22 = arith.constant 1 : index
    %c0_23 = arith.constant 0 : index
    %c0_24 = arith.constant 0 : index
    %19 = vector.load %arg1[%c0_21, %c1_22, %c0_23, %c0_24] : memref<2x18x18x4xf32, #tpu.memory_space<vmem>>, vector<2x16x16x4xf32>
    %20 = vector.shape_cast %19 : vector<2x16x16x4xf32> to vector<512x4xf32>
    %c3 = arith.constant 3 : index
    %c0_25 = arith.constant 0 : index
    %c0_26 = arith.constant 0 : index
    %21 = vector.load %arg2[%c3, %c0_25, %c0_26] : memref<9x4x128xf32, #tpu.memory_space<vmem>>, vector<1x4x128xf32>
    %22 = vector.shape_cast %21 : vector<1x4x128xf32> to vector<4x128xf32>
    %cst_27 = arith.constant dense<0.000000e+00> : vector<512x128xf32>
    %23 = tpu.matmul %20, %22, %cst_27 {dimension_numbers = #tpu.dot_dimension_numbers<[1], [0], [0], [1], [0, 0, 1, 1], [], []>} : vector<512x4xf32>, vector<4x128xf32>, vector<512x128xf32> -> vector<512x128xf32>
    %24 = arith.addf %18, %23 : vector<512x128xf32>
    %c0_28 = arith.constant 0 : index
    %c1_29 = arith.constant 1 : index
    %c1_30 = arith.constant 1 : index
    %c0_31 = arith.constant 0 : index
    %25 = vector.load %arg1[%c0_28, %c1_29, %c1_30, %c0_31] : memref<2x18x18x4xf32, #tpu.memory_space<vmem>>, vector<2x16x16x4xf32>
    %26 = vector.shape_cast %25 : vector<2x16x16x4xf32> to vector<512x4xf32>
    %c4 = arith.constant 4 : index
    %c0_32 = arith.constant 0 : index
    %c0_33 = arith.constant 0 : index
    %27 = vector.load %arg2[%c4, %c0_32, %c0_33] : memref<9x4x128xf32, #tpu.memory_space<vmem>>, vector<1x4x128xf32>
    %28 = vector.shape_cast %27 : vector<1x4x128xf32> to vector<4x128xf32>
    %cst_34 = arith.constant dense<0.000000e+00> : vector<512x128xf32>
    %29 = tpu.matmul %26, %28, %cst_34 {dimension_numbers = #tpu.dot_dimension_numbers<[1], [0], [0], [1], [0, 0, 1, 1], [], []>} : vector<512x4xf32>, vector<4x128xf32>, vector<512x128xf32> -> vector<512x128xf32>
    %30 = arith.addf %24, %29 : vector<512x128xf32>
    %c0_35 = arith.constant 0 : index
    %c1_36 = arith.constant 1 : index
    %c2_37 = arith.constant 2 : index
    %c0_38 = arith.constant 0 : index
    %31 = vector.load %arg1[%c0_35, %c1_36, %c2_37, %c0_38] : memref<2x18x18x4xf32, #tpu.memory_space<vmem>>, vector<2x16x16x4xf32>
    %32 = vector.shape_cast %31 : vector<2x16x16x4xf32> to vector<512x4xf32>
    %c5 = arith.constant 5 : index
    %c0_39 = arith.constant 0 : index
    %c0_40 = arith.constant 0 : index
    %33 = vector.load %arg2[%c5, %c0_39, %c0_40] : memref<9x4x128xf32, #tpu.memory_space<vmem>>, vector<1x4x128xf32>
    %34 = vector.shape_cast %33 : vector<1x4x128xf32> to vector<4x128xf32>
    %cst_41 = arith.constant dense<0.000000e+00> : vector<512x128xf32>
    %35 = tpu.matmul %32, %34, %cst_41 {dimension_numbers = #tpu.dot_dimension_numbers<[1], [0], [0], [1], [0, 0, 1, 1], [], []>} : vector<512x4xf32>, vector<4x128xf32>, vector<512x128xf32> -> vector<512x128xf32>
    %36 = arith.addf %30, %35 : vector<512x128xf32>
    %c0_42 = arith.constant 0 : index
    %c2_43 = arith.constant 2 : index
    %c0_44 = arith.constant 0 : index
    %c0_45 = arith.constant 0 : index
    %37 = vector.load %arg1[%c0_42, %c2_43, %c0_44, %c0_45] : memref<2x18x18x4xf32, #tpu.memory_space<vmem>>, vector<2x16x16x4xf32>
    %38 = vector.shape_cast %37 : vector<2x16x16x4xf32> to vector<512x4xf32>
    %c6 = arith.constant 6 : index
    %c0_46 = arith.constant 0 : index
    %c0_47 = arith.constant 0 : index
    %39 = vector.load %arg2[%c6, %c0_46, %c0_47] : memref<9x4x128xf32, #tpu.memory_space<vmem>>, vector<1x4x128xf32>
    %40 = vector.shape_cast %39 : vector<1x4x128xf32> to vector<4x128xf32>
    %cst_48 = arith.constant dense<0.000000e+00> : vector<512x128xf32>
    %41 = tpu.matmul %38, %40, %cst_48 {dimension_numbers = #tpu.dot_dimension_numbers<[1], [0], [0], [1], [0, 0, 1, 1], [], []>} : vector<512x4xf32>, vector<4x128xf32>, vector<512x128xf32> -> vector<512x128xf32>
    %42 = arith.addf %36, %41 : vector<512x128xf32>
    %c0_49 = arith.constant 0 : index
    %c2_50 = arith.constant 2 : index
    %c1_51 = arith.constant 1 : index
    %c0_52 = arith.constant 0 : index
    %43 = vector.load %arg1[%c0_49, %c2_50, %c1_51, %c0_52] : memref<2x18x18x4xf32, #tpu.memory_space<vmem>>, vector<2x16x16x4xf32>
    %44 = vector.shape_cast %43 : vector<2x16x16x4xf32> to vector<512x4xf32>
    %c7 = arith.constant 7 : index
    %c0_53 = arith.constant 0 : index
    %c0_54 = arith.constant 0 : index
    %45 = vector.load %arg2[%c7, %c0_53, %c0_54] : memref<9x4x128xf32, #tpu.memory_space<vmem>>, vector<1x4x128xf32>
    %46 = vector.shape_cast %45 : vector<1x4x128xf32> to vector<4x128xf32>
    %cst_55 = arith.constant dense<0.000000e+00> : vector<512x128xf32>
    %47 = tpu.matmul %44, %46, %cst_55 {dimension_numbers = #tpu.dot_dimension_numbers<[1], [0], [0], [1], [0, 0, 1, 1], [], []>} : vector<512x4xf32>, vector<4x128xf32>, vector<512x128xf32> -> vector<512x128xf32>
    %48 = arith.addf %42, %47 : vector<512x128xf32>
    %c0_56 = arith.constant 0 : index
    %c2_57 = arith.constant 2 : index
    %c2_58 = arith.constant 2 : index
    %c0_59 = arith.constant 0 : index
    %49 = vector.load %arg1[%c0_56, %c2_57, %c2_58, %c0_59] : memref<2x18x18x4xf32, #tpu.memory_space<vmem>>, vector<2x16x16x4xf32>
    %50 = vector.shape_cast %49 : vector<2x16x16x4xf32> to vector<512x4xf32>
    %c8 = arith.constant 8 : index
    %c0_60 = arith.constant 0 : index
    %c0_61 = arith.constant 0 : index
    %51 = vector.load %arg2[%c8, %c0_60, %c0_61] : memref<9x4x128xf32, #tpu.memory_space<vmem>>, vector<1x4x128xf32>
    %52 = vector.shape_cast %51 : vector<1x4x128xf32> to vector<4x128xf32>
    %cst_62 = arith.constant dense<0.000000e+00> : vector<512x128xf32>
    %53 = tpu.matmul %50, %52, %cst_62 {dimension_numbers = #tpu.dot_dimension_numbers<[1], [0], [0], [1], [0, 0, 1, 1], [], []>} : vector<512x4xf32>, vector<4x128xf32>, vector<512x128xf32> -> vector<512x128xf32>
    %54 = arith.addf %48, %53 : vector<512x128xf32>
    %c0_63 = arith.constant 0 : index
    %c0_64 = arith.constant 0 : index
    %55 = vector.load %arg3[%c0_63, %c0_64] : memref<1x128xf32, #tpu.memory_space<vmem>>, vector<1x128xf32>
    %56 = vector.broadcast %55 : vector<1x128xf32> to vector<512x128xf32>
    %57 = arith.addf %54, %56 : vector<512x128xf32>
    %c0_65 = arith.constant 0 : index
    %c0_66 = arith.constant 0 : index
    %58 = vector.load %arg4[%c0_65, %c0_66] : memref<512x128xf32, #tpu.memory_space<vmem>>, vector<512x128xf32>
    tpu.vector_store %arg4[%c0_65, %c0_66], %57 {strides = array<i32>} : memref<512x128xf32, #tpu.memory_space<vmem>>, vector<512x128xf32>,
    return
  }
  func.func @transform_0(%arg0: i32) -> (i32, i32, i32, i32) {
    %c0_i32 = arith.constant 0 : i32
    %c0_i32_0 = arith.constant 0 : i32
    %c0_i32_1 = arith.constant 0 : i32
    %c0_i32_2 = arith.constant 0 : i32
    return %arg0, %c0_i32, %c0_i32_0, %c0_i32_1 : i32, i32, i32, i32
  }
  func.func @transform_1(%arg0: i32) -> (i32, i32, i32) {
    %c0_i32 = arith.constant 0 : i32
    %c0_i32_0 = arith.constant 0 : i32
    %c0_i32_1 = arith.constant 0 : i32
    %c0_i32_2 = arith.constant 0 : i32
    return %c0_i32, %c0_i32_0, %c0_i32_1 : i32, i32, i32
  }
  func.func @transform_2(%arg0: i32) -> (i32, i32) {
    %c0_i32 = arith.constant 0 : i32
    %c0_i32_0 = arith.constant 0 : i32
    %c0_i32_1 = arith.constant 0 : i32
    return %c0_i32, %c0_i32_0 : i32, i32
  }
  func.func @transform_3(%arg0: i32) -> (i32, i32) {
    %c0_i32 = arith.constant 0 : i32
    %c0_i32_0 = arith.constant 0 : i32
    return %arg0, %c0_i32 : i32, i32
  }
}

</mosaic_0001>

<bundles_post_ra>
// kernel: tpu_custom_call.1
= control target key start
LH: loop header
LB: loop body
LE: loop exit
PB: predicated region body
PF: predicated region fallthrough
CT: control target
= control target key end

     0   :  { %vm339_vm0 = vcmask 1043456   ;;  %vm146_vm1 = vcmask 31744   ;;  %s8354_s0 = inlined_call_operand.vmem [shape: f32[2,18,18,4], index: 0, kind: input, shape index: {}]   ;;  %s8355_s1 = inlined_call_operand.vmem [shape: f32[9,4,128], index: 1, kind: input, shape index: {}]   ;;  %s8356_s2 = inlined_call_operand.vmem [shape: f32[1,128], index: 2, kind: input, shape index: {}]   ;;  %s8357_s3 = inlined_call_operand.hbm [shape: f32[512,128], index: 3, kind: output, shape index: {}]  }
   0x1   :  { %v4846_v0 = vld [vmem:[%s8355_s1 + $0x4] sm:$0xf]  ;;  %v112_v2 = vld [vmem:[%s8354_s0 + $0x1b1] sm:$0xff]  ;;  %v4977_v3 = vld [vmem:[%s8355_s1 + $0x8] sm:$0xf] }
   0x2   :  { %v5886_v1 = vld [vmem:[%s8354_s0 + $0xc1] sm:$0xff]  ;;  %5823 = vmatpush.msk.msra.mxu1 %vm339_vm0, %v4846_v0  ;;  %5824 = vmatpush.msk.msra.mxu2 %vm339_vm0, %v4846_v0  ;;  %v128_v4 = vld [vmem:[%s8354_s0 + $0x271] sm:$0xff]  ;;  %v5107_v5 = vld [vmem:[%s8355_s1 + $0xc] sm:$0xf] }
   0x3   :  { %4864 = vmatmul.msk.f32.vlgmr.msra.gmra.mxu1 %vm146_vm1, %v5886_v1  ;;  %4880 = vmatmul.msk.f32.vlgmr.msra.gmra.mxu2 %vm146_vm1, %v112_v2  ;;  %v79_v6 = vld [vmem:[%s8355_s1] sm:$0xf]  ;;  %v5237_v8 = vld [vmem:[%s8355_s1 + $0x10] sm:$0xf] }
   0x4   :  { %4978 = vmatpush.msk.msrb.mxu2 %vm339_vm0, %v4977_v3  ;;  %5825 = vmatpush.msk.msra.mxu3 %vm339_vm0, %v4846_v0  ;;  %v80_v7 = vld [vmem:[%s8354_s0 + $0x1] sm:$0xff]  ;;  %v5924_v9 = vld [vmem:[%s8354_s0 + $0xc9] sm:$0xff]  ;;  %v113_v10 = vld [vmem:[%s8354_s0 + $0x1b9] sm:$0xff] }
   0x5   :  { %4896 = vmatmul.msk.f32.vlgmr.msra.gmra.mxu3 %vm146_vm1, %v128_v4  ;;  %4912 = vmatpush.msk.msrb.mxu1 %vm339_vm0, %v79_v6 }
   0x6   :  { %5108 = vmatpush.msk.msrb.mxu3 %vm339_vm0, %v5107_v5  ;;  %4847 = vmatpush.msk.msra.mxu0 %vm339_vm0, %v4846_v0 }
   0x7   :  { %4848 = vmatmul.msk.f32.vlgmr.msra.gmra.mxu0 %vm146_vm1, %v80_v7 }
   0x8   :  { %5238 = vmatpush.msk.msrb.mxu0 %vm339_vm0, %v5237_v8 }
   0x9   :  { %8 = vsyncpa [#allocation3], 0  ;;  %v129_v11 = vld [vmem:[%s8354_s0 + $0x279] sm:$0xff]  ;;  %v81_v12 = vld [vmem:[%s8354_s0 + $0x9] sm:$0xff]  ;;  %s4834_s21 = sshll.u32 %s8357_s3, 4  ;;  %s5858_s22 = smov 128   ;;  %s4835_s21 = int_to_ptr.hbm [resolvable:$true] %s4834_s21 }
   0xa   :  { %v5944_v13 = vld [vmem:[%s8354_s0 + $0xd9] sm:$0xff]  ;;  %v114_v14 = vld [vmem:[%s8354_s0 + $0x1c9] sm:$0xff]  ;;  %v5966_v17 = vld [vmem:[%s8354_s0 + $0xe1] sm:$0xff]  ;;  %s5859_s23 = smov 8  }
   0xb   :  { %4865 = vmatmul.msk.f32.gmra.mxu1 %vm146_vm1, %v5924_v9  ;;  %4881 = vmatmul.msk.f32.gmra.mxu2 %vm146_vm1, %v113_v10  ;;  %v130_v15 = vld [vmem:[%s8354_s0 + $0x289] sm:$0xff]  ;;  %v5958_v16 = vld [vmem:[%s8354_s0 + $0x19] sm:$0xff]  ;;  %v115_v18 = vld [vmem:[%s8354_s0 + $0x1d1] sm:$0xff] }
   0xc   :  { %v131_v19 = vld [vmem:[%s8354_s0 + $0x291] sm:$0xff]  ;;  %v5980_v20 = vld [vmem:[%s8354_s0 + $0x21] sm:$0xff]  ;;  %v6010_v25 = vld [vmem:[%s8354_s0 + $0xf9] sm:$0xff] }
   0xd   :  { %4897 = vmatmul.msk.f32.gmra.mxu3 %vm146_vm1, %v129_v11  ;;  %v5988_v21 = vld [vmem:[%s8354_s0 + $0xf1] sm:$0xff]  ;;  %v116_v22 = vld [vmem:[%s8354_s0 + $0x1e1] sm:$0xff]  ;;  %v117_v26 = vld [vmem:[%s8354_s0 + $0x1e9] sm:$0xff] }
   0xe   :  { %v132_v23 = vld [vmem:[%s8354_s0 + $0x2a1] sm:$0xff]  ;;  %v6002_v24 = vld [vmem:[%s8354_s0 + $0x31] sm:$0xff]  ;;  %v133_v27 = vld [vmem:[%s8354_s0 + $0x2a9] sm:$0xff] }
   0xf   :  { %4849 = vmatmul.msk.f32.gmra.mxu0 %vm146_vm1, %v81_v12  ;;  %v6024_v28 = vld [vmem:[%s8354_s0 + $0x39] sm:$0xff]  ;;  %v6032_v29 = vld [vmem:[%s8354_s0 + $0x109] sm:$0xff]  ;;  %v6054_v33 = vld [vmem:[%s8354_s0 + $0x111] sm:$0xff] }
  0x10   :  { %v118_v30 = vld [vmem:[%s8354_s0 + $0x1f9] sm:$0xff]  ;;  %v6046_v32 = vld [vmem:[%s8354_s0 + $0x49] sm:$0xff]  ;;  %v119_v34 = vld [vmem:[%s8354_s0 + $0x201] sm:$0xff] }
  0x11   :  { %v134_v31 = vld [vmem:[%s8354_s0 + $0x2b9] sm:$0xff]  ;;  %v135_v35 = vld [vmem:[%s8354_s0 + $0x2c1] sm:$0xff]  ;;  %v6068_v36 = vld [vmem:[%s8354_s0 + $0x51] sm:$0xff] }
  0x12   :  { %v6076_v37 = vld [vmem:[%s8354_s0 + $0x121] sm:$0xff]  ;;  %v120_v38 = vld [vmem:[%s8354_s0 + $0x211] sm:$0xff]  ;;  %v6098_v41 = vld [vmem:[%s8354_s0 + $0x129] sm:$0xff] }
  0x13   :  { %4866 = vmatmul.msk.f32.gmra.mxu1 %vm146_vm1, %v5944_v13  ;;  %4882 = vmatmul.msk.f32.gmra.mxu2 %vm146_vm1, %v114_v14  ;;  %v136_v39 = vld [vmem:[%s8354_s0 + $0x2d1] sm:$0xff]  ;;  %v6090_v40 = vld [vmem:[%s8354_s0 + $0x61] sm:$0xff]  ;;  %v121_v42 = vld [vmem:[%s8354_s0 + $0x219] sm:$0xff] }
  0x14   :  { %v137_v43 = vld [vmem:[%s8354_s0 + $0x2d9] sm:$0xff]  ;;  %v6112_v44 = vld [vmem:[%s8354_s0 + $0x69] sm:$0xff]  ;;  %v6142_v49 = vld [vmem:[%s8354_s0 + $0x141] sm:$0xff] }
  0x15   :  { %4898 = vmatmul.msk.f32.gmra.mxu3 %vm146_vm1, %v130_v15  ;;  %v6120_v45 = vld [vmem:[%s8354_s0 + $0x139] sm:$0xff]  ;;  %v122_v46 = vld [vmem:[%s8354_s0 + $0x229] sm:$0xff]  ;;  %v123_v50 = vld [vmem:[%s8354_s0 + $0x231] sm:$0xff] }
  0x16   :  { %v138_v47 = vld [vmem:[%s8354_s0 + $0x2e9] sm:$0xff]  ;;  %v6134_v48 = vld [vmem:[%s8354_s0 + $0x79] sm:$0xff]  ;;  %v139_v51 = vld [vmem:[%s8354_s0 + $0x2f1] sm:$0xff] }
  0x17   :  { %4850 = vmatmul.msk.f32.gmra.mxu0 %vm146_vm1, %v5958_v16  ;;  %v6156_v52 = vld [vmem:[%s8354_s0 + $0x81] sm:$0xff]  ;;  %v6164_v53 = vld [vmem:[%s8354_s0 + $0x151] sm:$0xff]  ;;  %v5627_v58 = vld [vmem:[%s8355_s1 + $0x1c] sm:$0xf] }
  0x18   :  { %v124_v54 = vld [vmem:[%s8354_s0 + $0x241] sm:$0xff]  ;;  %v5497_v56 = vld [vmem:[%s8355_s1 + $0x18] sm:$0xf]  ;;  %5628 = vmatpush.msk.msra.mxu3 %vm339_vm0, %v5627_v58  ;;  %v5367_v59 = vld [vmem:[%s8355_s1 + $0x14] sm:$0xf] }
  0x19   :  { %v140_v55 = vld [vmem:[%s8354_s0 + $0x301] sm:$0xff]  ;;  %v6181_v57 = vld [vmem:[%s8354_s0 + $0x91] sm:$0xff]  ;;  %5498 = vmatpush.msk.msra.mxu2 %vm339_vm0, %v5497_v56  ;;  %5368 = vmatpush.msk.msra.mxu1 %vm339_vm0, %v5367_v59  ;;  %v6198_v60 = vld [vmem:[%s8354_s0 + $0x159] sm:$0xff] }
  0x1a   :  { %v125_v61 = vld [vmem:[%s8354_s0 + $0x249] sm:$0xff]  ;;  %v6212_v63 = vld [vmem:[%s8354_s0 + $0x99] sm:$0xff]  ;;  %v6246_v6 = vld [vmem:[%s8354_s0 + $0x171] sm:$0xff] }
  0x1b   :  { %4867 = vmatmul.msk.f32.gmra.mxu1 %vm146_vm1, %v5966_v17  ;;  %4883 = vmatmul.msk.f32.gmra.mxu2 %vm146_vm1, %v115_v18  ;;  %v141_v62 = vld [vmem:[%s8354_s0 + $0x309] sm:$0xff]  ;;  %v5757_v0 = vld [vmem:[%s8355_s1 + $0x20] sm:$0xf]  ;;  %v6260_v10 = vld [vmem:[%s8354_s0 + $0xb1] sm:$0xff] }
  0x1c   :  { %5758 = vmatpush.msk.msra.mxu0 %vm339_vm0, %v5757_v0  ;;  %v6224_v2 = vld [vmem:[%s8354_s0 + $0x169] sm:$0xff]  ;;  %v126_v3 = vld [vmem:[%s8354_s0 + $0x259] sm:$0xff]  ;;  %v127_v7 = vld [vmem:[%s8354_s0 + $0x261] sm:$0xff] }
  0x1d   :  { %4899 = vmatmul.msk.f32.gmra.mxu3 %vm146_vm1, %v131_v19  ;;  %v142_v4 = vld [vmem:[%s8354_s0 + $0x319] sm:$0xff]  ;;  %v6238_v5 = vld [vmem:[%s8354_s0 + $0xa9] sm:$0xff]  ;;  %v143_v8 = vld [vmem:[%s8354_s0 + $0x321] sm:$0xff] }
  0x1e   :  { %v15_v12 = vld [vmem:[%s8354_s0] sm:$0xff]  ;;  %v5043_v15 = vld [vmem:[%s8354_s0 + $0x18] sm:$0xff]  ;;  %v5047_v58 = vld [vmem:[%s8354_s0 + $0x48] sm:$0xff] }
  0x1f   :  { %4851 = vmatmul.msk.f32.gmra.mxu0 %vm146_vm1, %v5980_v20  ;;  %v956_v14 = vld [vmem:[%s8354_s0 + $0x2] sm:$0xff]  ;;  %v960_v56 = vld [vmem:[%s8354_s0 + $0x32] sm:$0xff]  ;;  %v961_v0 = vld [vmem:[%s8354_s0 + $0x3a] sm:$0xff] }
  0x23   :  { %4868 = vmatmul.msk.f32.gmra.mxu1 %vm146_vm1, %v5988_v21  ;;  %4884 = vmatmul.msk.f32.gmra.mxu2 %vm146_vm1, %v116_v22 }
  0x25   :  { %4900 = vmatmul.msk.f32.gmra.mxu3 %vm146_vm1, %v132_v23 }
  0x27   :  { %4852 = vmatmul.msk.f32.gmra.mxu0 %vm146_vm1, %v6002_v24 }
  0x2b   :  { %4869 = vmatmul.msk.f32.gmra.mxu1 %vm146_vm1, %v6010_v25  ;;  %4885 = vmatmul.msk.f32.gmra.mxu2 %vm146_vm1, %v117_v26  ;;  %v16_v26 = vld [vmem:[%s8354_s0 + $0x8] sm:$0xff] }
  0x2d   :  { %4901 = vmatmul.msk.f32.gmra.mxu3 %vm146_vm1, %v133_v27  ;;  %v957_v27 = vld [vmem:[%s8354_s0 + $0xa] sm:$0xff] }
  0x2f   :  { %4853 = vmatmul.msk.f32.gmra.mxu0 %vm146_vm1, %v6024_v28 }
  0x33   :  { %4870 = vmatmul.msk.f32.gmra.mxu1 %vm146_vm1, %v6032_v29  ;;  %4886 = vmatmul.msk.f32.gmra.mxu2 %vm146_vm1, %v118_v30  ;;  %v5044_v30 = vld [vmem:[%s8354_s0 + $0x20] sm:$0xff] }
  0x35   :  { %4902 = vmatmul.msk.f32.gmra.mxu3 %vm146_vm1, %v134_v31 }
  0x37   :  { %4854 = vmatmul.msk.f32.gmra.mxu0 %vm146_vm1, %v6046_v32 }
  0x3b   :  { %4871 = vmatmul.msk.f32.gmra.mxu1 %vm146_vm1, %v6054_v33  ;;  %4887 = vmatmul.msk.f32.gmra.mxu2 %vm146_vm1, %v119_v34 }
  0x3d   :  { %4903 = vmatmul.msk.f32.gmra.mxu3 %vm146_vm1, %v135_v35 }
  0x3f   :  { %4855 = vmatmul.msk.f32.gmra.mxu0 %vm146_vm1, %v6068_v36 }
  0x43   :  { %4872 = vmatmul.msk.f32.gmra.mxu1 %vm146_vm1, %v6076_v37  ;;  %4888 = vmatmul.msk.f32.gmra.mxu2 %vm146_vm1, %v120_v38  ;;  %v958_v38 = vld [vmem:[%s8354_s0 + $0x1a] sm:$0xff] }
  0x45   :  { %4904 = vmatmul.msk.f32.gmra.mxu3 %vm146_vm1, %v136_v39  ;;  %v5045_v39 = vld [vmem:[%s8354_s0 + $0x30] sm:$0xff] }
  0x47   :  { %4856 = vmatmul.msk.f32.gmra.mxu0 %vm146_vm1, %v6090_v40 }
  0x4b   :  { %4873 = vmatmul.msk.f32.gmra.mxu1 %vm146_vm1, %v6098_v41  ;;  %4889 = vmatmul.msk.f32.gmra.mxu2 %vm146_vm1, %v121_v42 }
  0x4d   :  { %4905 = vmatmul.msk.f32.gmra.mxu3 %vm146_vm1, %v137_v43 }
  0x4f   :  { %4857 = vmatmul.msk.f32.gmra.mxu0 %vm146_vm1, %v6112_v44 }
  0x53   :  { %4874 = vmatmul.msk.f32.gmra.mxu1 %vm146_vm1, %v6120_v45  ;;  %4890 = vmatmul.msk.f32.gmra.mxu2 %vm146_vm1, %v122_v46 }
  0x55   :  { %4906 = vmatmul.msk.f32.gmra.mxu3 %vm146_vm1, %v138_v47  ;;  %v959_v47 = vld [vmem:[%s8354_s0 + $0x22] sm:$0xff] }
  0x57   :  { %4858 = vmatmul.msk.f32.gmra.mxu0 %vm146_vm1, %v6134_v48 }
  0x5b   :  { %4875 = vmatmul.msk.f32.gmra.mxu1 %vm146_vm1, %v6142_v49  ;;  %4891 = vmatmul.msk.f32.gmra.mxu2 %vm146_vm1, %v123_v50  ;;  %v5046_v50 = vld [vmem:[%s8354_s0 + $0x38] sm:$0xff] }
  0x5d   :  { %4907 = vmatmul.msk.f32.gmra.mxu3 %vm146_vm1, %v139_v51 }
  0x5f   :  { %4859 = vmatmul.msk.f32.gmra.mxu0 %vm146_vm1, %v6156_v52 }
  0x63   :  { %4876 = vmatmul.msk.f32.gmra.mxu1 %vm146_vm1, %v6164_v53  ;;  %4892 = vmatmul.msk.f32.gmra.mxu2 %vm146_vm1, %v124_v54 }
  0x65   :  { %4908 = vmatmul.msk.f32.gmra.mxu3 %vm146_vm1, %v140_v55 }
  0x67   :  { %4860 = vmatmul.msk.f32.gmra.mxu0 %vm146_vm1, %v6181_v57 }
  0x6b   :  { %4877 = vmatmul.msk.f32.gmra.mxu1 %vm146_vm1, %v6198_v60  ;;  %4893 = vmatmul.msk.f32.gmra.mxu2 %vm146_vm1, %v125_v61 }
  0x6d   :  { %4909 = vmatmul.msk.f32.gmra.mxu3 %vm146_vm1, %v141_v62 }
  0x6f   :  { %4861 = vmatmul.msk.f32.gmra.mxu0 %vm146_vm1, %v6212_v63 }
  0x73   :  { %4878 = vmatmul.msk.f32.gmra.mxu1 %vm146_vm1, %v6224_v2  ;;  %4894 = vmatmul.msk.f32.gmra.mxu2 %vm146_vm1, %v126_v3  ;;  %v5048_v3 = vld [vmem:[%s8354_s0 + $0x50] sm:$0xff] }
  0x75   :  { %4910 = vmatmul.msk.f32.gmra.mxu3 %vm146_vm1, %v142_v4 }
  0x77   :  { %4862 = vmatmul.msk.f32.gmra.mxu0 %vm146_vm1, %v6238_v5 }
  0x7b   :  { %4879 = vmatmul.msk.f32.gmra.mxu1 %vm146_vm1, %v6246_v6  ;;  %4895 = vmatmul.msk.f32.gmra.mxu2 %vm146_vm1, %v127_v7 }
  0x7d   :  { %4911 = vmatmul.msk.f32.gmra.mxu3 %vm146_vm1, %v143_v8 }
  0x7f   :  { %4863 = vmatmul.msk.f32.gmra.mxu0 %vm146_vm1, %v6260_v10 }
  0x80   :  { %v6265_v11 = vpop.f32.mrf.mxu1 }
  0x83   :  { %4913 = vmatmul.msk.f32.vlgmr.msrb.gmra.mxu1 %vm146_vm1, %v15_v12  ;;  %4979 = vmatmul.msk.f32.vlgmr.msrb.gmra.mxu2 %vm146_vm1, %v956_v14  ;;  %v962_v12 = vld [vmem:[%s8354_s0 + $0x4a] sm:$0xff]  ;;  %v5049_v14 = vld [vmem:[%s8354_s0 + $0x60] sm:$0xff] }
  0x84   :  { %v6278_v18 = vpop.f32.mrf.mxu0 }
  0x85   :  { %5109 = vmatmul.msk.f32.vlgmr.msrb.gmra.mxu3 %vm146_vm1, %v5043_v15 }
  0x86   :  { %v6281_v19 = vpop.f32.mrf.mxu2 }
  0x87   :  { %5239 = vmatmul.msk.f32.vlgmr.msrb.gmra.mxu0 %vm146_vm1, %v5958_v16 }
  0x88   :  { %v6285_v22 = vpop.f32.mrf.mxu1  ;;  %v6287_v23 = vpop.f32.mrf.mxu3 }
  0x89   :  { %8358 = vst [vmem:[#allocation5_spill] sm:$0xff] %v6287_v23  ;;  %v969_v23 = vld [vmem:[%s8354_s0 + $0x9a] sm:$0xff] }
  0x8b   :  { %4914 = vmatmul.msk.f32.gmra.mxu1 %vm146_vm1, %v16_v26  ;;  %4980 = vmatmul.msk.f32.gmra.mxu2 %vm146_vm1, %v957_v27 }
  0x8c   :  { %v6300_v16 = vpop.f32.mrf.mxu0 }
  0x8d   :  { %5110 = vmatmul.msk.f32.gmra.mxu3 %vm146_vm1, %v5044_v30 }
  0x8e   :  { %v6303_v31 = vpop.f32.mrf.mxu2 }
  0x8f   :  { %5240 = vmatmul.msk.f32.gmra.mxu0 %vm146_vm1, %v5980_v20 }
  0x90   :  { %v6307_v34 = vpop.f32.mrf.mxu1  ;;  %v6309_v35 = vpop.f32.mrf.mxu3 }
  0x91   :  { %8359 = vst [vmem:[#allocation6_spill] sm:$0xff] %v6309_v35 }
  0x93   :  { %4915 = vmatmul.msk.f32.gmra.mxu1 %vm146_vm1, %v5043_v15  ;;  %4981 = vmatmul.msk.f32.gmra.mxu2 %vm146_vm1, %v958_v38  ;;  %v5050_v38 = vld [vmem:[%s8354_s0 + $0x68] sm:$0xff] }
  0x94   :  { %v6319_v42 = vpop.f32.mrf.mxu0 }
  0x95   :  { %5111 = vmatmul.msk.f32.gmra.mxu3 %vm146_vm1, %v5045_v39 }
  0x96   :  { %v6322_v20 = vpop.f32.mrf.mxu2 }
  0x97   :  { %5241 = vmatmul.msk.f32.gmra.mxu0 %vm146_vm1, %v6002_v24 }
  0x98   :  { %v6326_v43 = vpop.f32.mrf.mxu1  ;;  %v6328_v46 = vpop.f32.mrf.mxu3 }
  0x99   :  { %8360 = vst [vmem:[#allocation7_spill] sm:$0xff] %v6328_v46  ;;  %v968_v46 = vld [vmem:[%s8354_s0 + $0x92] sm:$0xff] }
  0x9b   :  { %4916 = vmatmul.msk.f32.gmra.mxu1 %vm146_vm1, %v5044_v30  ;;  %4982 = vmatmul.msk.f32.gmra.mxu2 %vm146_vm1, %v959_v47  ;;  %v963_v30 = vld [vmem:[%s8354_s0 + $0x52] sm:$0xff] }
  0x9c   :  { %v6338_v51 = vpop.f32.mrf.mxu0 }
  0x9d   :  { %5112 = vmatmul.msk.f32.gmra.mxu3 %vm146_vm1, %v5046_v50 }
  0x9e   :  { %v6341_v24 = vpop.f32.mrf.mxu2 }
  0x9f   :  { %5242 = vmatmul.msk.f32.gmra.mxu0 %vm146_vm1, %v6024_v28 }
  0xa0   :  { %v6345_v54 = vpop.f32.mrf.mxu1  ;;  %v6347_v55 = vpop.f32.mrf.mxu3 }
  0xa1   :  { %8361 = vst [vmem:[#allocation8_spill] sm:$0xff] %v6347_v55 }
  0xa3   :  { %4917 = vmatmul.msk.f32.gmra.mxu1 %vm146_vm1, %v5045_v39  ;;  %4983 = vmatmul.msk.f32.gmra.mxu2 %vm146_vm1, %v960_v56  ;;  %v964_v56 = vld [vmem:[%s8354_s0 + $0x62] sm:$0xff] }
  0xa4   :  { %v6357_v59 = vpop.f32.mrf.mxu0 }
  0xa5   :  { %5113 = vmatmul.msk.f32.gmra.mxu3 %vm146_vm1, %v5047_v58 }
  0xa6   :  { %v6360_v28 = vpop.f32.mrf.mxu2 }
  0xa7   :  { %5243 = vmatmul.msk.f32.gmra.mxu0 %vm146_vm1, %v6046_v32 }
  0xa8   :  { %v6364_v61 = vpop.f32.mrf.mxu1  ;;  %v6366_v62 = vpop.f32.mrf.mxu3 }
  0xa9   :  { %8362 = vst [vmem:[#allocation9_spill] sm:$0xff] %v6366_v62  ;;  %v967_v62 = vld [vmem:[%s8354_s0 + $0x82] sm:$0xff] }
  0xab   :  { %4918 = vmatmul.msk.f32.gmra.mxu1 %vm146_vm1, %v5046_v50  ;;  %4984 = vmatmul.msk.f32.gmra.mxu2 %vm146_vm1, %v961_v0 }
  0xac   :  { %v6376_v4 = vpop.f32.mrf.mxu0 }
  0xad   :  { %5114 = vmatmul.msk.f32.gmra.mxu3 %vm146_vm1, %v5048_v3 }
  0xae   :  { %v6379_v32 = vpop.f32.mrf.mxu2 }
  0xaf   :  { %8363 = vst [vmem:[#allocation10_spill] sm:$0xff] %v6379_v32  ;;  %5244 = vmatmul.msk.f32.gmra.mxu0 %vm146_vm1, %v6068_v36 }
  0xb0   :  { %v6383_v7 = vpop.f32.mrf.mxu1  ;;  %v6385_v8 = vpop.f32.mrf.mxu3 }
  0xb1   :  { %8364 = vst [vmem:[#allocation11_spill] sm:$0xff] %v6385_v8 }
  0xb3   :  { %4919 = vmatmul.msk.f32.gmra.mxu1 %vm146_vm1, %v5047_v58  ;;  %4985 = vmatmul.msk.f32.gmra.mxu2 %vm146_vm1, %v962_v12  ;;  %v5051_v58 = vld [vmem:[%s8354_s0 + $0x78] sm:$0xff] }
  0xb4   :  { %v6395_v15 = vpop.f32.mrf.mxu0 }
  0xb5   :  { %5115 = vmatmul.msk.f32.gmra.mxu3 %vm146_vm1, %v5049_v14 }
  0xb6   :  { %v6398_v36 = vpop.f32.mrf.mxu2 }
  0xb7   :  { %8365 = vst [vmem:[#allocation12_spill] sm:$0xff] %v6398_v36  ;;  %5245 = vmatmul.msk.f32.gmra.mxu0 %vm146_vm1, %v6090_v40  ;;  %v973_v36 = vld [vmem:[%s8354_s0 + $0xca] sm:$0xff] }
  0xb8   :  { %v6402_v26 = vpop.f32.mrf.mxu1  ;;  %v6404_v27 = vpop.f32.mrf.mxu3 }
  0xb9   :  { %8366 = vst [vmem:[#allocation13_spill] sm:$0xff] %v6404_v27  ;;  %v966_v27 = vld [vmem:[%s8354_s0 + $0x7a] sm:$0xff] }
  0xbb   :  { %4920 = vmatmul.msk.f32.gmra.mxu1 %vm146_vm1, %v5048_v3  ;;  %4986 = vmatmul.msk.f32.gmra.mxu2 %vm146_vm1, %v963_v30  ;;  %v965_v30 = vld [vmem:[%s8354_s0 + $0x6a] sm:$0xff] }
  0xbc   :  { %v6414_v39 = vpop.f32.mrf.mxu0 }
  0xbd   :  { %5116 = vmatmul.msk.f32.gmra.mxu3 %vm146_vm1, %v5050_v38 }
  0xbe   :  { %v6417_v40 = vpop.f32.mrf.mxu2 }
  0xbf   :  { %8367 = vst [vmem:[#allocation14_spill] sm:$0xff] %v6417_v40  ;;  %5246 = vmatmul.msk.f32.gmra.mxu0 %vm146_vm1, %v6112_v44 }
  0xc0   :  { %v6421_v47 = vpop.f32.mrf.mxu1  ;;  %v6423_v50 = vpop.f32.mrf.mxu3 }
  0xc1   :  { %8368 = vst [vmem:[#allocation15_spill] sm:$0xff] %v6423_v50 }
  0xc3   :  { %4921 = vmatmul.msk.f32.gmra.mxu1 %vm146_vm1, %v5049_v14  ;;  %4987 = vmatmul.msk.f32.gmra.mxu2 %vm146_vm1, %v964_v56  ;;  %v5052_v14 = vld [vmem:[%s8354_s0 + $0x80] sm:$0xff] }
  0xc4   :  { %v6433_v0 = vpop.f32.mrf.mxu0 }
  0xc5   :  { %5117 = vmatmul.msk.f32.gmra.mxu3 %vm146_vm1, %v5051_v58 }
  0xc6   :  { %v6436_v44 = vpop.f32.mrf.mxu2 }
  0xc7   :  { %8369 = vst [vmem:[#allocation16_spill] sm:$0xff] %v6436_v44  ;;  %5247 = vmatmul.msk.f32.gmra.mxu0 %vm146_vm1, %v6134_v48 }
  0xc8   :  { %v6440_v3 = vpop.f32.mrf.mxu1  ;;  %v6442_v12 = vpop.f32.mrf.mxu3 }
  0xc9   :  { %8370 = vst [vmem:[#allocation17_spill] sm:$0xff] %v6442_v12 }
  0xcb   :  { %4922 = vmatmul.msk.f32.gmra.mxu1 %vm146_vm1, %v5050_v38  ;;  %4988 = vmatmul.msk.f32.gmra.mxu2 %vm146_vm1, %v965_v30  ;;  %v5053_v38 = vld [vmem:[%s8354_s0 + $0x90] sm:$0xff] }
  0xcc   :  { %v6452_v56 = vpop.f32.mrf.mxu0 }
  0xcd   :  { %5118 = vmatmul.msk.f32.gmra.mxu3 %vm146_vm1, %v5052_v14 }
  0xce   :  { %v6455_v48 = vpop.f32.mrf.mxu2 }
  0xcf   :  { %8371 = vst [vmem:[#allocation18_spill] sm:$0xff] %v6455_v48  ;;  %5248 = vmatmul.msk.f32.gmra.mxu0 %vm146_vm1, %v6156_v52  ;;  %v972_v48 = vld [vmem:[%s8354_s0 + $0xc2] sm:$0xff] }
  0xd0   :  { %v6459_v12 = vpop.f32.mrf.mxu1  ;;  %v6461_v50 = vpop.f32.mrf.mxu3 }
  0xd1   :  { %8372 = vst [vmem:[#allocation19_spill] sm:$0xff] %v6461_v50 }
  0xd3   :  { %4923 = vmatmul.msk.f32.gmra.mxu1 %vm146_vm1, %v5051_v58  ;;  %4989 = vmatmul.msk.f32.gmra.mxu2 %vm146_vm1, %v966_v27  ;;  %v5054_v27 = vld [vmem:[%s8354_s0 + $0x98] sm:$0xff] }
  0xd4   :  { %v6471_v30 = vpop.f32.mrf.mxu0 }
  0xd5   :  { %5119 = vmatmul.msk.f32.gmra.mxu3 %vm146_vm1, %v5053_v38 }
  0xd6   :  { %v6474_v52 = vpop.f32.mrf.mxu2 }
  0xd7   :  { %8373 = vst [vmem:[#allocation20_spill] sm:$0xff] %v6474_v52  ;;  %5249 = vmatmul.msk.f32.gmra.mxu0 %vm146_vm1, %v6181_v57  ;;  %v971_v52 = vld [vmem:[%s8354_s0 + $0xb2] sm:$0xff] }
  0xd8   :  { %v6478_v50 = vpop.f32.mrf.mxu1  ;;  %v6480_v8 = vpop.f32.mrf.mxu3 }
  0xd9   :  { %8374 = vst [vmem:[#allocation21_spill] sm:$0xff] %v6480_v8 }
  0xdb   :  { %4924 = vmatmul.msk.f32.gmra.mxu1 %vm146_vm1, %v5052_v14  ;;  %4990 = vmatmul.msk.f32.gmra.mxu2 %vm146_vm1, %v967_v62  ;;  %v5055_v62 = vld [vmem:[%s8354_s0 + $0xa8] sm:$0xff] }
  0xdc   :  { %v6490_v58 = vpop.f32.mrf.mxu0 }
  0xdd   :  { %5120 = vmatmul.msk.f32.gmra.mxu3 %vm146_vm1, %v5054_v27 }
  0xde   :  { %v6493_v57 = vpop.f32.mrf.mxu2 }
  0xdf   :  { %8375 = vst [vmem:[#allocation22_spill] sm:$0xff] %v6493_v57  ;;  %5250 = vmatmul.msk.f32.gmra.mxu0 %vm146_vm1, %v6212_v63  ;;  %v970_v57 = vld [vmem:[%s8354_s0 + $0xaa] sm:$0xff] }
  0xe0   :  { %v6497_v8 = vpop.f32.mrf.mxu1  ;;  %v6499_v55 = vpop.f32.mrf.mxu3 }
  0xe1   :  { %8376 = vst [vmem:[#allocation23_spill] sm:$0xff] %v6499_v55 }
  0xe3   :  { %4925 = vmatmul.msk.f32.gmra.mxu1 %vm146_vm1, %v5053_v38  ;;  %4991 = vmatmul.msk.f32.gmra.mxu2 %vm146_vm1, %v968_v46  ;;  %v5056_v46 = vld [vmem:[%s8354_s0 + $0xb0] sm:$0xff] }
  0xe4   :  { %v6509_v14 = vpop.f32.mrf.mxu0 }
  0xe5   :  { %5121 = vmatmul.msk.f32.gmra.mxu3 %vm146_vm1, %v5055_v62 }
  0xe6   :  { %v6512_v63 = vpop.f32.mrf.mxu2 }
  0xe7   :  { %8377 = vst [vmem:[#allocation24_spill] sm:$0xff] %v6512_v63  ;;  %5251 = vmatmul.msk.f32.gmra.mxu0 %vm146_vm1, %v6238_v5 }
  0xe8   :  { %v6516_v55 = vpop.f32.mrf.mxu1  ;;  %v6518_v35 = vpop.f32.mrf.mxu3 }
  0xe9   :  { %8378 = vst [vmem:[#allocation25_spill] sm:$0xff] %v6518_v35 }
  0xeb   :  { %4926 = vmatmul.msk.f32.gmra.mxu1 %vm146_vm1, %v5054_v27  ;;  %4992 = vmatmul.msk.f32.gmra.mxu2 %vm146_vm1, %v969_v23  ;;  %v5057_v23 = vld [vmem:[%s8354_s0 + $0xc0] sm:$0xff] }
  0xec   :  { %v6528_v38 = vpop.f32.mrf.mxu0 }
  0xed   :  { %5122 = vmatmul.msk.f32.gmra.mxu3 %vm146_vm1, %v5056_v46 }
  0xee   :  { %v6531_v5 = vpop.f32.mrf.mxu2 }
  0xef   :  { %8379 = vst [vmem:[#allocation26_spill] sm:$0xff] %v6531_v5  ;;  %5252 = vmatmul.msk.f32.gmra.mxu0 %vm146_vm1, %v6260_v10 }
  0xf0   :  { %v6535_v35 = vpop.f32.mrf.mxu1  ;;  %v6537_v63 = vpop.f32.mrf.mxu3 }
  0xf1   :  { %8380 = vst [vmem:[#allocation27_spill] sm:$0xff] %v6537_v63 }
  0xf3   :  { %4927 = vmatmul.msk.f32.gmra.mxu1 %vm146_vm1, %v5055_v62  ;;  %4993 = vmatmul.msk.f32.gmra.mxu2 %vm146_vm1, %v970_v57  ;;  %v5058_v57 = vld [vmem:[%s8354_s0 + $0xc8] sm:$0xff] }
  0xf4   :  { %v6547_v27 = vpop.f32.mrf.mxu0 }
  0xf5   :  { %5123 = vmatmul.msk.f32.gmra.mxu3 %vm146_vm1, %v5057_v23 }
  0xf6   :  { %v6550_v10 = vpop.f32.mrf.mxu2 }
  0xf7   :  { %8381 = vst [vmem:[#allocation28_spill] sm:$0xff] %v6550_v10  ;;  %5253 = vmatmul.msk.f32.gmra.mxu0 %vm146_vm1, %v5886_v1 }
  0xf8   :  { %v6554_v63 = vpop.f32.mrf.mxu1  ;;  %v6556_v5 = vpop.f32.mrf.mxu3 }
  0xf9   :  { %8382 = vst [vmem:[#allocation29_spill] sm:$0xff] %v6556_v5 }
  0xfb   :  { %4928 = vmatmul.msk.f32.gmra.mxu1 %vm146_vm1, %v5056_v46  ;;  %4994 = vmatmul.msk.f32.gmra.mxu2 %vm146_vm1, %v971_v52  ;;  %v5059_v52 = vld [vmem:[%s8354_s0 + $0xd8] sm:$0xff] }
  0xfc   :  { %v6566_v62 = vpop.f32.mrf.mxu0 }
  0xfd   :  { %5124 = vmatmul.msk.f32.gmra.mxu3 %vm146_vm1, %v5058_v57 }
  0xfe   :  { %v6569_v1 = vpop.f32.mrf.mxu2 }
  0xff   :  { %8383 = vst [vmem:[#allocation30_spill] sm:$0xff] %v6569_v1  ;;  %5254 = vmatmul.msk.f32.gmra.mxu0 %vm146_vm1, %v5924_v9 }
 0x100   :  { %v6573_v5 = vpop.f32.mrf.mxu3  ;;  %v764_v10 = vpop.f32.mrf.mxu1 }
 0x101   :  { %8384 = vst [vmem:[#allocation31_spill] sm:$0xff] %v6573_v5  ;;  %v765_v1 = vadd.f32 %v764_v10, %v6278_v18 }
 0x103   :  { %4929 = vmatmul.msk.f32.gmra.mxu1 %vm146_vm1, %v5057_v23  ;;  %4995 = vmatmul.msk.f32.gmra.mxu2 %vm146_vm1, %v972_v48  ;;  %v5060_v48 = vld [vmem:[%s8354_s0 + $0xe0] sm:$0xff] }
 0x104   :  { %v2303_v46 = vpop.f32.mrf.mxu0 }
 0x105   :  { %5125 = vmatmul.msk.f32.gmra.mxu3 %vm146_vm1, %v5059_v52 }
 0x106   :  { %v1234_v9 = vpop.f32.mrf.mxu2 }
 0x107   :  { %v1426_v5 = vadd.f32 %v1234_v9, %v765_v1  ;;  %5255 = vmatmul.msk.f32.gmra.mxu0 %vm146_vm1, %v5944_v13 }
 0x108   :  { %v767_v44 = vpop.f32.mrf.mxu1  ;;  %v1769_v40 = vpop.f32.mrf.mxu3 }
 0x109   :  { %v1961_v32 = vadd.f32 %v1769_v40, %v1426_v5  ;;  %v768_v13 = vadd.f32 %v767_v44, %v6300_v16 }
 0x10b   :  { %v6593_v23 = vadd.f32 %v2303_v46, %v1961_v32  ;;  %4930 = vmatmul.msk.f32.gmra.mxu1 %vm146_vm1, %v5058_v57  ;;  %4996 = vmatmul.msk.f32.gmra.mxu2 %vm146_vm1, %v973_v36  ;;  %v974_v32 = vld [vmem:[%s8354_s0 + $0xda] sm:$0xff]  ;;  %v5061_v36 = vld [vmem:[%s8354_s0 + $0xf0] sm:$0xff] }
 0x10c   :  { %v2306_v18 = vpop.f32.mrf.mxu0 }
 0x10d   :  { %5126 = vmatmul.msk.f32.gmra.mxu3 %vm146_vm1, %v5060_v48 }
 0x10e   :  { %v1237_v10 = vpop.f32.mrf.mxu2 }
 0x10f   :  { %v1427_v1 = vadd.f32 %v1237_v10, %v768_v13  ;;  %5256 = vmatmul.msk.f32.gmra.mxu0 %vm146_vm1, %v5966_v17 }
 0x110   :  { %v770_v40 = vpop.f32.mrf.mxu1  ;;  %v1772_v5 = vpop.f32.mrf.mxu3 }
 0x111   :  { %v1962_v46 = vadd.f32 %v1772_v5, %v1427_v1  ;;  %v771_v17 = vadd.f32 %v770_v40, %v6319_v42 }
 0x113   :  { %v6607_v57 = vadd.f32 %v2306_v18, %v1962_v46  ;;  %4931 = vmatmul.msk.f32.gmra.mxu1 %vm146_vm1, %v5059_v52  ;;  %4997 = vmatmul.msk.f32.gmra.mxu2 %vm146_vm1, %v974_v32  ;;  %v975_v18 = vld [vmem:[%s8354_s0 + $0xe2] sm:$0xff]  ;;  %v5062_v52 = vld [vmem:[%s8354_s0 + $0xf8] sm:$0xff] }
 0x114   :  { %v2309_v16 = vpop.f32.mrf.mxu0 }
 0x115   :  { %5127 = vmatmul.msk.f32.gmra.mxu3 %vm146_vm1, %v5061_v36 }
 0x116   :  { %v1240_v44 = vpop.f32.mrf.mxu2 }
 0x117   :  { %v1428_v9 = vadd.f32 %v1240_v44, %v771_v17  ;;  %5257 = vmatmul.msk.f32.gmra.mxu0 %vm146_vm1, %v5988_v21 }
 0x118   :  { %v773_v13 = vpop.f32.mrf.mxu1  ;;  %v1775_v10 = vpop.f32.mrf.mxu3 }
 0x119   :  { %v1963_v1 = vadd.f32 %v1775_v10, %v1428_v9  ;;  %v774_v21 = vadd.f32 %v773_v13, %v6338_v51 }
 0x11b   :  { %v6621_v5 = vadd.f32 %v2309_v16, %v1963_v1  ;;  %4932 = vmatmul.msk.f32.gmra.mxu1 %vm146_vm1, %v5060_v48  ;;  %4998 = vmatmul.msk.f32.gmra.mxu2 %vm146_vm1, %v975_v18  ;;  %v976_v16 = vld [vmem:[%s8354_s0 + $0xf2] sm:$0xff]  ;;  %v5063_v48 = vld [vmem:[%s8354_s0 + $0x108] sm:$0xff] }
 0x11c   :  { %v2312_v42 = vpop.f32.mrf.mxu0 }
 0x11d   :  { %5128 = vmatmul.msk.f32.gmra.mxu3 %vm146_vm1, %v5062_v52 }
 0x11e   :  { %v1243_v40 = vpop.f32.mrf.mxu2 }
 0x11f   :  { %v1429_v32 = vadd.f32 %v1243_v40, %v774_v21  ;;  %5258 = vmatmul.msk.f32.gmra.mxu0 %vm146_vm1, %v6010_v25 }
 0x120   :  { %v776_v46 = vpop.f32.mrf.mxu1  ;;  %v1778_v17 = vpop.f32.mrf.mxu3 }
 0x121   :  { %v1964_v44 = vadd.f32 %v1778_v17, %v1429_v32  ;;  %v777_v25 = vadd.f32 %v776_v46, %v6357_v59 }
 0x123   :  { %v6635_v9 = vadd.f32 %v2312_v42, %v1964_v44  ;;  %4933 = vmatmul.msk.f32.gmra.mxu1 %vm146_vm1, %v5061_v36  ;;  %4999 = vmatmul.msk.f32.gmra.mxu2 %vm146_vm1, %v976_v16  ;;  %v977_v42 = vld [vmem:[%s8354_s0 + $0xfa] sm:$0xff]  ;;  %v5064_v36 = vld [vmem:[%s8354_s0 + $0x110] sm:$0xff] }
 0x124   :  { %v2315_v51 = vpop.f32.mrf.mxu0  ;;  %v978_v44 = vld [vmem:[%s8354_s0 + $0x10a] sm:$0xff] }
 0x125   :  { %5129 = vmatmul.msk.f32.gmra.mxu3 %vm146_vm1, %v5063_v48 }
 0x126   :  { %v1246_v13 = vpop.f32.mrf.mxu2 }
 0x127   :  { %v1430_v10 = vadd.f32 %v1246_v13, %v777_v25  ;;  %5259 = vmatmul.msk.f32.gmra.mxu0 %vm146_vm1, %v6032_v29 }
 0x128   :  { %v779_v18 = vpop.f32.mrf.mxu1  ;;  %v1781_v1 = vpop.f32.mrf.mxu3 }
 0x129   :  { %v1965_v21 = vadd.f32 %v1781_v1, %v1430_v10  ;;  %v780_v29 = vadd.f32 %v779_v18, %v6376_v4 }
 0x12b   :  { %v6649_v40 = vadd.f32 %v2315_v51, %v1965_v21  ;;  %4934 = vmatmul.msk.f32.gmra.mxu1 %vm146_vm1, %v5062_v52  ;;  %5000 = vmatmul.msk.f32.gmra.mxu2 %vm146_vm1, %v977_v42  ;;  %v5065_v52 = vld [vmem:[%s8354_s0 + $0x120] sm:$0xff]  ;;  %v979_v42 = vld [vmem:[%s8354_s0 + $0x112] sm:$0xff] }
 0x12c   :  { %v2318_v59 = vpop.f32.mrf.mxu0 }
 0x12d   :  { %5130 = vmatmul.msk.f32.gmra.mxu3 %vm146_vm1, %v5064_v36 }
 0x12e   :  { %v1249_v32 = vpop.f32.mrf.mxu2 }
 0x12f   :  { %v1431_v46 = vadd.f32 %v1249_v32, %v780_v29  ;;  %5260 = vmatmul.msk.f32.gmra.mxu0 %vm146_vm1, %v6054_v33 }
 0x130   :  { %v782_v17 = vpop.f32.mrf.mxu1  ;;  %v1784_v16 = vpop.f32.mrf.mxu3 }
 0x131   :  { %v1966_v51 = vadd.f32 %v1784_v16, %v1431_v46  ;;  %v783_v33 = vadd.f32 %v782_v17, %v6395_v15  ;;  %v980_v16 = vld [vmem:[%s8354_s0 + $0x122] sm:$0xff] }
 0x133   :  { %v6663_v25 = vadd.f32 %v2318_v59, %v1966_v51  ;;  %4935 = vmatmul.msk.f32.gmra.mxu1 %vm146_vm1, %v5063_v48  ;;  %5001 = vmatmul.msk.f32.gmra.mxu2 %vm146_vm1, %v978_v44  ;;  %v5066_v48 = vld [vmem:[%s8354_s0 + $0x128] sm:$0xff] }
 0x134   :  { %v2321_v4 = vpop.f32.mrf.mxu0 }
 0x135   :  { %5131 = vmatmul.msk.f32.gmra.mxu3 %vm146_vm1, %v5065_v52 }
 0x136   :  { %v1252_v13 = vpop.f32.mrf.mxu2 }
 0x137   :  { %v1432_v10 = vadd.f32 %v1252_v13, %v783_v33  ;;  %5261 = vmatmul.msk.f32.gmra.mxu0 %vm146_vm1, %v6076_v37 }
 0x138   :  { %v785_v18 = vpop.f32.mrf.mxu1  ;;  %v1787_v1 = vpop.f32.mrf.mxu3 }
 0x139   :  { %v1967_v21 = vadd.f32 %v1787_v1, %v1432_v10  ;;  %v786_v37 = vadd.f32 %v785_v18, %v6414_v39  ;;  %v981_v18 = vld [vmem:[%s8354_s0 + $0x12a] sm:$0xff] }
 0x13b   :  { %v6677_v59 = vadd.f32 %v2321_v4, %v1967_v21  ;;  %4936 = vmatmul.msk.f32.gmra.mxu1 %vm146_vm1, %v5064_v36  ;;  %5002 = vmatmul.msk.f32.gmra.mxu2 %vm146_vm1, %v979_v42  ;;  %v5067_v36 = vld [vmem:[%s8354_s0 + $0x138] sm:$0xff] }
 0x13c   :  { %v2324_v15 = vpop.f32.mrf.mxu0 }
 0x13d   :  { %5132 = vmatmul.msk.f32.gmra.mxu3 %vm146_vm1, %v5066_v48 }
 0x13e   :  { %v1255_v29 = vpop.f32.mrf.mxu2 }
 0x13f   :  { %v1433_v32 = vadd.f32 %v1255_v29, %v786_v37  ;;  %5262 = vmatmul.msk.f32.gmra.mxu0 %vm146_vm1, %v6098_v41 }
 0x140   :  { %v788_v46 = vpop.f32.mrf.mxu1  ;;  %v1790_v17 = vpop.f32.mrf.mxu3 }
 0x141   :  { %v1968_v44 = vadd.f32 %v1790_v17, %v1433_v32  ;;  %v789_v41 = vadd.f32 %v788_v46, %v6433_v0  ;;  %v982_v32 = vld [vmem:[%s8354_s0 + $0x13a] sm:$0xff] }
 0x143   :  { %v6691_v51 = vadd.f32 %v2324_v15, %v1968_v44  ;;  %4937 = vmatmul.msk.f32.gmra.mxu1 %vm146_vm1, %v5065_v52  ;;  %5003 = vmatmul.msk.f32.gmra.mxu2 %vm146_vm1, %v980_v16  ;;  %v5068_v52 = vld [vmem:[%s8354_s0 + $0x140] sm:$0xff] }
 0x144   :  { %v2327_v39 = vpop.f32.mrf.mxu0 }
 0x145   :  { %5133 = vmatmul.msk.f32.gmra.mxu3 %vm146_vm1, %v5067_v36 }
 0x146   :  { %v1258_v4 = vpop.f32.mrf.mxu2 }
 0x147   :  { %v1434_v33 = vadd.f32 %v1258_v4, %v789_v41  ;;  %5263 = vmatmul.msk.f32.gmra.mxu0 %vm146_vm1, %v6120_v45  ;;  %v983_v4 = vld [vmem:[%s8354_s0 + $0x142] sm:$0xff] }
 0x148   :  { %v791_v13 = vpop.f32.mrf.mxu1  ;;  %v1793_v10 = vpop.f32.mrf.mxu3 }
 0x149   :  { %v1969_v1 = vadd.f32 %v1793_v10, %v1434_v33  ;;  %v792_v45 = vadd.f32 %v791_v13, %v6452_v56 }
 0x14b   :  { %v6705_v42 = vadd.f32 %v2327_v39, %v1969_v1  ;;  %4938 = vmatmul.msk.f32.gmra.mxu1 %vm146_vm1, %v5066_v48  ;;  %5004 = vmatmul.msk.f32.gmra.mxu2 %vm146_vm1, %v981_v18  ;;  %v5069_v48 = vld [vmem:[%s8354_s0 + $0x150] sm:$0xff] }
 0x14c   :  { %v2330_v0 = vpop.f32.mrf.mxu0 }
 0x14d   :  { %5134 = vmatmul.msk.f32.gmra.mxu3 %vm146_vm1, %v5068_v52 }
 0x14e   :  { %v1261_v21 = vpop.f32.mrf.mxu2 }
 0x14f   :  { %v1435_v15 = vadd.f32 %v1261_v21, %v792_v45  ;;  %5264 = vmatmul.msk.f32.gmra.mxu0 %vm146_vm1, %v6142_v49  ;;  %v984_v45 = vld [vmem:[%s8354_s0 + $0x152] sm:$0xff] }
 0x150   :  { %v794_v37 = vpop.f32.mrf.mxu1  ;;  %v1796_v29 = vpop.f32.mrf.mxu3 }
 0x151   :  { %v1970_v46 = vadd.f32 %v1796_v29, %v1435_v15  ;;  %v795_v49 = vadd.f32 %v794_v37, %v6471_v30 }
 0x153   :  { %v6719_v17 = vadd.f32 %v2330_v0, %v1970_v46  ;;  %4939 = vmatmul.msk.f32.gmra.mxu1 %vm146_vm1, %v5067_v36  ;;  %5005 = vmatmul.msk.f32.gmra.mxu2 %vm146_vm1, %v982_v32  ;;  %v5070_v36 = vld [vmem:[%s8354_s0 + $0x158] sm:$0xff] }
 0x154   :  { %v2333_v56 = vpop.f32.mrf.mxu0 }
 0x155   :  { %5135 = vmatmul.msk.f32.gmra.mxu3 %vm146_vm1, %v5069_v48 }
 0x156   :  { %v1264_v16 = vpop.f32.mrf.mxu2 }
 0x157   :  { %v1436_v44 = vadd.f32 %v1264_v16, %v795_v49  ;;  %5265 = vmatmul.msk.f32.gmra.mxu0 %vm146_vm1, %v6164_v53 }
 0x158   :  { %v797_v39 = vpop.f32.mrf.mxu1  ;;  %v1799_v41 = vpop.f32.mrf.mxu3 }
 0x159   :  { %v1971_v33 = vadd.f32 %v1799_v41, %v1436_v44  ;;  %v798_v53 = vadd.f32 %v797_v39, %v6490_v58 }
 0x15b   :  { %v6733_v13 = vadd.f32 %v2333_v56, %v1971_v33  ;;  %4940 = vmatmul.msk.f32.gmra.mxu1 %vm146_vm1, %v5068_v52  ;;  %5006 = vmatmul.msk.f32.gmra.mxu2 %vm146_vm1, %v983_v4  ;;  %v5071_v52 = vld [vmem:[%s8354_s0 + $0x168] sm:$0xff]  ;;  %v985_v56 = vld [vmem:[%s8354_s0 + $0x15a] sm:$0xff] }
 0x15c   :  { %v2336_v30 = vpop.f32.mrf.mxu0  ;;  %v986_v33 = vld [vmem:[%s8354_s0 + $0x16a] sm:$0xff] }
 0x15d   :  { %5136 = vmatmul.msk.f32.gmra.mxu3 %vm146_vm1, %v5070_v36 }
 0x15e   :  { %v1267_v10 = vpop.f32.mrf.mxu2 }
 0x15f   :  { %v1437_v18 = vadd.f32 %v1267_v10, %v798_v53  ;;  %5266 = vmatmul.msk.f32.gmra.mxu0 %vm146_vm1, %v6198_v60 }
 0x160   :  { %v800_v1 = vpop.f32.mrf.mxu1  ;;  %v1802_v0 = vpop.f32.mrf.mxu3 }
 0x161   :  { %v1972_v21 = vadd.f32 %v1802_v0, %v1437_v18  ;;  %v801_v60 = vadd.f32 %v800_v1, %v6509_v14 }
 0x163   :  { %v6747_v15 = vadd.f32 %v2336_v30, %v1972_v21  ;;  %4941 = vmatmul.msk.f32.gmra.mxu1 %vm146_vm1, %v5069_v48  ;;  %5007 = vmatmul.msk.f32.gmra.mxu2 %vm146_vm1, %v984_v45  ;;  %v5072_v48 = vld [vmem:[%s8354_s0 + $0x170] sm:$0xff] }
 0x164   :  { %v2339_v58 = vpop.f32.mrf.mxu0  ;;  %v987_v21 = vld [vmem:[%s8354_s0 + $0x172] sm:$0xff] }
 0x165   :  { %5137 = vmatmul.msk.f32.gmra.mxu3 %vm146_vm1, %v5071_v52 }
 0x166   :  { %v1270_v37 = vpop.f32.mrf.mxu2 }
 0x167   :  { %v1438_v29 = vadd.f32 %v1270_v37, %v801_v60  ;;  %5267 = vmatmul.msk.f32.gmra.mxu0 %vm146_vm1, %v6224_v2  ;;  %v5204_v37 = vld [vmem:[%s8354_s0 + $0x189] sm:$0xff] }
 0x168   :  { %v803_v32 = vpop.f32.mrf.mxu1  ;;  %v1805_v46 = vpop.f32.mrf.mxu3 }
 0x169   :  { %v1973_v49 = vadd.f32 %v1805_v46, %v1438_v29  ;;  %v804_v2 = vadd.f32 %v803_v32, %v6528_v38 }
 0x16b   :  { %v6761_v16 = vadd.f32 %v2339_v58, %v1973_v49  ;;  %4942 = vmatmul.msk.f32.gmra.mxu1 %vm146_vm1, %v5070_v36  ;;  %5008 = vmatmul.msk.f32.gmra.mxu2 %vm146_vm1, %v985_v56  ;;  %v5073_v36 = vld [vmem:[%s8354_s0 + $0x180] sm:$0xff]  ;;  %v5074_v58 = vld [vmem:[%s8354_s0 + $0x188] sm:$0xff] }
 0x16c   :  { %v2342_v14 = vpop.f32.mrf.mxu0 }
 0x16d   :  { %5138 = vmatmul.msk.f32.gmra.mxu3 %vm146_vm1, %v5072_v48 }
 0x16e   :  { %v1273_v44 = vpop.f32.mrf.mxu2 }
 0x16f   :  { %v1439_v39 = vadd.f32 %v1273_v44, %v804_v2  ;;  %5268 = vmatmul.msk.f32.gmra.mxu0 %vm146_vm1, %v6246_v6  ;;  %v5203_v6 = vld [vmem:[%s8354_s0 + $0x181] sm:$0xff] }
 0x170   :  { %v806_v41 = vpop.f32.mrf.mxu1  ;;  %v1808_v4 = vpop.f32.mrf.mxu3 }
 0x171   :  { %v1974_v30 = vadd.f32 %v1808_v4, %v1439_v39  ;;  %v807_v10 = vadd.f32 %v806_v41, %v6547_v27  ;;  %v5205_v41 = vld [vmem:[%s8354_s0 + $0x1c9] sm:$0xff] }
 0x173   :  { %v6775_v53 = vadd.f32 %v2342_v14, %v1974_v30  ;;  %4943 = vmatmul.msk.f32.gmra.mxu1 %vm146_vm1, %v5071_v52  ;;  %5009 = vmatmul.msk.f32.gmra.mxu2 %vm146_vm1, %v986_v33  ;;  %v988_v14 = vld [vmem:[%s8354_s0 + $0x1b2] sm:$0xff] }
 0x174   :  { %v2345_v38 = vpop.f32.mrf.mxu0 }
 0x175   :  { %5139 = vmatmul.msk.f32.gmra.mxu3 %vm146_vm1, %v5073_v36 }
 0x176   :  { %v1276_v18 = vpop.f32.mrf.mxu2 }
 0x177   :  { %v1440_v1 = vadd.f32 %v1276_v18, %v807_v10  ;;  %5269 = vmatmul.msk.f32.gmra.mxu0 %vm146_vm1, %v5203_v6  ;;  %v48_v6 = vld [vmem:[%s8354_s0 + $0x1b8] sm:$0xff] }
 0x178   :  { %v809_v0 = vpop.f32.mrf.mxu1  ;;  %v1811_v45 = vpop.f32.mrf.mxu3  ;;  %v989_v10 = vld [vmem:[%s8354_s0 + $0x1ba] sm:$0xff] }
 0x179   :  { %v1975_v52 = vadd.f32 %v1811_v45, %v1440_v1  ;;  %v810_v29 = vadd.f32 %v809_v0, %v6566_v62  ;;  %v5075_v62 = vld [vmem:[%s8354_s0 + $0x1c8] sm:$0xff]  ;;  %v5206_v45 = vld [vmem:[%s8354_s0 + $0x1d1] sm:$0xff] }
 0x17b   :  { %v6791_v60 = vadd.f32 %v2345_v38, %v1975_v52  ;;  %4944 = vmatmul.msk.f32.gmra.mxu1 %vm146_vm1, %v5072_v48  ;;  %5010 = vmatmul.msk.f32.gmra.mxu2 %vm146_vm1, %v987_v21  ;;  %v47_v48 = vld [vmem:[%s8354_s0 + $0x1b0] sm:$0xff] }
 0x17c   :  { %v2348_v27 = vpop.f32.mrf.mxu0 }
 0x17d   :  { %5140 = vmatmul.msk.f32.gmra.mxu3 %vm146_vm1, %v5074_v58 }
 0x17e   :  { %v1279_v32 = vpop.f32.mrf.mxu2 }
 0x17f   :  { %v1441_v46 = vadd.f32 %v1279_v32, %v810_v29  ;;  %5270 = vmatmul.msk.f32.gmra.mxu0 %vm146_vm1, %v5204_v37  ;;  %v990_v29 = vld [vmem:[%s8354_s0 + $0x1ca] sm:$0xff] }
 0x180   :  { %v812_v56 = vpop.f32.mrf.mxu1  ;;  %v1814_v49 = vpop.f32.mrf.mxu3 }
 0x181   :  { %v1976_v2 = vadd.f32 %v1814_v49, %v1441_v46  ;;  %v813_v4 = vadd.f32 %v812_v56, %v6265_v11  ;;  %v5076_v11 = vld [vmem:[%s8354_s0 + $0x1d0] sm:$0xff]  ;;  %v5077_v46 = vld [vmem:[%s8354_s0 + $0x1e0] sm:$0xff] }
 0x182   :  { %v5207_v49 = vld [vmem:[%s8354_s0 + $0x1e1] sm:$0xff] }
 0x183   :  { %v6810_v44 = vadd.f32 %v2348_v27, %v1976_v2  ;;  %4945 = vmatmul.msk.f32.gmra.mxu1 %vm146_vm1, %v47_v48  ;;  %5011 = vmatmul.msk.f32.gmra.mxu2 %vm146_vm1, %v988_v14 }
 0x184   :  { %v2351_v39 = vpop.f32.mrf.mxu0 }
 0x185   :  { %5141 = vmatmul.msk.f32.gmra.mxu3 %vm146_vm1, %v5075_v62 }
 0x186   :  { %v1282_v33 = vpop.f32.mrf.mxu2 }
 0x187   :  { %v1442_v30 = vadd.f32 %v1282_v33, %v813_v4  ;;  %5271 = vmatmul.msk.f32.gmra.mxu0 %vm146_vm1, %v5205_v41  ;;  %v5078_v33 = vld [vmem:[%s8354_s0 + $0x1e8] sm:$0xff] }
 0x188   :  { %v815_v36 = vpop.f32.mrf.mxu1  ;;  %v1817_v38 = vpop.f32.mrf.mxu3 }
 0x189   :  { %v1977_v18 = vadd.f32 %v1817_v38, %v1442_v30  ;;  %v816_v21 = vadd.f32 %v815_v36, %v6285_v22  ;;  %v5208_v36 = vld [vmem:[%s8354_s0 + $0x1e9] sm:$0xff] }
 0x18b   :  { %v6829_v1 = vadd.f32 %v2351_v39, %v1977_v18  ;;  %4946 = vmatmul.msk.f32.gmra.mxu1 %vm146_vm1, %v48_v6  ;;  %5012 = vmatmul.msk.f32.gmra.mxu2 %vm146_vm1, %v989_v10 }
 0x18c   :  { %v2354_v0 = vpop.f32.mrf.mxu0 }
 0x18d   :  { %5142 = vmatmul.msk.f32.gmra.mxu3 %vm146_vm1, %v5076_v11 }
 0x18e   :  { %v1285_v52 = vpop.f32.mrf.mxu2 }
 0x18f   :  { %v1443_v58 = vadd.f32 %v1285_v52, %v816_v21  ;;  %5272 = vmatmul.msk.f32.gmra.mxu0 %vm146_vm1, %v5206_v45  ;;  %v5079_v21 = vld [vmem:[%s8354_s0 + $0x1f8] sm:$0xff] }
 0x190   :  { %v818_v27 = vpop.f32.mrf.mxu1  ;;  %v1820_v37 = vpop.f32.mrf.mxu3 }
 0x191   :  { %v1978_v32 = vadd.f32 %v1820_v37, %v1443_v58  ;;  %v819_v48 = vadd.f32 %v818_v27, %v6307_v34  ;;  %v5209_v58 = vld [vmem:[%s8354_s0 + $0x1f9] sm:$0xff] }
 0x193   :  { %v6845_v56 = vadd.f32 %v2354_v0, %v1978_v32  ;;  %4947 = vmatmul.msk.f32.gmra.mxu1 %vm146_vm1, %v5075_v62  ;;  %5013 = vmatmul.msk.f32.gmra.mxu2 %vm146_vm1, %v990_v29  ;;  %v991_v62 = vld [vmem:[%s8354_s0 + $0x1d2] sm:$0xff] }
 0x194   :  { %v2357_v22 = vpop.f32.mrf.mxu0 }
 0x195   :  { %5143 = vmatmul.msk.f32.gmra.mxu3 %vm146_vm1, %v5077_v46 }
 0x196   :  { %v1288_v14 = vpop.f32.mrf.mxu2 }
 0x197   :  { %v1444_v2 = vadd.f32 %v1288_v14, %v819_v48  ;;  %5273 = vmatmul.msk.f32.gmra.mxu0 %vm146_vm1, %v5207_v49  ;;  %v5080_v48 = vld [vmem:[%s8354_s0 + $0x200] sm:$0xff] }
 0x198   :  { %v821_v39 = vpop.f32.mrf.mxu1  ;;  %v1823_v41 = vpop.f32.mrf.mxu3 }
 0x199   :  { %v1979_v4 = vadd.f32 %v1823_v41, %v1444_v2  ;;  %v822_v38 = vadd.f32 %v821_v39, %v6326_v43  ;;  %v5210_v2 = vld [vmem:[%s8354_s0 + $0x201] sm:$0xff] }
 0x19b   :  { %v6861_v30 = vadd.f32 %v2357_v22, %v1979_v4  ;;  %4948 = vmatmul.msk.f32.gmra.mxu1 %vm146_vm1, %v5076_v11  ;;  %5014 = vmatmul.msk.f32.gmra.mxu2 %vm146_vm1, %v991_v62  ;;  %v992_v11 = vld [vmem:[%s8354_s0 + $0x1e2] sm:$0xff] }
 0x19c   :  { %v2360_v34 = vpop.f32.mrf.mxu0 }
 0x19d   :  { %5144 = vmatmul.msk.f32.gmra.mxu3 %vm146_vm1, %v5078_v33 }
 0x19e   :  { %v1291_v6 = vpop.f32.mrf.mxu2 }
 0x19f   :  { %v1445_v10 = vadd.f32 %v1291_v6, %v822_v38  ;;  %5274 = vmatmul.msk.f32.gmra.mxu0 %vm146_vm1, %v5208_v36  ;;  %v5081_v38 = vld [vmem:[%s8354_s0 + $0x210] sm:$0xff] }
 0x1a0   :  { %v824_v18 = vpop.f32.mrf.mxu1  ;;  %v1826_v0 = vpop.f32.mrf.mxu3 }
 0x1a1   :  { %v1980_v45 = vadd.f32 %v1826_v0, %v1445_v10  ;;  %v825_v27 = vadd.f32 %v824_v18, %v6345_v54  ;;  %v5211_v10 = vld [vmem:[%s8354_s0 + $0x211] sm:$0xff] }
 0x1a3   :  { %v6877_v52 = vadd.f32 %v2360_v34, %v1980_v45  ;;  %4949 = vmatmul.msk.f32.gmra.mxu1 %vm146_vm1, %v5077_v46  ;;  %5015 = vmatmul.msk.f32.gmra.mxu2 %vm146_vm1, %v992_v11  ;;  %v993_v46 = vld [vmem:[%s8354_s0 + $0x1ea] sm:$0xff] }
 0x1a4   :  { %v2363_v43 = vpop.f32.mrf.mxu0 }
 0x1a5   :  { %5145 = vmatmul.msk.f32.gmra.mxu3 %vm146_vm1, %v5079_v21 }
 0x1a6   :  { %v1294_v37 = vpop.f32.mrf.mxu2 }
 0x1a7   :  { %v1446_v29 = vadd.f32 %v1294_v37, %v825_v27  ;;  %5275 = vmatmul.msk.f32.gmra.mxu0 %vm146_vm1, %v5209_v58  ;;  %v5082_v27 = vld [vmem:[%s8354_s0 + $0x218] sm:$0xff] }
 0x1a8   :  { %v827_v32 = vpop.f32.mrf.mxu1  ;;  %v1829_v22 = vpop.f32.mrf.mxu3 }
 0x1a9   :  { %v1981_v49 = vadd.f32 %v1829_v22, %v1446_v29  ;;  %v828_v39 = vadd.f32 %v827_v32, %v6364_v61  ;;  %v5212_v29 = vld [vmem:[%s8354_s0 + $0x219] sm:$0xff] }
 0x1ab   :  { %v6893_v14 = vadd.f32 %v2363_v43, %v1981_v49  ;;  %4950 = vmatmul.msk.f32.gmra.mxu1 %vm146_vm1, %v5078_v33  ;;  %5016 = vmatmul.msk.f32.gmra.mxu2 %vm146_vm1, %v993_v46  ;;  %v994_v33 = vld [vmem:[%s8354_s0 + $0x1fa] sm:$0xff] }
 0x1ac   :  { %v2366_v54 = vpop.f32.mrf.mxu0 }
 0x1ad   :  { %5146 = vmatmul.msk.f32.gmra.mxu3 %vm146_vm1, %v5080_v48 }
 0x1ae   :  { %v1297_v41 = vpop.f32.mrf.mxu2 }
 0x1af   :  { %v1447_v62 = vadd.f32 %v1297_v41, %v828_v39  ;;  %5276 = vmatmul.msk.f32.gmra.mxu0 %vm146_vm1, %v5210_v2  ;;  %v5083_v39 = vld [vmem:[%s8354_s0 + $0x228] sm:$0xff] }
 0x1b0   :  { %v830_v4 = vpop.f32.mrf.mxu1  ;;  %v1832_v34 = vpop.f32.mrf.mxu3 }
 0x1b1   :  { %v1982_v36 = vadd.f32 %v1832_v34, %v1447_v62  ;;  %v831_v18 = vadd.f32 %v830_v4, %v6383_v7  ;;  %v5213_v62 = vld [vmem:[%s8354_s0 + $0x229] sm:$0xff] }
 0x1b3   :  { %v6909_v6 = vadd.f32 %v2366_v54, %v1982_v36  ;;  %4951 = vmatmul.msk.f32.gmra.mxu1 %vm146_vm1, %v5079_v21  ;;  %5017 = vmatmul.msk.f32.gmra.mxu2 %vm146_vm1, %v994_v33  ;;  %v995_v21 = vld [vmem:[%s8354_s0 + $0x202] sm:$0xff] }
 0x1b4   :  { %v2369_v61 = vpop.f32.mrf.mxu0 }
 0x1b5   :  { %5147 = vmatmul.msk.f32.gmra.mxu3 %vm146_vm1, %v5081_v38 }
 0x1b6   :  { %v1300_v0 = vpop.f32.mrf.mxu2 }
 0x1b7   :  { %v1448_v11 = vadd.f32 %v1300_v0, %v831_v18  ;;  %5277 = vmatmul.msk.f32.gmra.mxu0 %vm146_vm1, %v5211_v10  ;;  %v5084_v18 = vld [vmem:[%s8354_s0 + $0x230] sm:$0xff] }
 0x1b8   :  { %v833_v45 = vpop.f32.mrf.mxu1  ;;  %v1835_v43 = vpop.f32.mrf.mxu3 }
 0x1b9   :  { %v1983_v58 = vadd.f32 %v1835_v43, %v1448_v11  ;;  %v834_v32 = vadd.f32 %v833_v45, %v6402_v26  ;;  %v5214_v11 = vld [vmem:[%s8354_s0 + $0x231] sm:$0xff] }
 0x1bb   :  { %v6925_v37 = vadd.f32 %v2369_v61, %v1983_v58  ;;  %4952 = vmatmul.msk.f32.gmra.mxu1 %vm146_vm1, %v5080_v48  ;;  %5018 = vmatmul.msk.f32.gmra.mxu2 %vm146_vm1, %v995_v21  ;;  %v996_v48 = vld [vmem:[%s8354_s0 + $0x212] sm:$0xff] }
 0x1bc   :  { %v2372_v7 = vpop.f32.mrf.mxu0 }
 0x1bd   :  { %5148 = vmatmul.msk.f32.gmra.mxu3 %vm146_vm1, %v5082_v27 }
 0x1be   :  { %v1303_v22 = vpop.f32.mrf.mxu2 }
 0x1bf   :  { %v1449_v46 = vadd.f32 %v1303_v22, %v834_v32  ;;  %5278 = vmatmul.msk.f32.gmra.mxu0 %vm146_vm1, %v5212_v29  ;;  %v5085_v32 = vld [vmem:[%s8354_s0 + $0x240] sm:$0xff] }
 0x1c0   :  { %v836_v49 = vpop.f32.mrf.mxu1  ;;  %v1838_v54 = vpop.f32.mrf.mxu3 }
 0x1c1   :  { %v1984_v2 = vadd.f32 %v1838_v54, %v1449_v46  ;;  %v837_v4 = vadd.f32 %v836_v49, %v6421_v47  ;;  %v5215_v46 = vld [vmem:[%s8354_s0 + $0x241] sm:$0xff] }
 0x1c3   :  { %v6941_v41 = vadd.f32 %v2372_v7, %v1984_v2  ;;  %4953 = vmatmul.msk.f32.gmra.mxu1 %vm146_vm1, %v5081_v38  ;;  %5019 = vmatmul.msk.f32.gmra.mxu2 %vm146_vm1, %v996_v48  ;;  %v997_v38 = vld [vmem:[%s8354_s0 + $0x21a] sm:$0xff] }
 0x1c4   :  { %v2375_v26 = vpop.f32.mrf.mxu0 }
 0x1c5   :  { %5149 = vmatmul.msk.f32.gmra.mxu3 %vm146_vm1, %v5083_v39 }
 0x1c6   :  { %v1306_v34 = vpop.f32.mrf.mxu2 }
 0x1c7   :  { %v1450_v33 = vadd.f32 %v1306_v34, %v837_v4  ;;  %5279 = vmatmul.msk.f32.gmra.mxu0 %vm146_vm1, %v5213_v62  ;;  %v5086_v4 = vld [vmem:[%s8354_s0 + $0x248] sm:$0xff] }
 0x1c8   :  { %v839_v36 = vpop.f32.mrf.mxu1  ;;  %v1841_v61 = vpop.f32.mrf.mxu3 }
 0x1c9   :  { %v1985_v10 = vadd.f32 %v1841_v61, %v1450_v33  ;;  %v840_v45 = vadd.f32 %v839_v36, %v6440_v3  ;;  %v5216_v33 = vld [vmem:[%s8354_s0 + $0x249] sm:$0xff] }
 0x1cb   :  { %v6957_v0 = vadd.f32 %v2375_v26, %v1985_v10  ;;  %4954 = vmatmul.msk.f32.gmra.mxu1 %vm146_vm1, %v5082_v27  ;;  %5020 = vmatmul.msk.f32.gmra.mxu2 %vm146_vm1, %v997_v38  ;;  %v998_v27 = vld [vmem:[%s8354_s0 + $0x22a] sm:$0xff] }
 0x1cc   :  { %v2378_v47 = vpop.f32.mrf.mxu0 }
 0x1cd   :  { %5150 = vmatmul.msk.f32.gmra.mxu3 %vm146_vm1, %v5084_v18 }
 0x1ce   :  { %v1309_v43 = vpop.f32.mrf.mxu2 }
 0x1cf   :  { %v1451_v21 = vadd.f32 %v1309_v43, %v840_v45  ;;  %5280 = vmatmul.msk.f32.gmra.mxu0 %vm146_vm1, %v5214_v11  ;;  %v5087_v45 = vld [vmem:[%s8354_s0 + $0x258] sm:$0xff] }
 0x1d0   :  { %v842_v58 = vpop.f32.mrf.mxu1  ;;  %v1844_v7 = vpop.f32.mrf.mxu3 }
 0x1d1   :  { %v1986_v29 = vadd.f32 %v1844_v7, %v1451_v21  ;;  %v843_v49 = vadd.f32 %v842_v58, %v6459_v12  ;;  %v5217_v21 = vld [vmem:[%s8354_s0 + $0x259] sm:$0xff] }
 0x1d3   :  { %v6973_v22 = vadd.f32 %v2378_v47, %v1986_v29  ;;  %4955 = vmatmul.msk.f32.gmra.mxu1 %vm146_vm1, %v5083_v39  ;;  %5021 = vmatmul.msk.f32.gmra.mxu2 %vm146_vm1, %v998_v27  ;;  %v999_v39 = vld [vmem:[%s8354_s0 + $0x232] sm:$0xff] }
 0x1d4   :  { %v2381_v3 = vpop.f32.mrf.mxu0 }
 0x1d5   :  { %5151 = vmatmul.msk.f32.gmra.mxu3 %vm146_vm1, %v5085_v32 }
 0x1d6   :  { %v1312_v54 = vpop.f32.mrf.mxu2 }
 0x1d7   :  { %v1452_v48 = vadd.f32 %v1312_v54, %v843_v49  ;;  %5281 = vmatmul.msk.f32.gmra.mxu0 %vm146_vm1, %v5215_v46  ;;  %v5088_v49 = vld [vmem:[%s8354_s0 + $0x260] sm:$0xff] }
 0x1d8   :  { %v845_v2 = vpop.f32.mrf.mxu1  ;;  %v1847_v26 = vpop.f32.mrf.mxu3 }
 0x1d9   :  { %v1987_v62 = vadd.f32 %v1847_v26, %v1452_v48  ;;  %v846_v36 = vadd.f32 %v845_v2, %v6478_v50  ;;  %v5218_v48 = vld [vmem:[%s8354_s0 + $0x261] sm:$0xff] }
 0x1db   :  { %v6989_v34 = vadd.f32 %v2381_v3, %v1987_v62  ;;  %4956 = vmatmul.msk.f32.gmra.mxu1 %vm146_vm1, %v5084_v18  ;;  %5022 = vmatmul.msk.f32.gmra.mxu2 %vm146_vm1, %v999_v39  ;;  %v1000_v18 = vld [vmem:[%s8354_s0 + $0x242] sm:$0xff] }
 0x1dc   :  { %v2384_v12 = vpop.f32.mrf.mxu0 }
 0x1dd   :  { %5152 = vmatmul.msk.f32.gmra.mxu3 %vm146_vm1, %v5086_v4 }
 0x1de   :  { %v1315_v61 = vpop.f32.mrf.mxu2 }
 0x1df   :  { %v1453_v38 = vadd.f32 %v1315_v61, %v846_v36  ;;  %5282 = vmatmul.msk.f32.gmra.mxu0 %vm146_vm1, %v5216_v33  ;;  %v5089_v36 = vld [vmem:[%s8354_s0 + $0x270] sm:$0xff] }
 0x1e0   :  { %v848_v10 = vpop.f32.mrf.mxu1  ;;  %v1850_v47 = vpop.f32.mrf.mxu3 }
 0x1e1   :  { %v1988_v11 = vadd.f32 %v1850_v47, %v1453_v38  ;;  %v849_v58 = vadd.f32 %v848_v10, %v6497_v8  ;;  %v5219_v38 = vld [vmem:[%s8354_s0 + $0x271] sm:$0xff] }
 0x1e3   :  { %v7005_v43 = vadd.f32 %v2384_v12, %v1988_v11  ;;  %4957 = vmatmul.msk.f32.gmra.mxu1 %vm146_vm1, %v5085_v32  ;;  %5023 = vmatmul.msk.f32.gmra.mxu2 %vm146_vm1, %v1000_v18  ;;  %v1001_v32 = vld [vmem:[%s8354_s0 + $0x24a] sm:$0xff] }
 0x1e4   :  { %v2387_v50 = vpop.f32.mrf.mxu0 }
 0x1e5   :  { %5153 = vmatmul.msk.f32.gmra.mxu3 %vm146_vm1, %v5087_v45 }
 0x1e6   :  { %v1318_v7 = vpop.f32.mrf.mxu2 }
 0x1e7   :  { %v1454_v27 = vadd.f32 %v1318_v7, %v849_v58  ;;  %5283 = vmatmul.msk.f32.gmra.mxu0 %vm146_vm1, %v5217_v21  ;;  %v5090_v58 = vld [vmem:[%s8354_s0 + $0x278] sm:$0xff] }
 0x1e8   :  { %v851_v29 = vpop.f32.mrf.mxu1  ;;  %v1853_v3 = vpop.f32.mrf.mxu3 }
 0x1e9   :  { %v1989_v46 = vadd.f32 %v1853_v3, %v1454_v27  ;;  %v852_v2 = vadd.f32 %v851_v29, %v6516_v55  ;;  %v5220_v27 = vld [vmem:[%s8354_s0 + $0x279] sm:$0xff] }
 0x1eb   :  { %v7021_v54 = vadd.f32 %v2387_v50, %v1989_v46  ;;  %4958 = vmatmul.msk.f32.gmra.mxu1 %vm146_vm1, %v5086_v4  ;;  %5024 = vmatmul.msk.f32.gmra.mxu2 %vm146_vm1, %v1001_v32  ;;  %v1002_v4 = vld [vmem:[%s8354_s0 + $0x25a] sm:$0xff] }
 0x1ec   :  { %v2390_v8 = vpop.f32.mrf.mxu0 }
 0x1ed   :  { %5154 = vmatmul.msk.f32.gmra.mxu3 %vm146_vm1, %v5088_v49 }
 0x1ee   :  { %v1321_v26 = vpop.f32.mrf.mxu2 }
 0x1ef   :  { %v1455_v39 = vadd.f32 %v1321_v26, %v852_v2  ;;  %5284 = vmatmul.msk.f32.gmra.mxu0 %vm146_vm1, %v5218_v48  ;;  %v5091_v2 = vld [vmem:[%s8354_s0 + $0x288] sm:$0xff] }
 0x1f0   :  { %v854_v62 = vpop.f32.mrf.mxu1  ;;  %v1856_v12 = vpop.f32.mrf.mxu3 }
 0x1f1   :  { %v1990_v33 = vadd.f32 %v1856_v12, %v1455_v39  ;;  %v855_v10 = vadd.f32 %v854_v62, %v6535_v35  ;;  %v5221_v39 = vld [vmem:[%s8354_s0 + $0x289] sm:$0xff] }
 0x1f3   :  { %v7037_v61 = vadd.f32 %v2390_v8, %v1990_v33  ;;  %4959 = vmatmul.msk.f32.gmra.mxu1 %vm146_vm1, %v5087_v45  ;;  %5025 = vmatmul.msk.f32.gmra.mxu2 %vm146_vm1, %v1002_v4  ;;  %v1003_v45 = vld [vmem:[%s8354_s0 + $0x262] sm:$0xff] }
 0x1f4   :  { %v2393_v55 = vpop.f32.mrf.mxu0 }
 0x1f5   :  { %5155 = vmatmul.msk.f32.gmra.mxu3 %vm146_vm1, %v5089_v36 }
 0x1f6   :  { %v1324_v47 = vpop.f32.mrf.mxu2 }
 0x1f7   :  { %v1456_v18 = vadd.f32 %v1324_v47, %v855_v10  ;;  %5285 = vmatmul.msk.f32.gmra.mxu0 %vm146_vm1, %v5219_v38  ;;  %v5092_v10 = vld [vmem:[%s8354_s0 + $0x290] sm:$0xff] }
 0x1f8   :  { %v857_v11 = vpop.f32.mrf.mxu1  ;;  %v1859_v50 = vpop.f32.mrf.mxu3 }
 0x1f9   :  { %v1991_v21 = vadd.f32 %v1859_v50, %v1456_v18  ;;  %v858_v29 = vadd.f32 %v857_v11, %v6554_v63  ;;  %v5222_v18 = vld [vmem:[%s8354_s0 + $0x291] sm:$0xff] }
 0x1fb   :  { %v7053_v7 = vadd.f32 %v2393_v55, %v1991_v21  ;;  %4960 = vmatmul.msk.f32.gmra.mxu1 %vm146_vm1, %v5088_v49  ;;  %5026 = vmatmul.msk.f32.gmra.mxu2 %vm146_vm1, %v1003_v45  ;;  %v1004_v49 = vld [vmem:[%s8354_s0 + $0x272] sm:$0xff] }
 0x1fc   :  { %v2396_v35 = vpop.f32.mrf.mxu0 }
 0x1fd   :  { %5156 = vmatmul.msk.f32.gmra.mxu3 %vm146_vm1, %v5090_v58 }
 0x1fe   :  { %v1327_v3 = vpop.f32.mrf.mxu2 }
 0x1ff   :  { %v1457_v32 = vadd.f32 %v1327_v3, %v858_v29  ;;  %5286 = vmatmul.msk.f32.gmra.mxu0 %vm146_vm1, %v5220_v27  ;;  %v5093_v29 = vld [vmem:[%s8354_s0 + $0x2a0] sm:$0xff] }
 0x200   :  { %v860_v46 = vpop.f32.mrf.mxu1  ;;  %v1862_v8 = vpop.f32.mrf.mxu3 }
 0x201   :  { %v1992_v48 = vadd.f32 %v1862_v8, %v1457_v32  ;;  %v861_v62 = vadd.f32 %v860_v46, %v6281_v19  ;;  %v5223_v32 = vld [vmem:[%s8354_s0 + $0x2a1] sm:$0xff] }
 0x203   :  { %v7069_v26 = vadd.f32 %v2396_v35, %v1992_v48  ;;  %4961 = vmatmul.msk.f32.gmra.mxu1 %vm146_vm1, %v5089_v36  ;;  %5027 = vmatmul.msk.f32.gmra.mxu2 %vm146_vm1, %v1004_v49  ;;  %v1005_v36 = vld [vmem:[%s8354_s0 + $0x27a] sm:$0xff] }
 0x204   :  { %v2399_v63 = vpop.f32.mrf.mxu0 }
 0x205   :  { %5157 = vmatmul.msk.f32.gmra.mxu3 %vm146_vm1, %v5091_v2 }
 0x206   :  { %v1330_v12 = vpop.f32.mrf.mxu2 }
 0x207   :  { %v1458_v4 = vadd.f32 %v1330_v12, %v861_v62  ;;  %5287 = vmatmul.msk.f32.gmra.mxu0 %vm146_vm1, %v5221_v39  ;;  %v5094_v62 = vld [vmem:[%s8354_s0 + $0x2a8] sm:$0xff] }
 0x208   :  { %v863_v33 = vpop.f32.mrf.mxu1  ;;  %v1865_v55 = vpop.f32.mrf.mxu3 }
 0x209   :  { %v1993_v38 = vadd.f32 %v1865_v55, %v1458_v4  ;;  %v864_v11 = vadd.f32 %v863_v33, %v6303_v31  ;;  %v5224_v4 = vld [vmem:[%s8354_s0 + $0x2a9] sm:$0xff] }
 0x20b   :  { %v7085_v47 = vadd.f32 %v2399_v63, %v1993_v38  ;;  %4962 = vmatmul.msk.f32.gmra.mxu1 %vm146_vm1, %v5090_v58  ;;  %5028 = vmatmul.msk.f32.gmra.mxu2 %vm146_vm1, %v1005_v36  ;;  %v1006_v58 = vld [vmem:[%s8354_s0 + $0x28a] sm:$0xff] }
 0x20c   :  { %v2402_v19 = vpop.f32.mrf.mxu0 }
 0x20d   :  { %5158 = vmatmul.msk.f32.gmra.mxu3 %vm146_vm1, %v5092_v10 }
 0x20e   :  { %v1333_v50 = vpop.f32.mrf.mxu2 }
 0x20f   :  { %v1459_v45 = vadd.f32 %v1333_v50, %v864_v11  ;;  %5288 = vmatmul.msk.f32.gmra.mxu0 %vm146_vm1, %v5222_v18  ;;  %v5095_v11 = vld [vmem:[%s8354_s0 + $0x2b8] sm:$0xff] }
 0x210   :  { %v866_v21 = vpop.f32.mrf.mxu1  ;;  %v1868_v35 = vpop.f32.mrf.mxu3 }
 0x211   :  { %v1994_v27 = vadd.f32 %v1868_v35, %v1459_v45  ;;  %v867_v46 = vadd.f32 %v866_v21, %v6322_v20  ;;  %v5225_v45 = vld [vmem:[%s8354_s0 + $0x2b9] sm:$0xff] }
 0x213   :  { %v7101_v3 = vadd.f32 %v2402_v19, %v1994_v27  ;;  %4963 = vmatmul.msk.f32.gmra.mxu1 %vm146_vm1, %v5091_v2  ;;  %5029 = vmatmul.msk.f32.gmra.mxu2 %vm146_vm1, %v1006_v58  ;;  %v1007_v2 = vld [vmem:[%s8354_s0 + $0x292] sm:$0xff] }
 0x214   :  { %v2405_v31 = vpop.f32.mrf.mxu0 }
 0x215   :  { %5159 = vmatmul.msk.f32.gmra.mxu3 %vm146_vm1, %v5093_v29 }
 0x216   :  { %v1336_v8 = vpop.f32.mrf.mxu2 }
 0x217   :  { %v1460_v49 = vadd.f32 %v1336_v8, %v867_v46  ;;  %5289 = vmatmul.msk.f32.gmra.mxu0 %vm146_vm1, %v5223_v32  ;;  %v5096_v46 = vld [vmem:[%s8354_s0 + $0x2c0] sm:$0xff] }
 0x218   :  { %v869_v48 = vpop.f32.mrf.mxu1  ;;  %v1871_v63 = vpop.f32.mrf.mxu3 }
 0x219   :  { %v1995_v39 = vadd.f32 %v1871_v63, %v1460_v49  ;;  %v870_v33 = vadd.f32 %v869_v48, %v6341_v24  ;;  %v5226_v49 = vld [vmem:[%s8354_s0 + $0x2c1] sm:$0xff] }
 0x21a   :  { %v8385_v48 = vld [vmem:[#allocation10_spill] sm:$0xff] }
 0x21b   :  { %v7117_v12 = vadd.f32 %v2405_v31, %v1995_v39  ;;  %4964 = vmatmul.msk.f32.gmra.mxu1 %vm146_vm1, %v5092_v10  ;;  %5030 = vmatmul.msk.f32.gmra.mxu2 %vm146_vm1, %v1007_v2  ;;  %v1008_v10 = vld [vmem:[%s8354_s0 + $0x2a2] sm:$0xff] }
 0x21c   :  { %v2408_v20 = vpop.f32.mrf.mxu0 }
 0x21d   :  { %5160 = vmatmul.msk.f32.gmra.mxu3 %vm146_vm1, %v5094_v62 }
 0x21e   :  { %v1339_v55 = vpop.f32.mrf.mxu2 }
 0x21f   :  { %v1461_v36 = vadd.f32 %v1339_v55, %v870_v33  ;;  %5290 = vmatmul.msk.f32.gmra.mxu0 %vm146_vm1, %v5224_v4  ;;  %v5097_v55 = vld [vmem:[%s8354_s0 + $0x2d0] sm:$0xff] }
 0x220   :  { %v872_v38 = vpop.f32.mrf.mxu1  ;;  %v1874_v19 = vpop.f32.mrf.mxu3 }
 0x221   :  { %v1996_v18 = vadd.f32 %v1874_v19, %v1461_v36  ;;  %v873_v21 = vadd.f32 %v872_v38, %v6360_v28  ;;  %v5227_v19 = vld [vmem:[%s8354_s0 + $0x2d1] sm:$0xff] }
 0x223   :  { %v7133_v50 = vadd.f32 %v2408_v20, %v1996_v18  ;;  %4965 = vmatmul.msk.f32.gmra.mxu1 %vm146_vm1, %v5093_v29  ;;  %5031 = vmatmul.msk.f32.gmra.mxu2 %vm146_vm1, %v1008_v10  ;;  %v1009_v29 = vld [vmem:[%s8354_s0 + $0x2aa] sm:$0xff]  ;;  %v8386_v10 = vld [vmem:[#allocation12_spill] sm:$0xff] }
 0x224   :  { %v2411_v24 = vpop.f32.mrf.mxu0 }
 0x225   :  { %5161 = vmatmul.msk.f32.gmra.mxu3 %vm146_vm1, %v5095_v11 }
 0x226   :  { %v1342_v35 = vpop.f32.mrf.mxu2 }
 0x227   :  { %v1462_v58 = vadd.f32 %v1342_v35, %v873_v21  ;;  %5291 = vmatmul.msk.f32.gmra.mxu0 %vm146_vm1, %v5225_v45 }
 0x228   :  { %v875_v27 = vpop.f32.mrf.mxu1  ;;  %v1877_v31 = vpop.f32.mrf.mxu3 }
 0x229   :  { %v1997_v32 = vadd.f32 %v1877_v31, %v1462_v58  ;;  %v876_v63 = vadd.f32 %v875_v27, %v8385_v48  ;;  %v5098_v27 = vld [vmem:[%s8354_s0 + $0x2d8] sm:$0xff] }
 0x22b   :  { %v7149_v8 = vadd.f32 %v2411_v24, %v1997_v32  ;;  %4966 = vmatmul.msk.f32.gmra.mxu1 %vm146_vm1, %v5094_v62  ;;  %5032 = vmatmul.msk.f32.gmra.mxu2 %vm146_vm1, %v1009_v29  ;;  %v1010_v62 = vld [vmem:[%s8354_s0 + $0x2ba] sm:$0xff] }
 0x22c   :  { %v2414_v28 = vpop.f32.mrf.mxu0  ;;  %v5228_v32 = vld [vmem:[%s8354_s0 + $0x2d9] sm:$0xff] }
 0x22d   :  { %5162 = vmatmul.msk.f32.gmra.mxu3 %vm146_vm1, %v5096_v46 }
 0x22e   :  { %v1345_v2 = vpop.f32.mrf.mxu2 }
 0x22f   :  { %v1463_v39 = vadd.f32 %v1345_v2, %v876_v63  ;;  %5292 = vmatmul.msk.f32.gmra.mxu0 %vm146_vm1, %v5226_v49 }
 0x230   :  { %v878_v20 = vpop.f32.mrf.mxu1  ;;  %v1880_v4 = vpop.f32.mrf.mxu3 }
 0x231   :  { %v1998_v33 = vadd.f32 %v1880_v4, %v1463_v39  ;;  %v879_v18 = vadd.f32 %v878_v20, %v8386_v10  ;;  %v5099_v4 = vld [vmem:[%s8354_s0 + $0x2e8] sm:$0xff] }
 0x233   :  { %v7165_v36 = vadd.f32 %v2414_v28, %v1998_v33  ;;  %4967 = vmatmul.msk.f32.gmra.mxu1 %vm146_vm1, %v5095_v11  ;;  %5033 = vmatmul.msk.f32.gmra.mxu2 %vm146_vm1, %v1010_v62  ;;  %v1011_v11 = vld [vmem:[%s8354_s0 + $0x2c2] sm:$0xff] }
 0x234   :  { %v2417_v38 = vpop.f32.mrf.mxu0  ;;  %v8387_v28 = vld [vmem:[#allocation14_spill] sm:$0xff] }
 0x235   :  { %5163 = vmatmul.msk.f32.gmra.mxu3 %vm146_vm1, %v5097_v55 }
 0x236   :  { %v1348_v24 = vpop.f32.mrf.mxu2 }
 0x237   :  { %v1464_v45 = vadd.f32 %v1348_v24, %v879_v18  ;;  %5293 = vmatmul.msk.f32.gmra.mxu0 %vm146_vm1, %v5227_v19  ;;  %v8388_v19 = vld [vmem:[#allocation16_spill] sm:$0xff] }
 0x238   :  { %v881_v21 = vpop.f32.mrf.mxu1  ;;  %v1883_v35 = vpop.f32.mrf.mxu3 }
 0x239   :  { %v1999_v58 = vadd.f32 %v1883_v35, %v1464_v45  ;;  %v882_v49 = vadd.f32 %v881_v21, %v8387_v28  ;;  %v8389_v28 = vld [vmem:[#allocation18_spill] sm:$0xff] }
 0x23b   :  { %v7181_v31 = vadd.f32 %v2417_v38, %v1999_v58  ;;  %4968 = vmatmul.msk.f32.gmra.mxu1 %vm146_vm1, %v5096_v46  ;;  %5034 = vmatmul.msk.f32.gmra.mxu2 %vm146_vm1, %v1011_v11  ;;  %v1012_v46 = vld [vmem:[%s8354_s0 + $0x2d2] sm:$0xff]  ;;  %v5229_v38 = vld [vmem:[%s8354_s0 + $0x2e9] sm:$0xff] }
 0x23c   :  { %v2420_v29 = vpop.f32.mrf.mxu0  ;;  %v5100_v11 = vld [vmem:[%s8354_s0 + $0x2f0] sm:$0xff] }
 0x23d   :  { %5164 = vmatmul.msk.f32.gmra.mxu3 %vm146_vm1, %v5098_v27 }
 0x23e   :  { %v1351_v48 = vpop.f32.mrf.mxu2 }
 0x23f   :  { %v1465_v63 = vadd.f32 %v1351_v48, %v882_v49  ;;  %5294 = vmatmul.msk.f32.gmra.mxu0 %vm146_vm1, %v5228_v32  ;;  %v5230_v32 = vld [vmem:[%s8354_s0 + $0x2f1] sm:$0xff] }
 0x240   :  { %v884_v2 = vpop.f32.mrf.mxu1  ;;  %v1886_v39 = vpop.f32.mrf.mxu3 }
 0x241   :  { %v2000_v20 = vadd.f32 %v1886_v39, %v1465_v63  ;;  %v885_v10 = vadd.f32 %v884_v2, %v8388_v19  ;;  %v5231_v19 = vld [vmem:[%s8354_s0 + $0x301] sm:$0xff] }
 0x243   :  { %v7197_v62 = vadd.f32 %v2420_v29, %v2000_v20  ;;  %4969 = vmatmul.msk.f32.gmra.mxu1 %vm146_vm1, %v5097_v55  ;;  %5035 = vmatmul.msk.f32.gmra.mxu2 %vm146_vm1, %v1012_v46  ;;  %v1013_v55 = vld [vmem:[%s8354_s0 + $0x2da] sm:$0xff] }
 0x244   :  { %v2423_v33 = vpop.f32.mrf.mxu0  ;;  %v5101_v20 = vld [vmem:[%s8354_s0 + $0x300] sm:$0xff] }
 0x245   :  { %5165 = vmatmul.msk.f32.gmra.mxu3 %vm146_vm1, %v5099_v4 }
 0x246   :  { %v1354_v18 = vpop.f32.mrf.mxu2 }
 0x247   :  { %v1466_v24 = vadd.f32 %v1354_v18, %v885_v10  ;;  %5295 = vmatmul.msk.f32.gmra.mxu0 %vm146_vm1, %v5229_v38  ;;  %v8390_v10 = vld [vmem:[#allocation20_spill] sm:$0xff] }
 0x248   :  { %v887_v45 = vpop.f32.mrf.mxu1  ;;  %v1889_v21 = vpop.f32.mrf.mxu3 }
 0x249   :  { %v2001_v35 = vadd.f32 %v1889_v21, %v1466_v24  ;;  %v888_v49 = vadd.f32 %v887_v45, %v8389_v28 }
 0x24b   :  { %v7213_v58 = vadd.f32 %v2423_v33, %v2001_v35  ;;  %4970 = vmatmul.msk.f32.gmra.mxu1 %vm146_vm1, %v5098_v27  ;;  %5036 = vmatmul.msk.f32.gmra.mxu2 %vm146_vm1, %v1013_v55  ;;  %v1014_v27 = vld [vmem:[%s8354_s0 + $0x2ea] sm:$0xff] }
 0x24c   :  { %v2426_v29 = vpop.f32.mrf.mxu0 }
 0x24d   :  { %5166 = vmatmul.msk.f32.gmra.mxu3 %vm146_vm1, %v5100_v11 }
 0x24e   :  { %v1357_v48 = vpop.f32.mrf.mxu2 }
 0x24f   :  { %v1467_v63 = vadd.f32 %v1357_v48, %v888_v49  ;;  %5296 = vmatmul.msk.f32.gmra.mxu0 %vm146_vm1, %v5230_v32  ;;  %v5232_v49 = vld [vmem:[%s8354_s0 + $0x309] sm:$0xff] }
 0x250   :  { %v890_v2 = vpop.f32.mrf.mxu1  ;;  %v1892_v39 = vpop.f32.mrf.mxu3  ;;  %v8391_v48 = vld [vmem:[#allocation22_spill] sm:$0xff] }
 0x251   :  { %v2002_v46 = vadd.f32 %v1892_v39, %v1467_v63  ;;  %v891_v18 = vadd.f32 %v890_v2, %v8390_v10 }
 0x253   :  { %v7229_v33 = vadd.f32 %v2426_v29, %v2002_v46  ;;  %4971 = vmatmul.msk.f32.gmra.mxu1 %vm146_vm1, %v5099_v4  ;;  %5037 = vmatmul.msk.f32.gmra.mxu2 %vm146_vm1, %v1014_v27  ;;  %v1015_v4 = vld [vmem:[%s8354_s0 + $0x2f2] sm:$0xff]  ;;  %v5102_v29 = vld [vmem:[%s8354_s0 + $0x308] sm:$0xff] }
 0x254   :  { %v2429_v38 = vpop.f32.mrf.mxu0 }
 0x255   :  { %5167 = vmatmul.msk.f32.gmra.mxu3 %vm146_vm1, %v5101_v20 }
 0x256   :  { %v1360_v24 = vpop.f32.mrf.mxu2 }
 0x257   :  { %v1468_v45 = vadd.f32 %v1360_v24, %v891_v18  ;;  %5297 = vmatmul.msk.f32.gmra.mxu0 %vm146_vm1, %v5231_v19  ;;  %v5103_v19 = vld [vmem:[%s8354_s0 + $0x318] sm:$0xff] }
 0x258   :  { %v893_v21 = vpop.f32.mrf.mxu1  ;;  %v1895_v55 = vpop.f32.mrf.mxu3  ;;  %v5233_v24 = vld [vmem:[%s8354_s0 + $0x319] sm:$0xff] }
 0x259   :  { %v2003_v35 = vadd.f32 %v1895_v55, %v1468_v45  ;;  %v894_v63 = vadd.f32 %v893_v21, %v8391_v48  ;;  %v8392_v45 = vld [vmem:[#allocation24_spill] sm:$0xff]  ;;  %v5104_v48 = vld [vmem:[%s8354_s0 + $0x320] sm:$0xff] }
 0x25b   :  { %v7245_v32 = vadd.f32 %v2429_v38, %v2003_v35  ;;  %4972 = vmatmul.msk.f32.gmra.mxu1 %vm146_vm1, %v5100_v11  ;;  %5038 = vmatmul.msk.f32.gmra.mxu2 %vm146_vm1, %v1015_v4  ;;  %v1016_v11 = vld [vmem:[%s8354_s0 + $0x302] sm:$0xff] }
 0x25c   :  { %v2432_v28 = vpop.f32.mrf.mxu0 }
 0x25d   :  { %5168 = vmatmul.msk.f32.gmra.mxu3 %vm146_vm1, %v5102_v29 }
 0x25e   :  { %v1363_v2 = vpop.f32.mrf.mxu2 }
 0x25f   :  { %v1469_v39 = vadd.f32 %v1363_v2, %v894_v63  ;;  %5298 = vmatmul.msk.f32.gmra.mxu0 %vm146_vm1, %v5232_v49 }
 0x260   :  { %v896_v27 = vpop.f32.mrf.mxu1  ;;  %v1898_v46 = vpop.f32.mrf.mxu3 }
 0x261   :  { %v2004_v38 = vadd.f32 %v1898_v46, %v1469_v39  ;;  %v897_v21 = vadd.f32 %v896_v27, %v8392_v45  ;;  %v5234_v39 = vld [vmem:[%s8354_s0 + $0x321] sm:$0xff] }
 0x262   :  { %v8393_v27 = vld [vmem:[#allocation26_spill] sm:$0xff] }
 0x263   :  { %v7261_v10 = vadd.f32 %v2432_v28, %v2004_v38  ;;  %4973 = vmatmul.msk.f32.gmra.mxu1 %vm146_vm1, %v5101_v20  ;;  %5039 = vmatmul.msk.f32.gmra.mxu2 %vm146_vm1, %v1016_v11  ;;  %v1017_v20 = vld [vmem:[%s8354_s0 + $0x30a] sm:$0xff] }
 0x264   :  { %v2435_v18 = vpop.f32.mrf.mxu0 }
 0x265   :  { %5169 = vmatmul.msk.f32.gmra.mxu3 %vm146_vm1, %v5103_v19 }
 0x266   :  { %v1366_v55 = vpop.f32.mrf.mxu2 }
 0x267   :  { %v1470_v4 = vadd.f32 %v1366_v55, %v897_v21  ;;  %5299 = vmatmul.msk.f32.gmra.mxu0 %vm146_vm1, %v5233_v24  ;;  %v5105_v21 = vld [vmem:[%s8354_s0 + $0x330] sm:$0xff] }
 0x268   :  { %v899_v35 = vpop.f32.mrf.mxu1  ;;  %v1901_v28 = vpop.f32.mrf.mxu3 }
 0x269   :  { %v2005_v49 = vadd.f32 %v1901_v28, %v1470_v4  ;;  %v900_v46 = vadd.f32 %v899_v35, %v8393_v27  ;;  %v5235_v35 = vld [vmem:[%s8354_s0 + $0x331] sm:$0xff] }
 0x26a   :  { %v8394_v28 = vld [vmem:[#allocation28_spill] sm:$0xff] }
 0x26b   :  { %v7277_v63 = vadd.f32 %v2435_v18, %v2005_v49  ;;  %4974 = vmatmul.msk.f32.gmra.mxu1 %vm146_vm1, %v5102_v29  ;;  %5040 = vmatmul.msk.f32.gmra.mxu2 %vm146_vm1, %v1017_v20  ;;  %v1018_v29 = vld [vmem:[%s8354_s0 + $0x31a] sm:$0xff] }
 0x26c   :  { %v2438_v2 = vpop.f32.mrf.mxu0 }
 0x26d   :  { %5170 = vmatmul.msk.f32.gmra.mxu3 %vm146_vm1, %v5104_v48 }
 0x26e   :  { %v1369_v11 = vpop.f32.mrf.mxu2 }
 0x26f   :  { %v1471_v38 = vadd.f32 %v1369_v11, %v900_v46  ;;  %5300 = vmatmul.msk.f32.gmra.mxu0 %vm146_vm1, %v5234_v39  ;;  %v5106_v11 = vld [vmem:[%s8354_s0 + $0x338] sm:$0xff] }
 0x270   :  { %v902_v24 = vpop.f32.mrf.mxu1  ;;  %v1904_v18 = vpop.f32.mrf.mxu3 }
 0x271   :  { %v2006_v45 = vadd.f32 %v1904_v18, %v1471_v38  ;;  %v903_v20 = vadd.f32 %v902_v24, %v8394_v28  ;;  %v5236_v18 = vld [vmem:[%s8354_s0 + $0x339] sm:$0xff] }
 0x273   :  { %v7293_v55 = vadd.f32 %v2438_v2, %v2006_v45  ;;  %4975 = vmatmul.msk.f32.gmra.mxu1 %vm146_vm1, %v5103_v19  ;;  %5041 = vmatmul.msk.f32.gmra.mxu2 %vm146_vm1, %v1018_v29  ;;  %v1019_v19 = vld [vmem:[%s8354_s0 + $0x322] sm:$0xff] }
 0x274   :  { %v2441_v4 = vpop.f32.mrf.mxu0  ;;  %v8395_v29 = vld [vmem:[#allocation30_spill] sm:$0xff] }
 0x275   :  { %5171 = vmatmul.msk.f32.gmra.mxu3 %vm146_vm1, %v5105_v21 }
 0x276   :  { %v1372_v49 = vpop.f32.mrf.mxu2 }
 0x277   :  { %v1472_v39 = vadd.f32 %v1372_v49, %v903_v20  ;;  %5301 = vmatmul.msk.f32.gmra.mxu0 %vm146_vm1, %v5235_v35  ;;  %v5433_v20 = vld [vmem:[%s8354_s0 + $0x30] sm:$0xff] }
 0x278   :  { %v905_v27 = vpop.f32.mrf.mxu1  ;;  %v1907_v2 = vpop.f32.mrf.mxu3 }
 0x279   :  { %v2007_v46 = vadd.f32 %v1907_v2, %v1472_v39  ;;  %v906_v45 = vadd.f32 %v905_v27, %v8395_v29  ;;  %v5563_v39 = vld [vmem:[%s8354_s0 + $0x31] sm:$0xff] }
 0x27b   :  { %v7309_v38 = vadd.f32 %v2441_v4, %v2007_v46  ;;  %4976 = vmatmul.msk.f32.gmra.mxu1 %vm146_vm1, %v5104_v48  ;;  %5042 = vmatmul.msk.f32.gmra.mxu2 %vm146_vm1, %v1019_v19  ;;  %v5303_v48 = vld [vmem:[%s8354_s0 + $0x1a] sm:$0xff]  ;;  %v5693_v19 = vld [vmem:[%s8354_s0 + $0x32] sm:$0xff] }
 0x27c   :  { %v2444_v24 = vpop.f32.mrf.mxu0  ;;  %v8396_v46 = vld [vmem:[#allocation5_spill] sm:$0xff] }
 0x27d   :  { %5172 = vmatmul.msk.f32.gmra.mxu3 %vm146_vm1, %v5106_v11 }
 0x27e   :  { %v1375_v21 = vpop.f32.mrf.mxu2 }
 0x27f   :  { %v1473_v35 = vadd.f32 %v1375_v21, %v906_v45  ;;  %5302 = vmatmul.msk.f32.gmra.mxu0 %vm146_vm1, %v5236_v18  ;;  %v5304_v21 = vld [vmem:[%s8354_s0 + $0x22] sm:$0xff] }
 0x280   :  { %v908_v28 = vpop.f32.mrf.mxu1  ;;  %v1910_v4 = vpop.f32.mrf.mxu3 }
 0x281   :  { %v2008_v49 = vadd.f32 %v1910_v4, %v1473_v35  ;;  %v909_v11 = vadd.f32 %v908_v28, %v8396_v46  ;;  %v5434_v35 = vld [vmem:[%s8354_s0 + $0x38] sm:$0xff] }
 0x282   :  { %v5564_v28 = vld [vmem:[%s8354_s0 + $0x39] sm:$0xff] }
 0x283   :  { %v7328_v27 = vadd.f32 %v2444_v24, %v2008_v49  ;;  %5369 = vmatmul.msk.f32.vlgmr.msra.gmra.mxu1 %vm146_vm1, %v5303_v48  ;;  %5499 = vmatmul.msk.f32.vlgmr.msra.gmra.mxu2 %vm146_vm1, %v5433_v20  ;;  %v5694_v49 = vld [vmem:[%s8354_s0 + $0x3a] sm:$0xff] }
 0x284   :  { %v2447_v2 = vpop.f32.mrf.mxu0 }
 0x285   :  { %5629 = vmatmul.msk.f32.vlgmr.msra.gmra.mxu3 %vm146_vm1, %v5563_v39  ;;  %v8397_v39 = vld [vmem:[#allocation6_spill] sm:$0xff] }
 0x286   :  { %v1378_v18 = vpop.f32.mrf.mxu2 }
 0x287   :  { %v1474_v29 = vadd.f32 %v1378_v18, %v909_v11  ;;  %5759 = vmatmul.msk.f32.vlgmr.msra.gmra.mxu0 %vm146_vm1, %v5693_v19 }
 0x288   :  { %v911_v45 = vpop.f32.mrf.mxu1  ;;  %v1913_v24 = vpop.f32.mrf.mxu3 }
 0x289   :  { %v2009_v4 = vadd.f32 %v1913_v24, %v1474_v29  ;;  %v912_v46 = vadd.f32 %v911_v45, %v8397_v39  ;;  %v5435_v24 = vld [vmem:[%s8354_s0 + $0x48] sm:$0xff]  ;;  %v8399_v39 = vld [vmem:[#allocation7_spill] sm:$0xff] }
 0x28b   :  { %v7347_v48 = vadd.f32 %v2447_v2, %v2009_v4  ;;  %5370 = vmatmul.msk.f32.gmra.mxu1 %vm146_vm1, %v5304_v21  ;;  %5500 = vmatmul.msk.f32.gmra.mxu2 %vm146_vm1, %v5434_v35  ;;  %v5565_v35 = vld [vmem:[%s8354_s0 + $0x49] sm:$0xff] }
 0x28c   :  { %v2450_v20 = vpop.f32.mrf.mxu0 }
 0x28d   :  { %5630 = vmatmul.msk.f32.gmra.mxu3 %vm146_vm1, %v5564_v28  ;;  %v5695_v28 = vld [vmem:[%s8354_s0 + $0x4a] sm:$0xff] }
 0x28e   :  { %v1381_v11 = vpop.f32.mrf.mxu2 }
 0x28f   :  { %v1475_v18 = vadd.f32 %v1381_v11, %v912_v46  ;;  %5760 = vmatmul.msk.f32.gmra.mxu0 %vm146_vm1, %v5694_v49 }
 0x290   :  { %v914_v29 = vpop.f32.mrf.mxu1  ;;  %v1916_v2 = vpop.f32.mrf.mxu3 }
 0x291   :  { %v2010_v21 = vadd.f32 %v1916_v2, %v1475_v18  ;;  %v915_v46 = vadd.f32 %v914_v29, %v8399_v39  ;;  %v8401_v39 = vld [vmem:[#allocation8_spill] sm:$0xff] }
 0x293   :  { %v7363_v4 = vadd.f32 %v2450_v20, %v2010_v21  ;;  %5371 = vmatmul.msk.f32.gmra.mxu1 %vm146_vm1, %v5693_v19  ;;  %5501 = vmatmul.msk.f32.gmra.mxu2 %vm146_vm1, %v5435_v24  ;;  %v5436_v19 = vld [vmem:[%s8354_s0 + $0x50] sm:$0xff] }
 0x294   :  { %v2453_v45 = vpop.f32.mrf.mxu0  ;;  %v5566_v21 = vld [vmem:[%s8354_s0 + $0x51] sm:$0xff] }
 0x295   :  { %8398 = vst [vmem:[#allocation10_spill] sm:$0xff] %v7363_v4  ;;  %5631 = vmatmul.msk.f32.gmra.mxu3 %vm146_vm1, %v5565_v35  ;;  %v5696_v35 = vld [vmem:[%s8354_s0 + $0x52] sm:$0xff] }
 0x296   :  { %v1384_v11 = vpop.f32.mrf.mxu2 }
 0x297   :  { %v1476_v18 = vadd.f32 %v1384_v11, %v915_v46  ;;  %5761 = vmatmul.msk.f32.gmra.mxu0 %vm146_vm1, %v5695_v28 }
 0x298   :  { %v917_v2 = vpop.f32.mrf.mxu1  ;;  %v1919_v20 = vpop.f32.mrf.mxu3 }
 0x299   :  { %v2011_v24 = vadd.f32 %v1919_v20, %v1476_v18  ;;  %v918_v46 = vadd.f32 %v917_v2, %v8401_v39  ;;  %v8403_v39 = vld [vmem:[#allocation9_spill] sm:$0xff] }
 0x29b   :  { %v7379_v4 = vadd.f32 %v2453_v45, %v2011_v24  ;;  %5372 = vmatmul.msk.f32.gmra.mxu1 %vm146_vm1, %v5694_v49  ;;  %5502 = vmatmul.msk.f32.gmra.mxu2 %vm146_vm1, %v5436_v19  ;;  %v5437_v49 = vld [vmem:[%s8354_s0 + $0x60] sm:$0xff] }
 0x29c   :  { %v2456_v29 = vpop.f32.mrf.mxu0  ;;  %v5567_v24 = vld [vmem:[%s8354_s0 + $0x61] sm:$0xff] }
 0x29d   :  { %8400 = vst [vmem:[#allocation12_spill] sm:$0xff] %v7379_v4  ;;  %5632 = vmatmul.msk.f32.gmra.mxu3 %vm146_vm1, %v5566_v21  ;;  %v5697_v21 = vld [vmem:[%s8354_s0 + $0x62] sm:$0xff] }
 0x29e   :  { %v1387_v11 = vpop.f32.mrf.mxu2 }
 0x29f   :  { %v1477_v18 = vadd.f32 %v1387_v11, %v918_v46  ;;  %5762 = vmatmul.msk.f32.gmra.mxu0 %vm146_vm1, %v5696_v35 }
 0x2a0   :  { %v920_v20 = vpop.f32.mrf.mxu1  ;;  %v1922_v45 = vpop.f32.mrf.mxu3 }
 0x2a1   :  { %v2012_v19 = vadd.f32 %v1922_v45, %v1477_v18  ;;  %v921_v46 = vadd.f32 %v920_v20, %v8403_v39  ;;  %v8405_v39 = vld [vmem:[#allocation11_spill] sm:$0xff] }
 0x2a3   :  { %v7395_v4 = vadd.f32 %v2456_v29, %v2012_v19  ;;  %5373 = vmatmul.msk.f32.gmra.mxu1 %vm146_vm1, %v5695_v28  ;;  %5503 = vmatmul.msk.f32.gmra.mxu2 %vm146_vm1, %v5437_v49  ;;  %v5438_v28 = vld [vmem:[%s8354_s0 + $0x68] sm:$0xff] }
 0x2a4   :  { %v2459_v2 = vpop.f32.mrf.mxu0  ;;  %v5568_v19 = vld [vmem:[%s8354_s0 + $0x69] sm:$0xff] }
 0x2a5   :  { %8402 = vst [vmem:[#allocation14_spill] sm:$0xff] %v7395_v4  ;;  %5633 = vmatmul.msk.f32.gmra.mxu3 %vm146_vm1, %v5567_v24  ;;  %v5698_v24 = vld [vmem:[%s8354_s0 + $0x6a] sm:$0xff] }
 0x2a6   :  { %v1390_v11 = vpop.f32.mrf.mxu2 }
 0x2a7   :  { %v1478_v18 = vadd.f32 %v1390_v11, %v921_v46  ;;  %5763 = vmatmul.msk.f32.gmra.mxu0 %vm146_vm1, %v5697_v21 }
 0x2a8   :  { %v923_v45 = vpop.f32.mrf.mxu1  ;;  %v1925_v29 = vpop.f32.mrf.mxu3 }
 0x2a9   :  { %v2013_v49 = vadd.f32 %v1925_v29, %v1478_v18  ;;  %v924_v46 = vadd.f32 %v923_v45, %v8405_v39  ;;  %v8407_v39 = vld [vmem:[#allocation13_spill] sm:$0xff] }
 0x2ab   :  { %v7411_v4 = vadd.f32 %v2459_v2, %v2013_v49  ;;  %5374 = vmatmul.msk.f32.gmra.mxu1 %vm146_vm1, %v5696_v35  ;;  %5504 = vmatmul.msk.f32.gmra.mxu2 %vm146_vm1, %v5438_v28  ;;  %v5439_v35 = vld [vmem:[%s8354_s0 + $0x78] sm:$0xff] }
 0x2ac   :  { %v2462_v20 = vpop.f32.mrf.mxu0  ;;  %v5569_v49 = vld [vmem:[%s8354_s0 + $0x79] sm:$0xff] }
 0x2ad   :  { %8404 = vst [vmem:[#allocation16_spill] sm:$0xff] %v7411_v4  ;;  %5634 = vmatmul.msk.f32.gmra.mxu3 %vm146_vm1, %v5568_v19  ;;  %v5699_v19 = vld [vmem:[%s8354_s0 + $0x7a] sm:$0xff] }
 0x2ae   :  { %v1393_v11 = vpop.f32.mrf.mxu2 }
 0x2af   :  { %v1479_v18 = vadd.f32 %v1393_v11, %v924_v46  ;;  %5764 = vmatmul.msk.f32.gmra.mxu0 %vm146_vm1, %v5698_v24 }
 0x2b0   :  { %v926_v29 = vpop.f32.mrf.mxu1  ;;  %v1928_v2 = vpop.f32.mrf.mxu3 }
 0x2b1   :  { %v2014_v28 = vadd.f32 %v1928_v2, %v1479_v18  ;;  %v927_v46 = vadd.f32 %v926_v29, %v8407_v39  ;;  %v8409_v39 = vld [vmem:[#allocation15_spill] sm:$0xff] }
 0x2b3   :  { %v7427_v4 = vadd.f32 %v2462_v20, %v2014_v28  ;;  %5375 = vmatmul.msk.f32.gmra.mxu1 %vm146_vm1, %v5697_v21  ;;  %5505 = vmatmul.msk.f32.gmra.mxu2 %vm146_vm1, %v5439_v35  ;;  %v5440_v21 = vld [vmem:[%s8354_s0 + $0x80] sm:$0xff] }
 0x2b4   :  { %v2465_v45 = vpop.f32.mrf.mxu0  ;;  %v5570_v28 = vld [vmem:[%s8354_s0 + $0x81] sm:$0xff] }
 0x2b5   :  { %8406 = vst [vmem:[#allocation18_spill] sm:$0xff] %v7427_v4  ;;  %5635 = vmatmul.msk.f32.gmra.mxu3 %vm146_vm1, %v5569_v49  ;;  %v5700_v49 = vld [vmem:[%s8354_s0 + $0x82] sm:$0xff] }
 0x2b6   :  { %v1396_v11 = vpop.f32.mrf.mxu2 }
 0x2b7   :  { %v1480_v18 = vadd.f32 %v1396_v11, %v927_v46  ;;  %5765 = vmatmul.msk.f32.gmra.mxu0 %vm146_vm1, %v5699_v19 }
 0x2b8   :  { %v929_v2 = vpop.f32.mrf.mxu1  ;;  %v1931_v20 = vpop.f32.mrf.mxu3 }
 0x2b9   :  { %v2015_v35 = vadd.f32 %v1931_v20, %v1480_v18  ;;  %v930_v46 = vadd.f32 %v929_v2, %v8409_v39  ;;  %v8411_v39 = vld [vmem:[#allocation17_spill] sm:$0xff] }
 0x2bb   :  { %v7443_v4 = vadd.f32 %v2465_v45, %v2015_v35  ;;  %5376 = vmatmul.msk.f32.gmra.mxu1 %vm146_vm1, %v5698_v24  ;;  %5506 = vmatmul.msk.f32.gmra.mxu2 %vm146_vm1, %v5440_v21  ;;  %v5441_v24 = vld [vmem:[%s8354_s0 + $0x90] sm:$0xff] }
 0x2bc   :  { %v2468_v29 = vpop.f32.mrf.mxu0  ;;  %v5571_v35 = vld [vmem:[%s8354_s0 + $0x91] sm:$0xff] }
 0x2bd   :  { %8408 = vst [vmem:[#allocation20_spill] sm:$0xff] %v7443_v4  ;;  %5636 = vmatmul.msk.f32.gmra.mxu3 %vm146_vm1, %v5570_v28  ;;  %v5701_v28 = vld [vmem:[%s8354_s0 + $0x92] sm:$0xff] }
 0x2be   :  { %v1399_v11 = vpop.f32.mrf.mxu2 }
 0x2bf   :  { %v1481_v18 = vadd.f32 %v1399_v11, %v930_v46  ;;  %5766 = vmatmul.msk.f32.gmra.mxu0 %vm146_vm1, %v5700_v49 }
 0x2c0   :  { %v932_v20 = vpop.f32.mrf.mxu1  ;;  %v1934_v45 = vpop.f32.mrf.mxu3 }
 0x2c1   :  { %v2016_v21 = vadd.f32 %v1934_v45, %v1481_v18  ;;  %v933_v46 = vadd.f32 %v932_v20, %v8411_v39  ;;  %v8413_v39 = vld [vmem:[#allocation19_spill] sm:$0xff] }
 0x2c3   :  { %v7459_v4 = vadd.f32 %v2468_v29, %v2016_v21  ;;  %5377 = vmatmul.msk.f32.gmra.mxu1 %vm146_vm1, %v5699_v19  ;;  %5507 = vmatmul.msk.f32.gmra.mxu2 %vm146_vm1, %v5441_v24  ;;  %v5442_v19 = vld [vmem:[%s8354_s0 + $0x98] sm:$0xff] }
 0x2c4   :  { %v2471_v2 = vpop.f32.mrf.mxu0  ;;  %v5572_v21 = vld [vmem:[%s8354_s0 + $0x99] sm:$0xff] }
 0x2c5   :  { %8410 = vst [vmem:[#allocation22_spill] sm:$0xff] %v7459_v4  ;;  %5637 = vmatmul.msk.f32.gmra.mxu3 %vm146_vm1, %v5571_v35  ;;  %v5702_v35 = vld [vmem:[%s8354_s0 + $0x9a] sm:$0xff] }
 0x2c6   :  { %v1402_v11 = vpop.f32.mrf.mxu2 }
 0x2c7   :  { %v1482_v18 = vadd.f32 %v1402_v11, %v933_v46  ;;  %5767 = vmatmul.msk.f32.gmra.mxu0 %vm146_vm1, %v5701_v28 }
 0x2c8   :  { %v935_v45 = vpop.f32.mrf.mxu1  ;;  %v1937_v29 = vpop.f32.mrf.mxu3 }
 0x2c9   :  { %v2017_v24 = vadd.f32 %v1937_v29, %v1482_v18  ;;  %v936_v46 = vadd.f32 %v935_v45, %v8413_v39  ;;  %v8415_v39 = vld [vmem:[#allocation21_spill] sm:$0xff] }
 0x2cb   :  { %v7475_v4 = vadd.f32 %v2471_v2, %v2017_v24  ;;  %5378 = vmatmul.msk.f32.gmra.mxu1 %vm146_vm1, %v5700_v49  ;;  %5508 = vmatmul.msk.f32.gmra.mxu2 %vm146_vm1, %v5442_v19  ;;  %v5443_v49 = vld [vmem:[%s8354_s0 + $0xa8] sm:$0xff] }
 0x2cc   :  { %v2474_v20 = vpop.f32.mrf.mxu0  ;;  %v5573_v24 = vld [vmem:[%s8354_s0 + $0xa9] sm:$0xff] }
 0x2cd   :  { %8412 = vst [vmem:[#allocation24_spill] sm:$0xff] %v7475_v4  ;;  %5638 = vmatmul.msk.f32.gmra.mxu3 %vm146_vm1, %v5572_v21  ;;  %v5703_v21 = vld [vmem:[%s8354_s0 + $0xaa] sm:$0xff] }
 0x2ce   :  { %v1405_v11 = vpop.f32.mrf.mxu2 }
 0x2cf   :  { %v1483_v18 = vadd.f32 %v1405_v11, %v936_v46  ;;  %5768 = vmatmul.msk.f32.gmra.mxu0 %vm146_vm1, %v5702_v35 }
 0x2d0   :  { %v938_v29 = vpop.f32.mrf.mxu1  ;;  %v1940_v2 = vpop.f32.mrf.mxu3 }
 0x2d1   :  { %v2018_v19 = vadd.f32 %v1940_v2, %v1483_v18  ;;  %v939_v46 = vadd.f32 %v938_v29, %v8415_v39  ;;  %v8417_v39 = vld [vmem:[#allocation23_spill] sm:$0xff] }
 0x2d3   :  { %v7491_v4 = vadd.f32 %v2474_v20, %v2018_v19  ;;  %5379 = vmatmul.msk.f32.gmra.mxu1 %vm146_vm1, %v5701_v28  ;;  %5509 = vmatmul.msk.f32.gmra.mxu2 %vm146_vm1, %v5443_v49  ;;  %v5444_v28 = vld [vmem:[%s8354_s0 + $0xb0] sm:$0xff] }
 0x2d4   :  { %v2477_v45 = vpop.f32.mrf.mxu0  ;;  %v5574_v19 = vld [vmem:[%s8354_s0 + $0xb1] sm:$0xff] }
 0x2d5   :  { %8414 = vst [vmem:[#allocation26_spill] sm:$0xff] %v7491_v4  ;;  %5639 = vmatmul.msk.f32.gmra.mxu3 %vm146_vm1, %v5573_v24  ;;  %v5704_v24 = vld [vmem:[%s8354_s0 + $0xb2] sm:$0xff] }
 0x2d6   :  { %v1408_v11 = vpop.f32.mrf.mxu2 }
 0x2d7   :  { %v1484_v18 = vadd.f32 %v1408_v11, %v939_v46  ;;  %5769 = vmatmul.msk.f32.gmra.mxu0 %vm146_vm1, %v5703_v21 }
 0x2d8   :  { %v941_v2 = vpop.f32.mrf.mxu1  ;;  %v1943_v20 = vpop.f32.mrf.mxu3 }
 0x2d9   :  { %v2019_v49 = vadd.f32 %v1943_v20, %v1484_v18  ;;  %v942_v46 = vadd.f32 %v941_v2, %v8417_v39  ;;  %v8419_v39 = vld [vmem:[#allocation25_spill] sm:$0xff] }
 0x2db   :  { %v7507_v4 = vadd.f32 %v2477_v45, %v2019_v49  ;;  %5380 = vmatmul.msk.f32.gmra.mxu1 %vm146_vm1, %v5702_v35  ;;  %5510 = vmatmul.msk.f32.gmra.mxu2 %vm146_vm1, %v5444_v28  ;;  %v5445_v35 = vld [vmem:[%s8354_s0 + $0xc0] sm:$0xff] }
 0x2dc   :  { %v2480_v29 = vpop.f32.mrf.mxu0  ;;  %v5575_v49 = vld [vmem:[%s8354_s0 + $0xc1] sm:$0xff] }
 0x2dd   :  { %8416 = vst [vmem:[#allocation28_spill] sm:$0xff] %v7507_v4  ;;  %5640 = vmatmul.msk.f32.gmra.mxu3 %vm146_vm1, %v5574_v19  ;;  %v5705_v19 = vld [vmem:[%s8354_s0 + $0xc2] sm:$0xff] }
 0x2de   :  { %v1411_v11 = vpop.f32.mrf.mxu2 }
 0x2df   :  { %v1485_v18 = vadd.f32 %v1411_v11, %v942_v46  ;;  %5770 = vmatmul.msk.f32.gmra.mxu0 %vm146_vm1, %v5704_v24 }
 0x2e0   :  { %v944_v20 = vpop.f32.mrf.mxu1  ;;  %v1946_v45 = vpop.f32.mrf.mxu3 }
 0x2e1   :  { %v2020_v28 = vadd.f32 %v1946_v45, %v1485_v18  ;;  %v945_v46 = vadd.f32 %v944_v20, %v8419_v39  ;;  %v8421_v39 = vld [vmem:[#allocation27_spill] sm:$0xff] }
 0x2e3   :  { %v7523_v4 = vadd.f32 %v2480_v29, %v2020_v28  ;;  %5381 = vmatmul.msk.f32.gmra.mxu1 %vm146_vm1, %v5703_v21  ;;  %5511 = vmatmul.msk.f32.gmra.mxu2 %vm146_vm1, %v5445_v35  ;;  %v5446_v21 = vld [vmem:[%s8354_s0 + $0xc8] sm:$0xff] }
 0x2e4   :  { %v2483_v2 = vpop.f32.mrf.mxu0  ;;  %v5576_v28 = vld [vmem:[%s8354_s0 + $0xc9] sm:$0xff] }
 0x2e5   :  { %8418 = vst [vmem:[#allocation30_spill] sm:$0xff] %v7523_v4  ;;  %5641 = vmatmul.msk.f32.gmra.mxu3 %vm146_vm1, %v5575_v49  ;;  %v5706_v49 = vld [vmem:[%s8354_s0 + $0xca] sm:$0xff] }
 0x2e6   :  { %v1414_v11 = vpop.f32.mrf.mxu2 }
 0x2e7   :  { %v1486_v18 = vadd.f32 %v1414_v11, %v945_v46  ;;  %5771 = vmatmul.msk.f32.gmra.mxu0 %vm146_vm1, %v5705_v19 }
 0x2e8   :  { %v947_v45 = vpop.f32.mrf.mxu1  ;;  %v1949_v29 = vpop.f32.mrf.mxu3 }
 0x2e9   :  { %v2021_v35 = vadd.f32 %v1949_v29, %v1486_v18  ;;  %v948_v46 = vadd.f32 %v947_v45, %v8421_v39  ;;  %v8423_v39 = vld [vmem:[#allocation29_spill] sm:$0xff] }
 0x2eb   :  { %v7539_v4 = vadd.f32 %v2483_v2, %v2021_v35  ;;  %5382 = vmatmul.msk.f32.gmra.mxu1 %vm146_vm1, %v5704_v24  ;;  %5512 = vmatmul.msk.f32.gmra.mxu2 %vm146_vm1, %v5446_v21  ;;  %v5447_v24 = vld [vmem:[%s8354_s0 + $0xd8] sm:$0xff] }
 0x2ec   :  { %v2486_v20 = vpop.f32.mrf.mxu0  ;;  %v5577_v35 = vld [vmem:[%s8354_s0 + $0xd9] sm:$0xff] }
 0x2ed   :  { %8420 = vst [vmem:[#allocation5_spill] sm:$0xff] %v7539_v4  ;;  %5642 = vmatmul.msk.f32.gmra.mxu3 %vm146_vm1, %v5576_v28  ;;  %v5707_v28 = vld [vmem:[%s8354_s0 + $0xda] sm:$0xff] }
 0x2ee   :  { %v1417_v11 = vpop.f32.mrf.mxu2 }
 0x2ef   :  { %v1487_v18 = vadd.f32 %v1417_v11, %v948_v46  ;;  %5772 = vmatmul.msk.f32.gmra.mxu0 %vm146_vm1, %v5706_v49 }
 0x2f0   :  { %v950_v29 = vpop.f32.mrf.mxu1  ;;  %v1952_v2 = vpop.f32.mrf.mxu3 }
 0x2f1   :  { %v2022_v21 = vadd.f32 %v1952_v2, %v1487_v18  ;;  %v951_v46 = vadd.f32 %v950_v29, %v8423_v39  ;;  %v8425_v39 = vld [vmem:[#allocation31_spill] sm:$0xff] }
 0x2f3   :  { %v7555_v4 = vadd.f32 %v2486_v20, %v2022_v21  ;;  %5383 = vmatmul.msk.f32.gmra.mxu1 %vm146_vm1, %v5705_v19  ;;  %5513 = vmatmul.msk.f32.gmra.mxu2 %vm146_vm1, %v5447_v24  ;;  %v5448_v19 = vld [vmem:[%s8354_s0 + $0xe0] sm:$0xff] }
 0x2f4   :  { %v2489_v45 = vpop.f32.mrf.mxu0  ;;  %v5578_v21 = vld [vmem:[%s8354_s0 + $0xe1] sm:$0xff] }
 0x2f5   :  { %8422 = vst [vmem:[#allocation6_spill] sm:$0xff] %v7555_v4  ;;  %5643 = vmatmul.msk.f32.gmra.mxu3 %vm146_vm1, %v5577_v35  ;;  %v5708_v35 = vld [vmem:[%s8354_s0 + $0xe2] sm:$0xff] }
 0x2f6   :  { %v1420_v11 = vpop.f32.mrf.mxu2 }
 0x2f7   :  { %v1488_v18 = vadd.f32 %v1420_v11, %v951_v46  ;;  %5773 = vmatmul.msk.f32.gmra.mxu0 %vm146_vm1, %v5707_v28 }
 0x2f8   :  { %v953_v2 = vpop.f32.mrf.mxu1  ;;  %v1955_v20 = vpop.f32.mrf.mxu3 }
 0x2f9   :  { %v2023_v24 = vadd.f32 %v1955_v20, %v1488_v18  ;;  %v954_v46 = vadd.f32 %v953_v2, %v8425_v39 }
 0x2fb   :  { %v7571_v4 = vadd.f32 %v2489_v45, %v2023_v24  ;;  %5384 = vmatmul.msk.f32.gmra.mxu1 %vm146_vm1, %v5706_v49  ;;  %5514 = vmatmul.msk.f32.gmra.mxu2 %vm146_vm1, %v5448_v19  ;;  %v5449_v49 = vld [vmem:[%s8354_s0 + $0xf0] sm:$0xff] }
 0x2fc   :  { %v2492_v29 = vpop.f32.mrf.mxu0  ;;  %v5579_v24 = vld [vmem:[%s8354_s0 + $0xf1] sm:$0xff] }
 0x2fd   :  { %8424 = vst [vmem:[#allocation7_spill] sm:$0xff] %v7571_v4  ;;  %5644 = vmatmul.msk.f32.gmra.mxu3 %vm146_vm1, %v5578_v21  ;;  %v5709_v21 = vld [vmem:[%s8354_s0 + $0xf2] sm:$0xff] }
 0x2fe   :  { %v1423_v11 = vpop.f32.mrf.mxu2 }
 0x2ff   :  { %v1489_v18 = vadd.f32 %v1423_v11, %v954_v46  ;;  %5774 = vmatmul.msk.f32.gmra.mxu0 %vm146_vm1, %v5708_v35 }
 0x300   :  { %v1958_v20 = vpop.f32.mrf.mxu3  ;;  %v2837_v45 = vpop.f32.mrf.mxu1 }
 0x301   :  { %v2024_v19 = vadd.f32 %v1958_v20, %v1489_v18  ;;  %v3029_v39 = vadd.f32 %v2837_v45, %v6593_v23  ;;  %v5580_v23 = vld [vmem:[%s8354_s0 + $0xf9] sm:$0xff] }
 0x303   :  { %v7587_v4 = vadd.f32 %v2492_v29, %v2024_v19  ;;  %5385 = vmatmul.msk.f32.gmra.mxu1 %vm146_vm1, %v5707_v28  ;;  %5515 = vmatmul.msk.f32.gmra.mxu2 %vm146_vm1, %v5449_v49  ;;  %v5450_v28 = vld [vmem:[%s8354_s0 + $0xf8] sm:$0xff]  ;;  %v7603_v49 = vld [vmem:[%s8356_s2] ss:$0 sm:$0xff] }
 0x304   :  { %v4440_v2 = vpop.f32.mrf.mxu0 }
 0x305   :  { %5645 = vmatmul.msk.f32.gmra.mxu3 %vm146_vm1, %v5579_v24  ;;  %v5710_v24 = vld [vmem:[%s8354_s0 + $0xfa] sm:$0xff] }
 0x306   :  { %v3372_v46 = vpop.f32.mrf.mxu2 }
 0x307   :  { %v3564_v11 = vadd.f32 %v3372_v46, %v3029_v39  ;;  %5775 = vmatmul.msk.f32.gmra.mxu0 %vm146_vm1, %v5709_v21 }
 0x308   :  { %v2840_v18 = vpop.f32.mrf.mxu1  ;;  %v3906_v29 = vpop.f32.mrf.mxu3 }
 0x309   :  { %v4098_v20 = vadd.f32 %v3906_v29, %v3564_v11  ;;  %v3030_v39 = vadd.f32 %v2840_v18, %v6607_v57  ;;  %v5581_v57 = vld [vmem:[%s8354_s0 + $0x109] sm:$0xff] }
 0x30b   :  { %v4632_v45 = vadd.f32 %v4440_v2, %v4098_v20  ;;  %5386 = vmatmul.msk.f32.gmra.mxu1 %vm146_vm1, %v5708_v35  ;;  %5516 = vmatmul.msk.f32.gmra.mxu2 %vm146_vm1, %v5450_v28  ;;  %v5451_v28 = vld [vmem:[%s8354_s0 + $0x108] sm:$0xff] }
 0x30c   :  { %v4443_v19 = vpop.f32.mrf.mxu0 }
 0x30d   :  { %v4700_v46 = vadd.f32 %v7603_v49, %v4632_v45  ;;  %5646 = vmatmul.msk.f32.gmra.mxu3 %vm146_vm1, %v5580_v23  ;;  %v5711_v45 = vld [vmem:[%s8354_s0 + $0x10a] sm:$0xff] }
 0x30e   :  { %v3375_v11 = vpop.f32.mrf.mxu2 }
 0x30f   :  { %4764 = vst [vmem:[#allocation2] sm:$0xff] %v4700_v46  ;;  %v3565_v29 = vadd.f32 %v3375_v11, %v3030_v39  ;;  %5776 = vmatmul.msk.f32.gmra.mxu0 %vm146_vm1, %v5710_v24 }
 0x310   :  { %v2843_v2 = vpop.f32.mrf.mxu1  ;;  %v3909_v35 = vpop.f32.mrf.mxu3 }
 0x311   :  { %v4099_v20 = vadd.f32 %v3909_v35, %v3565_v29  ;;  %v3031_v39 = vadd.f32 %v2843_v2, %v6621_v5  ;;  %v5452_v35 = vld [vmem:[%s8354_s0 + $0x110] sm:$0xff] }
 0x312   :  { %v5582_v5 = vld [vmem:[%s8354_s0 + $0x111] sm:$0xff] }
 0x313   :  { %v4633_v18 = vadd.f32 %v4443_v19, %v4099_v20  ;;  %5387 = vmatmul.msk.f32.gmra.mxu1 %vm146_vm1, %v5709_v21  ;;  %5517 = vmatmul.msk.f32.gmra.mxu2 %vm146_vm1, %v5451_v28 }
 0x314   :  { %v4446_v23 = vpop.f32.mrf.mxu0 }
 0x315   :  { %v4701_v46 = vadd.f32 %v7603_v49, %v4633_v18  ;;  %5647 = vmatmul.msk.f32.gmra.mxu3 %vm146_vm1, %v5581_v57  ;;  %v5712_v57 = vld [vmem:[%s8354_s0 + $0x112] sm:$0xff] }
 0x316   :  { %v3378_v11 = vpop.f32.mrf.mxu2 }
 0x317   :  { %4765 = vst [vmem:[#allocation2 + $0x8] sm:$0xff] %v4701_v46  ;;  %v3566_v29 = vadd.f32 %v3378_v11, %v3031_v39  ;;  %5777 = vmatmul.msk.f32.gmra.mxu0 %vm146_vm1, %v5711_v45 }
 0x318   :  { %v2846_v19 = vpop.f32.mrf.mxu1  ;;  %v3912_v21 = vpop.f32.mrf.mxu3 }
 0x319   :  { %v4100_v28 = vadd.f32 %v3912_v21, %v3566_v29  ;;  %v3032_v18 = vadd.f32 %v2846_v19, %v6635_v9  ;;  %v5453_v29 = vld [vmem:[%s8354_s0 + $0x120] sm:$0xff] }
 0x31a   :  { %v5583_v9 = vld [vmem:[%s8354_s0 + $0x121] sm:$0xff] }
 0x31b   :  { %v4634_v2 = vadd.f32 %v4446_v23, %v4100_v28  ;;  %5388 = vmatmul.msk.f32.gmra.mxu1 %vm146_vm1, %v5710_v24  ;;  %5518 = vmatmul.msk.f32.gmra.mxu2 %vm146_vm1, %v5452_v35  ;;  %v5713_v28 = vld [vmem:[%s8354_s0 + $0x122] sm:$0xff] }
 0x31c   :  { %v4449_v20 = vpop.f32.mrf.mxu0 }
 0x31d   :  { %v4702_v39 = vadd.f32 %v7603_v49, %v4634_v2  ;;  %5648 = vmatmul.msk.f32.gmra.mxu3 %vm146_vm1, %v5582_v5 }
 0x31e   :  { %v3381_v46 = vpop.f32.mrf.mxu2 }
 0x31f   :  { %4766 = vst [vmem:[#allocation2 + $0x10] sm:$0xff] %v4702_v39  ;;  %v3567_v11 = vadd.f32 %v3381_v46, %v3032_v18  ;;  %5778 = vmatmul.msk.f32.gmra.mxu0 %vm146_vm1, %v5712_v57  ;;  %v5454_v46 = vld [vmem:[%s8354_s0 + $0x128] sm:$0xff] }
 0x320   :  { %v2849_v23 = vpop.f32.mrf.mxu1  ;;  %v3915_v24 = vpop.f32.mrf.mxu3 }
 0x321   :  { %v4101_v21 = vadd.f32 %v3915_v24, %v3567_v11  ;;  %v3033_v5 = vadd.f32 %v2849_v23, %v6649_v40  ;;  %v5584_v40 = vld [vmem:[%s8354_s0 + $0x129] sm:$0xff] }
 0x323   :  { %v4635_v19 = vadd.f32 %v4449_v20, %v4101_v21  ;;  %5389 = vmatmul.msk.f32.gmra.mxu1 %vm146_vm1, %v5711_v45  ;;  %5519 = vmatmul.msk.f32.gmra.mxu2 %vm146_vm1, %v5453_v29  ;;  %v5714_v29 = vld [vmem:[%s8354_s0 + $0x12a] sm:$0xff] }
 0x324   :  { %v4452_v35 = vpop.f32.mrf.mxu0 }
 0x325   :  { %v4703_v2 = vadd.f32 %v7603_v49, %v4635_v19  ;;  %5649 = vmatmul.msk.f32.gmra.mxu3 %vm146_vm1, %v5583_v9 }
 0x326   :  { %v3384_v18 = vpop.f32.mrf.mxu2 }
 0x327   :  { %4767 = vst [vmem:[#allocation2 + $0x18] sm:$0xff] %v4703_v2  ;;  %v3568_v39 = vadd.f32 %v3384_v18, %v3033_v5  ;;  %5779 = vmatmul.msk.f32.gmra.mxu0 %vm146_vm1, %v5713_v28  ;;  %v5455_v2 = vld [vmem:[%s8354_s0 + $0x138] sm:$0xff] }
 0x328   :  { %v2852_v20 = vpop.f32.mrf.mxu1  ;;  %v3918_v45 = vpop.f32.mrf.mxu3 }
 0x329   :  { %v4102_v11 = vadd.f32 %v3918_v45, %v3568_v39  ;;  %v3034_v21 = vadd.f32 %v2852_v20, %v6663_v25  ;;  %v5585_v25 = vld [vmem:[%s8354_s0 + $0x139] sm:$0xff] }
 0x32a   :  { %v5715_v45 = vld [vmem:[%s8354_s0 + $0x13a] sm:$0xff] }
 0x32b   :  { %v4636_v23 = vadd.f32 %v4452_v35, %v4102_v11  ;;  %5390 = vmatmul.msk.f32.gmra.mxu1 %vm146_vm1, %v5712_v57  ;;  %5520 = vmatmul.msk.f32.gmra.mxu2 %vm146_vm1, %v5454_v46 }
 0x32c   :  { %v4455_v24 = vpop.f32.mrf.mxu0 }
 0x32d   :  { %v4704_v9 = vadd.f32 %v7603_v49, %v4636_v23  ;;  %5650 = vmatmul.msk.f32.gmra.mxu3 %vm146_vm1, %v5584_v40 }
 0x32e   :  { %v3387_v19 = vpop.f32.mrf.mxu2 }
 0x32f   :  { %4768 = vst [vmem:[#allocation2 + $0x20] sm:$0xff] %v4704_v9  ;;  %v3569_v5 = vadd.f32 %v3387_v19, %v3034_v21  ;;  %5780 = vmatmul.msk.f32.gmra.mxu0 %vm146_vm1, %v5714_v29  ;;  %v5456_v21 = vld [vmem:[%s8354_s0 + $0x140] sm:$0xff] }
 0x330   :  { %v2855_v35 = vpop.f32.mrf.mxu1  ;;  %v3921_v57 = vpop.f32.mrf.mxu3 }
 0x331   :  { %v4103_v18 = vadd.f32 %v3921_v57, %v3569_v5  ;;  %v3035_v46 = vadd.f32 %v2855_v35, %v6677_v59  ;;  %v5586_v59 = vld [vmem:[%s8354_s0 + $0x141] sm:$0xff] }
 0x332   :  { %v5716_v35 = vld [vmem:[%s8354_s0 + $0x142] sm:$0xff] }
 0x333   :  { %v4637_v39 = vadd.f32 %v4455_v24, %v4103_v18  ;;  %5391 = vmatmul.msk.f32.gmra.mxu1 %vm146_vm1, %v5713_v28  ;;  %5521 = vmatmul.msk.f32.gmra.mxu2 %vm146_vm1, %v5455_v2 }
 0x334   :  { %v4458_v20 = vpop.f32.mrf.mxu0 }
 0x335   :  { %v4705_v11 = vadd.f32 %v7603_v49, %v4637_v39  ;;  %5651 = vmatmul.msk.f32.gmra.mxu3 %vm146_vm1, %v5585_v25 }
 0x336   :  { %v3390_v40 = vpop.f32.mrf.mxu2 }
 0x337   :  { %4769 = vst [vmem:[#allocation2 + $0x28] sm:$0xff] %v4705_v11  ;;  %v3570_v23 = vadd.f32 %v3390_v40, %v3035_v46  ;;  %5781 = vmatmul.msk.f32.gmra.mxu0 %vm146_vm1, %v5715_v45 }
 0x338   :  { %v2858_v24 = vpop.f32.mrf.mxu1  ;;  %v3924_v28 = vpop.f32.mrf.mxu3 }
 0x339   :  { %v4104_v9 = vadd.f32 %v3924_v28, %v3570_v23  ;;  %v3036_v57 = vadd.f32 %v2858_v24, %v6691_v51  ;;  %v5587_v51 = vld [vmem:[%s8354_s0 + $0x151] sm:$0xff] }
 0x33a   :  { %v5717_v23 = vld [vmem:[%s8354_s0 + $0x152] sm:$0xff] }
 0x33b   :  { %v4638_v19 = vadd.f32 %v4458_v20, %v4104_v9  ;;  %5392 = vmatmul.msk.f32.gmra.mxu1 %vm146_vm1, %v5714_v29  ;;  %5522 = vmatmul.msk.f32.gmra.mxu2 %vm146_vm1, %v5456_v21  ;;  %v5457_v20 = vld [vmem:[%s8354_s0 + $0x150] sm:$0xff] }
 0x33c   :  { %v4461_v5 = vpop.f32.mrf.mxu0 }
 0x33d   :  { %v4706_v2 = vadd.f32 %v7603_v49, %v4638_v19  ;;  %5652 = vmatmul.msk.f32.gmra.mxu3 %vm146_vm1, %v5586_v59  ;;  %v5458_v19 = vld [vmem:[%s8354_s0 + $0x158] sm:$0xff] }
 0x33e   :  { %v3393_v18 = vpop.f32.mrf.mxu2 }
 0x33f   :  { %4770 = vst [vmem:[#allocation2 + $0x30] sm:$0xff] %v4706_v2  ;;  %v3571_v25 = vadd.f32 %v3393_v18, %v3036_v57  ;;  %5782 = vmatmul.msk.f32.gmra.mxu0 %vm146_vm1, %v5716_v35  ;;  %v5718_v18 = vld [vmem:[%s8354_s0 + $0x15a] sm:$0xff] }
 0x340   :  { %v2861_v39 = vpop.f32.mrf.mxu1  ;;  %v3927_v29 = vpop.f32.mrf.mxu3 }
 0x341   :  { %v4105_v46 = vadd.f32 %v3927_v29, %v3571_v25  ;;  %v3037_v24 = vadd.f32 %v2861_v39, %v6705_v42  ;;  %v5588_v42 = vld [vmem:[%s8354_s0 + $0x159] sm:$0xff] }
 0x343   :  { %v4639_v11 = vadd.f32 %v4461_v5, %v4105_v46  ;;  %5393 = vmatmul.msk.f32.gmra.mxu1 %vm146_vm1, %v5715_v45  ;;  %5523 = vmatmul.msk.f32.gmra.mxu2 %vm146_vm1, %v5457_v20 }
 0x344   :  { %v4464_v40 = vpop.f32.mrf.mxu0 }
 0x345   :  { %v4707_v28 = vadd.f32 %v7603_v49, %v4639_v11  ;;  %5653 = vmatmul.msk.f32.gmra.mxu3 %vm146_vm1, %v5587_v51  ;;  %v5459_v51 = vld [vmem:[%s8354_s0 + $0x168] sm:$0xff] }
 0x346   :  { %v3396_v21 = vpop.f32.mrf.mxu2 }
 0x347   :  { %4771 = vst [vmem:[#allocation2 + $0x38] sm:$0xff] %v4707_v28  ;;  %v3572_v9 = vadd.f32 %v3396_v21, %v3037_v24  ;;  %5783 = vmatmul.msk.f32.gmra.mxu0 %vm146_vm1, %v5717_v23  ;;  %v5719_v28 = vld [vmem:[%s8354_s0 + $0x16a] sm:$0xff] }
 0x348   :  { %v2864_v59 = vpop.f32.mrf.mxu1  ;;  %v3930_v45 = vpop.f32.mrf.mxu3 }
 0x349   :  { %v4106_v5 = vadd.f32 %v3930_v45, %v3572_v9  ;;  %v3038_v25 = vadd.f32 %v2864_v59, %v6719_v17  ;;  %v5589_v17 = vld [vmem:[%s8354_s0 + $0x169] sm:$0xff] }
 0x34b   :  { %v4640_v57 = vadd.f32 %v4464_v40, %v4106_v5  ;;  %5394 = vmatmul.msk.f32.gmra.mxu1 %vm146_vm1, %v5716_v35  ;;  %5524 = vmatmul.msk.f32.gmra.mxu2 %vm146_vm1, %v5458_v19  ;;  %v5460_v5 = vld [vmem:[%s8354_s0 + $0x170] sm:$0xff] }
 0x34c   :  { %v4467_v2 = vpop.f32.mrf.mxu0 }
 0x34d   :  { %v4708_v39 = vadd.f32 %v7603_v49, %v4640_v57  ;;  %5654 = vmatmul.msk.f32.gmra.mxu3 %vm146_vm1, %v5588_v42 }
 0x34e   :  { %v3399_v29 = vpop.f32.mrf.mxu2 }
 0x34f   :  { %4772 = vst [vmem:[#allocation2 + $0x40] sm:$0xff] %v4708_v39  ;;  %v3573_v20 = vadd.f32 %v3399_v29, %v3038_v25  ;;  %5784 = vmatmul.msk.f32.gmra.mxu0 %vm146_vm1, %v5718_v18  ;;  %v5720_v25 = vld [vmem:[%s8354_s0 + $0x172] sm:$0xff] }
 0x350   :  { %v2867_v46 = vpop.f32.mrf.mxu1  ;;  %v3933_v35 = vpop.f32.mrf.mxu3 }
 0x351   :  { %v4107_v11 = vadd.f32 %v3933_v35, %v3573_v20  ;;  %v3039_v21 = vadd.f32 %v2867_v46, %v6733_v13  ;;  %v5590_v13 = vld [vmem:[%s8354_s0 + $0x171] sm:$0xff] }
 0x353   :  { %v4641_v40 = vadd.f32 %v4467_v2, %v4107_v11  ;;  %5395 = vmatmul.msk.f32.gmra.mxu1 %vm146_vm1, %v5717_v23  ;;  %5525 = vmatmul.msk.f32.gmra.mxu2 %vm146_vm1, %v5459_v51  ;;  %v5461_v51 = vld [vmem:[%s8354_s0 + $0x180] sm:$0xff] }
 0x354   :  { %v4470_v24 = vpop.f32.mrf.mxu0 }
 0x355   :  { %v4709_v9 = vadd.f32 %v7603_v49, %v4641_v40  ;;  %5655 = vmatmul.msk.f32.gmra.mxu3 %vm146_vm1, %v5589_v17 }
 0x356   :  { %v3402_v59 = vpop.f32.mrf.mxu2 }
 0x357   :  { %4773 = vst [vmem:[#allocation2 + $0x48] sm:$0xff] %v4709_v9  ;;  %v3574_v45 = vadd.f32 %v3402_v59, %v3039_v21  ;;  %5785 = vmatmul.msk.f32.gmra.mxu0 %vm146_vm1, %v5719_v28 }
 0x358   :  { %v2870_v19 = vpop.f32.mrf.mxu1  ;;  %v3936_v23 = vpop.f32.mrf.mxu3 }
 0x359   :  { %v4108_v42 = vadd.f32 %v3936_v23, %v3574_v45  ;;  %v3040_v39 = vadd.f32 %v2870_v19, %v6747_v15  ;;  %v5591_v15 = vld [vmem:[%s8354_s0 + $0x181] sm:$0xff] }
 0x35a   :  { %v5462_v23 = vld [vmem:[%s8354_s0 + $0x188] sm:$0xff] }
 0x35b   :  { %v4642_v57 = vadd.f32 %v4470_v24, %v4108_v42  ;;  %5396 = vmatmul.msk.f32.gmra.mxu1 %vm146_vm1, %v5718_v18  ;;  %5526 = vmatmul.msk.f32.gmra.mxu2 %vm146_vm1, %v5460_v5  ;;  %v5721_v24 = vld [vmem:[%s8354_s0 + $0x182] sm:$0xff] }
 0x35c   :  { %v4473_v2 = vpop.f32.mrf.mxu0 }
 0x35d   :  { %v4710_v29 = vadd.f32 %v7603_v49, %v4642_v57  ;;  %5656 = vmatmul.msk.f32.gmra.mxu3 %vm146_vm1, %v5590_v13  ;;  %v5722_v57 = vld [vmem:[%s8354_s0 + $0x18a] sm:$0xff] }
 0x35e   :  { %v3405_v20 = vpop.f32.mrf.mxu2 }
 0x35f   :  { %4774 = vst [vmem:[#allocation2 + $0x50] sm:$0xff] %v4710_v29  ;;  %v3575_v46 = vadd.f32 %v3405_v20, %v3040_v39  ;;  %5786 = vmatmul.msk.f32.gmra.mxu0 %vm146_vm1, %v5720_v25 }
 0x360   :  { %v2873_v35 = vpop.f32.mrf.mxu1  ;;  %v3939_v18 = vpop.f32.mrf.mxu3 }
 0x361   :  { %v4109_v11 = vadd.f32 %v3939_v18, %v3575_v46  ;;  %v3041_v21 = vadd.f32 %v2873_v35, %v6761_v16  ;;  %v5592_v16 = vld [vmem:[%s8354_s0 + $0x189] sm:$0xff]  ;;  %v5463_v35 = vld [vmem:[%s8354_s0 + $0x198] sm:$0xff] }
 0x363   :  { %v4643_v17 = vadd.f32 %v4473_v2, %v4109_v11  ;;  %5397 = vmatmul.msk.f32.gmra.mxu1 %vm146_vm1, %v5719_v28  ;;  %5527 = vmatmul.msk.f32.gmra.mxu2 %vm146_vm1, %v5461_v51 }
 0x364   :  { %v4476_v40 = vpop.f32.mrf.mxu0 }
 0x365   :  { %v4711_v9 = vadd.f32 %v7603_v49, %v4643_v17  ;;  %5657 = vmatmul.msk.f32.gmra.mxu3 %vm146_vm1, %v5591_v15  ;;  %v5723_v15 = vld [vmem:[%s8354_s0 + $0x19a] sm:$0xff] }
 0x366   :  { %v3408_v59 = vpop.f32.mrf.mxu2 }
 0x367   :  { %4775 = vst [vmem:[#allocation2 + $0x58] sm:$0xff] %v4711_v9  ;;  %v3576_v45 = vadd.f32 %v3408_v59, %v3041_v21  ;;  %5787 = vmatmul.msk.f32.gmra.mxu0 %vm146_vm1, %v5721_v24 }
 0x368   :  { %v2876_v19 = vpop.f32.mrf.mxu1  ;;  %v3942_v28 = vpop.f32.mrf.mxu3 }
 0x369   :  { %v4110_v5 = vadd.f32 %v3942_v28, %v3576_v45  ;;  %v3042_v2 = vadd.f32 %v2876_v19, %v6775_v53  ;;  %v5593_v53 = vld [vmem:[%s8354_s0 + $0x199] sm:$0xff] }
 0x36a   :  { %v5464_v45 = vld [vmem:[%s8354_s0 + $0x1a0] sm:$0xff] }
 0x36b   :  { %v4644_v42 = vadd.f32 %v4476_v40, %v4110_v5  ;;  %5398 = vmatmul.msk.f32.gmra.mxu1 %vm146_vm1, %v5720_v25  ;;  %5528 = vmatmul.msk.f32.gmra.mxu2 %vm146_vm1, %v5462_v23  ;;  %v5724_v5 = vld [vmem:[%s8354_s0 + $0x1a2] sm:$0xff] }
 0x36c   :  { %v4479_v13 = vpop.f32.mrf.mxu0 }
 0x36d   :  { %v4712_v39 = vadd.f32 %v7603_v49, %v4644_v42  ;;  %5658 = vmatmul.msk.f32.gmra.mxu3 %vm146_vm1, %v5592_v16 }
 0x36e   :  { %v3411_v29 = vpop.f32.mrf.mxu2 }
 0x36f   :  { %4776 = vst [vmem:[#allocation2 + $0x60] sm:$0xff] %v4712_v39  ;;  %v3577_v20 = vadd.f32 %v3411_v29, %v3042_v2  ;;  %5788 = vmatmul.msk.f32.gmra.mxu0 %vm146_vm1, %v5722_v57  ;;  %v5335_v29 = vld [vmem:[%s8354_s0 + $0x1ca] sm:$0xff] }
 0x370   :  { %v2879_v46 = vpop.f32.mrf.mxu1  ;;  %v3945_v25 = vpop.f32.mrf.mxu3 }
 0x371   :  { %v4111_v18 = vadd.f32 %v3945_v25, %v3577_v20  ;;  %v3043_v17 = vadd.f32 %v2879_v46, %v6791_v60  ;;  %v5594_v60 = vld [vmem:[%s8354_s0 + $0x1a1] sm:$0xff] }
 0x372   :  { %v5465_v20 = vld [vmem:[%s8354_s0 + $0x1e0] sm:$0xff] }
 0x373   :  { %v4645_v51 = vadd.f32 %v4479_v13, %v4111_v18  ;;  %5399 = vmatmul.msk.f32.gmra.mxu1 %vm146_vm1, %v5721_v24  ;;  %5529 = vmatmul.msk.f32.gmra.mxu2 %vm146_vm1, %v5463_v35  ;;  %v5595_v46 = vld [vmem:[%s8354_s0 + $0x1e1] sm:$0xff] }
 0x374   :  { %v4482_v11 = vpop.f32.mrf.mxu0  ;;  %v5725_v18 = vld [vmem:[%s8354_s0 + $0x1e2] sm:$0xff] }
 0x375   :  { %v4713_v40 = vadd.f32 %v7603_v49, %v4645_v51  ;;  %5659 = vmatmul.msk.f32.gmra.mxu3 %vm146_vm1, %v5593_v53 }
 0x376   :  { %v3414_v21 = vpop.f32.mrf.mxu2 }
 0x377   :  { %4777 = vst [vmem:[#allocation2 + $0x68] sm:$0xff] %v4713_v40  ;;  %v3578_v9 = vadd.f32 %v3414_v21, %v3043_v17  ;;  %5789 = vmatmul.msk.f32.gmra.mxu0 %vm146_vm1, %v5723_v15  ;;  %v5336_v21 = vld [vmem:[%s8354_s0 + $0x1d2] sm:$0xff] }
 0x378   :  { %v2882_v59 = vpop.f32.mrf.mxu1  ;;  %v3948_v24 = vpop.f32.mrf.mxu3 }
 0x379   :  { %v4112_v19 = vadd.f32 %v3948_v24, %v3578_v9  ;;  %v3044_v16 = vadd.f32 %v2882_v59, %v6810_v44  ;;  %v5466_v9 = vld [vmem:[%s8354_s0 + $0x1e8] sm:$0xff] }
 0x37a   :  { %v5596_v59 = vld [vmem:[%s8354_s0 + $0x1e9] sm:$0xff] }
 0x37b   :  { %v4646_v28 = vadd.f32 %v4482_v11, %v4112_v19  ;;  %5400 = vmatmul.msk.f32.gmra.mxu1 %vm146_vm1, %v5722_v57  ;;  %5530 = vmatmul.msk.f32.gmra.mxu2 %vm146_vm1, %v5464_v45  ;;  %v5726_v19 = vld [vmem:[%s8354_s0 + $0x1ea] sm:$0xff] }
 0x37c   :  { %v4485_v23 = vpop.f32.mrf.mxu0 }
 0x37d   :  { %v4714_v42 = vadd.f32 %v7603_v49, %v4646_v28  ;;  %5660 = vmatmul.msk.f32.gmra.mxu3 %vm146_vm1, %v5594_v60 }
 0x37e   :  { %v3417_v13 = vpop.f32.mrf.mxu2 }
 0x37f   :  { %4778 = vst [vmem:[#allocation2 + $0x70] sm:$0xff] %v4714_v42  ;;  %v3579_v2 = vadd.f32 %v3417_v13, %v3044_v16  ;;  %5790 = vmatmul.msk.f32.gmra.mxu0 %vm146_vm1, %v5724_v5  ;;  %v5467_v13 = vld [vmem:[%s8354_s0 + $0x1f8] sm:$0xff] }
 0x380   :  { %v2885_v39 = vpop.f32.mrf.mxu1  ;;  %v3951_v57 = vpop.f32.mrf.mxu3 }
 0x381   :  { %v4113_v44 = vadd.f32 %v3951_v57, %v3579_v2  ;;  %v3045_v53 = vadd.f32 %v2885_v39, %v6829_v1 }
 0x383   :  { %v4647_v25 = vadd.f32 %v4485_v23, %v4113_v44  ;;  %5401 = vmatmul.msk.f32.gmra.mxu1 %vm146_vm1, %v5335_v29  ;;  %5531 = vmatmul.msk.f32.gmra.mxu2 %vm146_vm1, %v5465_v20  ;;  %v5727_v29 = vld [vmem:[%s8354_s0 + $0x1fa] sm:$0xff] }
 0x384   :  { %v4488_v35 = vpop.f32.mrf.mxu0 }
 0x385   :  { %v4715_v51 = vadd.f32 %v7603_v49, %v4647_v25  ;;  %5661 = vmatmul.msk.f32.gmra.mxu3 %vm146_vm1, %v5595_v46 }
 0x386   :  { %v3420_v11 = vpop.f32.mrf.mxu2 }
 0x387   :  { %4779 = vst [vmem:[#allocation2 + $0x78] sm:$0xff] %v4715_v51  ;;  %v3580_v15 = vadd.f32 %v3420_v11, %v3045_v53  ;;  %5791 = vmatmul.msk.f32.gmra.mxu0 %vm146_vm1, %v5725_v18  ;;  %v5468_v53 = vld [vmem:[%s8354_s0 + $0x200] sm:$0xff] }
 0x388   :  { %v2888_v17 = vpop.f32.mrf.mxu1  ;;  %v3954_v40 = vpop.f32.mrf.mxu3 }
 0x389   :  { %v4114_v1 = vadd.f32 %v3954_v40, %v3580_v15  ;;  %v3046_v60 = vadd.f32 %v2888_v17, %v6845_v56  ;;  %v5597_v56 = vld [vmem:[%s8354_s0 + $0x1f9] sm:$0xff]  ;;  %v5728_v17 = vld [vmem:[%s8354_s0 + $0x202] sm:$0xff] }
 0x38b   :  { %v4648_v24 = vadd.f32 %v4488_v35, %v4114_v1  ;;  %5402 = vmatmul.msk.f32.gmra.mxu1 %vm146_vm1, %v5336_v21  ;;  %5532 = vmatmul.msk.f32.gmra.mxu2 %vm146_vm1, %v5466_v9 }
 0x38c   :  { %v4491_v45 = vpop.f32.mrf.mxu0 }
 0x38d   :  { %v4716_v28 = vadd.f32 %v7603_v49, %v4648_v24  ;;  %5662 = vmatmul.msk.f32.gmra.mxu3 %vm146_vm1, %v5596_v59 }
 0x38e   :  { %v3423_v23 = vpop.f32.mrf.mxu2 }
 0x38f   :  { %4780 = vst [vmem:[#allocation2 + $0x80] sm:$0xff] %v4716_v28  ;;  %v3581_v5 = vadd.f32 %v3423_v23, %v3046_v60  ;;  %5792 = vmatmul.msk.f32.gmra.mxu0 %vm146_vm1, %v5726_v19  ;;  %v5729_v23 = vld [vmem:[%s8354_s0 + $0x212] sm:$0xff] }
 0x390   :  { %v2891_v16 = vpop.f32.mrf.mxu1  ;;  %v3957_v42 = vpop.f32.mrf.mxu3 }
 0x391   :  { %v4115_v2 = vadd.f32 %v3957_v42, %v3581_v5  ;;  %v3047_v20 = vadd.f32 %v2891_v16, %v6861_v30  ;;  %v5598_v30 = vld [vmem:[%s8354_s0 + $0x201] sm:$0xff] }
 0x393   :  { %v4649_v39 = vadd.f32 %v4491_v45, %v4115_v2  ;;  %5403 = vmatmul.msk.f32.gmra.mxu1 %vm146_vm1, %v5725_v18  ;;  %5533 = vmatmul.msk.f32.gmra.mxu2 %vm146_vm1, %v5467_v13  ;;  %v5469_v45 = vld [vmem:[%s8354_s0 + $0x210] sm:$0xff] }
 0x394   :  { %v4494_v57 = vpop.f32.mrf.mxu0 }
 0x395   :  { %v4717_v44 = vadd.f32 %v7603_v49, %v4649_v39  ;;  %5663 = vmatmul.msk.f32.gmra.mxu3 %vm146_vm1, %v5597_v56  ;;  %v5470_v39 = vld [vmem:[%s8354_s0 + $0x218] sm:$0xff] }
 0x396   :  { %v3426_v46 = vpop.f32.mrf.mxu2 }
 0x397   :  { %4781 = vst [vmem:[#allocation2 + $0x88] sm:$0xff] %v4717_v44  ;;  %v3582_v25 = vadd.f32 %v3426_v46, %v3047_v20  ;;  %5793 = vmatmul.msk.f32.gmra.mxu0 %vm146_vm1, %v5727_v29  ;;  %v5730_v44 = vld [vmem:[%s8354_s0 + $0x21a] sm:$0xff] }
 0x398   :  { %v2894_v35 = vpop.f32.mrf.mxu1  ;;  %v3960_v18 = vpop.f32.mrf.mxu3 }
 0x399   :  { %v4116_v51 = vadd.f32 %v3960_v18, %v3582_v25  ;;  %v3048_v40 = vadd.f32 %v2894_v35, %v6877_v52  ;;  %v5599_v52 = vld [vmem:[%s8354_s0 + $0x211] sm:$0xff] }
 0x39b   :  { %v4650_v11 = vadd.f32 %v4494_v57, %v4116_v51  ;;  %5404 = vmatmul.msk.f32.gmra.mxu1 %vm146_vm1, %v5726_v19  ;;  %5534 = vmatmul.msk.f32.gmra.mxu2 %vm146_vm1, %v5468_v53 }
 0x39c   :  { %v4497_v15 = vpop.f32.mrf.mxu0 }
 0x39d   :  { %v4718_v21 = vadd.f32 %v7603_v49, %v4650_v11  ;;  %5664 = vmatmul.msk.f32.gmra.mxu3 %vm146_vm1, %v5598_v30  ;;  %v5471_v30 = vld [vmem:[%s8354_s0 + $0x228] sm:$0xff] }
 0x39e   :  { %v3429_v9 = vpop.f32.mrf.mxu2 }
 0x39f   :  { %4782 = vst [vmem:[#allocation2 + $0x90] sm:$0xff] %v4718_v21  ;;  %v3583_v1 = vadd.f32 %v3429_v9, %v3048_v40  ;;  %5794 = vmatmul.msk.f32.gmra.mxu0 %vm146_vm1, %v5728_v17  ;;  %v5731_v40 = vld [vmem:[%s8354_s0 + $0x22a] sm:$0xff] }
 0x3a0   :  { %v2897_v59 = vpop.f32.mrf.mxu1  ;;  %v3963_v24 = vpop.f32.mrf.mxu3 }
 0x3a1   :  { %v4117_v19 = vadd.f32 %v3963_v24, %v3583_v1  ;;  %v3049_v5 = vadd.f32 %v2897_v59, %v6893_v14  ;;  %v5600_v14 = vld [vmem:[%s8354_s0 + $0x219] sm:$0xff] }
 0x3a3   :  { %v4651_v60 = vadd.f32 %v4497_v15, %v4117_v19  ;;  %5405 = vmatmul.msk.f32.gmra.mxu1 %vm146_vm1, %v5727_v29  ;;  %5535 = vmatmul.msk.f32.gmra.mxu2 %vm146_vm1, %v5469_v45  ;;  %v5472_v19 = vld [vmem:[%s8354_s0 + $0x230] sm:$0xff] }
 0x3a4   :  { %v4500_v28 = vpop.f32.mrf.mxu0 }
 0x3a5   :  { %v4719_v16 = vadd.f32 %v7603_v49, %v4651_v60  ;;  %5665 = vmatmul.msk.f32.gmra.mxu3 %vm146_vm1, %v5599_v52 }
 0x3a6   :  { %v3432_v42 = vpop.f32.mrf.mxu2 }
 0x3a7   :  { %4783 = vst [vmem:[#allocation2 + $0x98] sm:$0xff] %v4719_v16  ;;  %v3584_v13 = vadd.f32 %v3432_v42, %v3049_v5  ;;  %5795 = vmatmul.msk.f32.gmra.mxu0 %vm146_vm1, %v5729_v23 }
 0x3a8   :  { %v2900_v2 = vpop.f32.mrf.mxu1  ;;  %v3966_v56 = vpop.f32.mrf.mxu3 }
 0x3a9   :  { %v4118_v57 = vadd.f32 %v3966_v56, %v3584_v13  ;;  %v3050_v46 = vadd.f32 %v2900_v2, %v6909_v6  ;;  %v5601_v6 = vld [vmem:[%s8354_s0 + $0x229] sm:$0xff] }
 0x3ab   :  { %v4652_v29 = vadd.f32 %v4500_v28, %v4118_v57  ;;  %5406 = vmatmul.msk.f32.gmra.mxu1 %vm146_vm1, %v5728_v17  ;;  %5536 = vmatmul.msk.f32.gmra.mxu2 %vm146_vm1, %v5470_v39  ;;  %v5473_v39 = vld [vmem:[%s8354_s0 + $0x240] sm:$0xff] }
 0x3ac   :  { %v4503_v20 = vpop.f32.mrf.mxu0 }
 0x3ad   :  { %v4720_v25 = vadd.f32 %v7603_v49, %v4652_v29  ;;  %5666 = vmatmul.msk.f32.gmra.mxu3 %vm146_vm1, %v5600_v14 }
 0x3ae   :  { %v3435_v35 = vpop.f32.mrf.mxu2 }
 0x3af   :  { %4784 = vst [vmem:[#allocation2 + $0xa0] sm:$0xff] %v4720_v25  ;;  %v3585_v18 = vadd.f32 %v3435_v35, %v3050_v46  ;;  %5796 = vmatmul.msk.f32.gmra.mxu0 %vm146_vm1, %v5730_v44 }
 0x3b0   :  { %v2903_v53 = vpop.f32.mrf.mxu1  ;;  %v3969_v51 = vpop.f32.mrf.mxu3 }
 0x3b1   :  { %v4119_v11 = vadd.f32 %v3969_v51, %v3585_v18  ;;  %v3051_v21 = vadd.f32 %v2903_v53, %v6925_v37  ;;  %v5602_v37 = vld [vmem:[%s8354_s0 + $0x231] sm:$0xff]  ;;  %v5474_v51 = vld [vmem:[%s8354_s0 + $0x248] sm:$0xff] }
 0x3b3   :  { %v4653_v15 = vadd.f32 %v4503_v20, %v4119_v11  ;;  %5407 = vmatmul.msk.f32.gmra.mxu1 %vm146_vm1, %v5729_v23  ;;  %5537 = vmatmul.msk.f32.gmra.mxu2 %vm146_vm1, %v5471_v30  ;;  %v5732_v23 = vld [vmem:[%s8354_s0 + $0x232] sm:$0xff]  ;;  %v5733_v20 = vld [vmem:[%s8354_s0 + $0x242] sm:$0xff] }
 0x3b4   :  { %v4506_v17 = vpop.f32.mrf.mxu0 }
 0x3b5   :  { %v4721_v9 = vadd.f32 %v7603_v49, %v4653_v15  ;;  %5667 = vmatmul.msk.f32.gmra.mxu3 %vm146_vm1, %v5601_v6  ;;  %v5734_v15 = vld [vmem:[%s8354_s0 + $0x24a] sm:$0xff] }
 0x3b6   :  { %v3438_v1 = vpop.f32.mrf.mxu2 }
 0x3b7   :  { %4785 = vst [vmem:[#allocation2 + $0xa8] sm:$0xff] %v4721_v9  ;;  %v3586_v59 = vadd.f32 %v3438_v1, %v3051_v21  ;;  %5797 = vmatmul.msk.f32.gmra.mxu0 %vm146_vm1, %v5731_v40 }
 0x3b8   :  { %v2906_v24 = vpop.f32.mrf.mxu1  ;;  %v3972_v45 = vpop.f32.mrf.mxu3 }
 0x3b9   :  { %v4120_v52 = vadd.f32 %v3972_v45, %v3586_v59  ;;  %v3052_v5 = vadd.f32 %v2906_v24, %v6941_v41  ;;  %v5603_v41 = vld [vmem:[%s8354_s0 + $0x241] sm:$0xff]  ;;  %v5475_v24 = vld [vmem:[%s8354_s0 + $0x258] sm:$0xff] }
 0x3bb   :  { %v4654_v60 = vadd.f32 %v4506_v17, %v4120_v52  ;;  %5408 = vmatmul.msk.f32.gmra.mxu1 %vm146_vm1, %v5730_v44  ;;  %5538 = vmatmul.msk.f32.gmra.mxu2 %vm146_vm1, %v5472_v19 }
 0x3bc   :  { %v4509_v28 = vpop.f32.mrf.mxu0 }
 0x3bd   :  { %v4722_v16 = vadd.f32 %v7603_v49, %v4654_v60  ;;  %5668 = vmatmul.msk.f32.gmra.mxu3 %vm146_vm1, %v5602_v37  ;;  %v5735_v37 = vld [vmem:[%s8354_s0 + $0x25a] sm:$0xff] }
 0x3be   :  { %v3441_v42 = vpop.f32.mrf.mxu2 }
 0x3bf   :  { %4786 = vst [vmem:[#allocation2 + $0xb0] sm:$0xff] %v4722_v16  ;;  %v3587_v13 = vadd.f32 %v3441_v42, %v3052_v5  ;;  %5798 = vmatmul.msk.f32.gmra.mxu0 %vm146_vm1, %v5732_v23 }
 0x3c0   :  { %v2909_v2 = vpop.f32.mrf.mxu1  ;;  %v3975_v56 = vpop.f32.mrf.mxu3 }
 0x3c1   :  { %v4121_v57 = vadd.f32 %v3975_v56, %v3587_v13  ;;  %v3053_v44 = vadd.f32 %v2909_v2, %v6957_v0  ;;  %v5604_v0 = vld [vmem:[%s8354_s0 + $0x249] sm:$0xff]  ;;  %v5476_v13 = vld [vmem:[%s8354_s0 + $0x260] sm:$0xff] }
 0x3c3   :  { %v4655_v14 = vadd.f32 %v4509_v28, %v4121_v57  ;;  %5409 = vmatmul.msk.f32.gmra.mxu1 %vm146_vm1, %v5731_v40  ;;  %5539 = vmatmul.msk.f32.gmra.mxu2 %vm146_vm1, %v5473_v39  ;;  %v5736_v57 = vld [vmem:[%s8354_s0 + $0x262] sm:$0xff] }
 0x3c4   :  { %v4512_v29 = vpop.f32.mrf.mxu0 }
 0x3c5   :  { %v4723_v46 = vadd.f32 %v7603_v49, %v4655_v14  ;;  %5669 = vmatmul.msk.f32.gmra.mxu3 %vm146_vm1, %v5603_v41 }
 0x3c6   :  { %v3444_v25 = vpop.f32.mrf.mxu2 }
 0x3c7   :  { %4787 = vst [vmem:[#allocation2 + $0xb8] sm:$0xff] %v4723_v46  ;;  %v3588_v35 = vadd.f32 %v3444_v25, %v3053_v44  ;;  %5799 = vmatmul.msk.f32.gmra.mxu0 %vm146_vm1, %v5733_v20  ;;  %v5477_v25 = vld [vmem:[%s8354_s0 + $0x270] sm:$0xff] }
 0x3c8   :  { %v2912_v18 = vpop.f32.mrf.mxu1  ;;  %v3978_v53 = vpop.f32.mrf.mxu3 }
 0x3c9   :  { %v4122_v30 = vadd.f32 %v3978_v53, %v3588_v35  ;;  %v3054_v17 = vadd.f32 %v2912_v18, %v6973_v22  ;;  %v5605_v22 = vld [vmem:[%s8354_s0 + $0x259] sm:$0xff] }
 0x3cb   :  { %v4656_v11 = vadd.f32 %v4512_v29, %v4122_v30  ;;  %5410 = vmatmul.msk.f32.gmra.mxu1 %vm146_vm1, %v5732_v23  ;;  %5540 = vmatmul.msk.f32.gmra.mxu2 %vm146_vm1, %v5474_v51  ;;  %v5737_v51 = vld [vmem:[%s8354_s0 + $0x272] sm:$0xff] }
 0x3cc   :  { %v4515_v6 = vpop.f32.mrf.mxu0 }
 0x3cd   :  { %v4724_v40 = vadd.f32 %v7603_v49, %v4656_v11  ;;  %5670 = vmatmul.msk.f32.gmra.mxu3 %vm146_vm1, %v5604_v0 }
 0x3ce   :  { %v3447_v21 = vpop.f32.mrf.mxu2 }
 0x3cf   :  { %4788 = vst [vmem:[#allocation2 + $0xc0] sm:$0xff] %v4724_v40  ;;  %v3589_v9 = vadd.f32 %v3447_v21, %v3054_v17  ;;  %5800 = vmatmul.msk.f32.gmra.mxu0 %vm146_vm1, %v5734_v15  ;;  %v5478_v40 = vld [vmem:[%s8354_s0 + $0x278] sm:$0xff] }
 0x3d0   :  { %v2915_v1 = vpop.f32.mrf.mxu1  ;;  %v3981_v59 = vpop.f32.mrf.mxu3 }
 0x3d1   :  { %v4123_v45 = vadd.f32 %v3981_v59, %v3589_v9  ;;  %v3055_v60 = vadd.f32 %v2915_v1, %v6989_v34  ;;  %v5606_v34 = vld [vmem:[%s8354_s0 + $0x261] sm:$0xff] }
 0x3d2   :  { %v5738_v59 = vld [vmem:[%s8354_s0 + $0x27a] sm:$0xff] }
 0x3d3   :  { %v4657_v19 = vadd.f32 %v4515_v6, %v4123_v45  ;;  %5411 = vmatmul.msk.f32.gmra.mxu1 %vm146_vm1, %v5733_v20  ;;  %5541 = vmatmul.msk.f32.gmra.mxu2 %vm146_vm1, %v5475_v24 }
 0x3d4   :  { %v4518_v52 = vpop.f32.mrf.mxu0 }
 0x3d5   :  { %v4725_v28 = vadd.f32 %v7603_v49, %v4657_v19  ;;  %5671 = vmatmul.msk.f32.gmra.mxu3 %vm146_vm1, %v5605_v22 }
 0x3d6   :  { %v3450_v23 = vpop.f32.mrf.mxu2 }
 0x3d7   :  { %4789 = vst [vmem:[#allocation2 + $0xc8] sm:$0xff] %v4725_v28  ;;  %v3590_v5 = vadd.f32 %v3450_v23, %v3055_v60  ;;  %5801 = vmatmul.msk.f32.gmra.mxu0 %vm146_vm1, %v5735_v37  ;;  %v5479_v60 = vld [vmem:[%s8354_s0 + $0x288] sm:$0xff] }
 0x3d8   :  { %v2918_v16 = vpop.f32.mrf.mxu1  ;;  %v3984_v42 = vpop.f32.mrf.mxu3 }
 0x3d9   :  { %v4124_v2 = vadd.f32 %v3984_v42, %v3590_v5  ;;  %v3056_v41 = vadd.f32 %v2918_v16, %v7005_v43  ;;  %v5607_v43 = vld [vmem:[%s8354_s0 + $0x271] sm:$0xff] }
 0x3da   :  { %v5739_v16 = vld [vmem:[%s8354_s0 + $0x28a] sm:$0xff] }
 0x3db   :  { %v4658_v56 = vadd.f32 %v4518_v52, %v4124_v2  ;;  %5412 = vmatmul.msk.f32.gmra.mxu1 %vm146_vm1, %v5734_v15  ;;  %5542 = vmatmul.msk.f32.gmra.mxu2 %vm146_vm1, %v5476_v13 }
 0x3dc   :  { %v4521_v39 = vpop.f32.mrf.mxu0 }
 0x3dd   :  { %v4726_v14 = vadd.f32 %v7603_v49, %v4658_v56  ;;  %5672 = vmatmul.msk.f32.gmra.mxu3 %vm146_vm1, %v5606_v34 }
 0x3de   :  { %v3453_v29 = vpop.f32.mrf.mxu2 }
 0x3df   :  { %4790 = vst [vmem:[#allocation2 + $0xd0] sm:$0xff] %v4726_v14  ;;  %v3591_v20 = vadd.f32 %v3453_v29, %v3056_v41  ;;  %5802 = vmatmul.msk.f32.gmra.mxu0 %vm146_vm1, %v5736_v57  ;;  %v5740_v29 = vld [vmem:[%s8354_s0 + $0x292] sm:$0xff] }
 0x3e0   :  { %v2921_v44 = vpop.f32.mrf.mxu1  ;;  %v3987_v46 = vpop.f32.mrf.mxu3 }
 0x3e1   :  { %v4125_v35 = vadd.f32 %v3987_v46, %v3591_v20  ;;  %v3057_v30 = vadd.f32 %v2921_v44, %v7021_v54  ;;  %v5608_v54 = vld [vmem:[%s8354_s0 + $0x279] sm:$0xff] }
 0x3e2   :  { %v8073_v44 = vld [vmem:[%s8356_s2] ss:$0 sm:$0xff] }
 0x3e3   :  { %v4659_v18 = vadd.f32 %v4521_v39, %v4125_v35  ;;  %5413 = vmatmul.msk.f32.gmra.mxu1 %vm146_vm1, %v5735_v37  ;;  %5543 = vmatmul.msk.f32.gmra.mxu2 %vm146_vm1, %v5477_v25 }
 0x3e4   :  { %v4524_v53 = vpop.f32.mrf.mxu0 }
 0x3e5   :  { %v4727_v0 = vadd.f32 %v7603_v49, %v4659_v18  ;;  %5673 = vmatmul.msk.f32.gmra.mxu3 %vm146_vm1, %v5607_v43 }
 0x3e6   :  { %v3456_v11 = vpop.f32.mrf.mxu2 }
 0x3e7   :  { %4791 = vst [vmem:[#allocation2 + $0xd8] sm:$0xff] %v4727_v0  ;;  %v3592_v6 = vadd.f32 %v3456_v11, %v3057_v30  ;;  %5803 = vmatmul.msk.f32.gmra.mxu0 %vm146_vm1, %v5737_v51  ;;  %v5741_v11 = vld [vmem:[%s8354_s0 + $0x2a2] sm:$0xff] }
 0x3e8   :  { %v2924_v15 = vpop.f32.mrf.mxu1  ;;  %v3990_v17 = vpop.f32.mrf.mxu3 }
 0x3e9   :  { %v4126_v21 = vadd.f32 %v3990_v17, %v3592_v6  ;;  %v3058_v24 = vadd.f32 %v2924_v15, %v7037_v61  ;;  %v5609_v61 = vld [vmem:[%s8354_s0 + $0x289] sm:$0xff] }
 0x3eb   :  { %v4660_v9 = vadd.f32 %v4524_v53, %v4126_v21  ;;  %5414 = vmatmul.msk.f32.gmra.mxu1 %vm146_vm1, %v5736_v57  ;;  %5544 = vmatmul.msk.f32.gmra.mxu2 %vm146_vm1, %v5478_v40  ;;  %v5480_v57 = vld [vmem:[%s8354_s0 + $0x290] sm:$0xff] }
 0x3ec   :  { %v4527_v1 = vpop.f32.mrf.mxu0 }
 0x3ed   :  { %v4728_v45 = vadd.f32 %v7603_v49, %v4660_v9  ;;  %5674 = vmatmul.msk.f32.gmra.mxu3 %vm146_vm1, %v5608_v54  ;;  %v5482_v9 = vld [vmem:[%s8354_s0 + $0x2a8] sm:$0xff] }
 0x3ee   :  { %v3459_v22 = vpop.f32.mrf.mxu2 }
 0x3ef   :  { %4792 = vst [vmem:[#allocation2 + $0xe0] sm:$0xff] %v4728_v45  ;;  %v3593_v19 = vadd.f32 %v3459_v22, %v3058_v24  ;;  %5804 = vmatmul.msk.f32.gmra.mxu0 %vm146_vm1, %v5738_v59  ;;  %v5742_v45 = vld [vmem:[%s8354_s0 + $0x2aa] sm:$0xff] }
 0x3f0   :  { %v2927_v52 = vpop.f32.mrf.mxu1  ;;  %v3993_v37 = vpop.f32.mrf.mxu3 }
 0x3f1   :  { %v4127_v28 = vadd.f32 %v3993_v37, %v3593_v19  ;;  %v3059_v42 = vadd.f32 %v2927_v52, %v7053_v7  ;;  %v5610_v7 = vld [vmem:[%s8354_s0 + $0x291] sm:$0xff] }
 0x3f3   :  { %v4661_v23 = vadd.f32 %v4527_v1, %v4127_v28  ;;  %5415 = vmatmul.msk.f32.gmra.mxu1 %vm146_vm1, %v5737_v51  ;;  %5545 = vmatmul.msk.f32.gmra.mxu2 %vm146_vm1, %v5479_v60  ;;  %v5611_v51 = vld [vmem:[%s8354_s0 + $0x2a1] sm:$0xff] }
 0x3f4   :  { %v4530_v5 = vpop.f32.mrf.mxu0 }
 0x3f5   :  { %v4729_v13 = vadd.f32 %v7603_v49, %v4661_v23  ;;  %5675 = vmatmul.msk.f32.gmra.mxu3 %vm146_vm1, %v5609_v61  ;;  %v5483_v61 = vld [vmem:[%s8354_s0 + $0x2b8] sm:$0xff] }
 0x3f6   :  { %v3462_v2 = vpop.f32.mrf.mxu2 }
 0x3f7   :  { %4793 = vst [vmem:[#allocation2 + $0xe8] sm:$0xff] %v4729_v13  ;;  %v3594_v34 = vadd.f32 %v3462_v2, %v3059_v42  ;;  %5805 = vmatmul.msk.f32.gmra.mxu0 %vm146_vm1, %v5739_v16  ;;  %v5743_v42 = vld [vmem:[%s8354_s0 + $0x2ba] sm:$0xff] }
 0x3f8   :  { %v2930_v56 = vpop.f32.mrf.mxu1  ;;  %v3996_v39 = vpop.f32.mrf.mxu3 }
 0x3f9   :  { %v4128_v41 = vadd.f32 %v3996_v39, %v3594_v34  ;;  %v3060_v20 = vadd.f32 %v2930_v56, %v7069_v26  ;;  %v5481_v26 = vld [vmem:[%s8354_s0 + $0x2a0] sm:$0xff] }
 0x3fb   :  { %v4662_v14 = vadd.f32 %v4530_v5, %v4128_v41  ;;  %5416 = vmatmul.msk.f32.gmra.mxu1 %vm146_vm1, %v5738_v59  ;;  %5546 = vmatmul.msk.f32.gmra.mxu2 %vm146_vm1, %v5480_v57  ;;  %v5484_v41 = vld [vmem:[%s8354_s0 + $0x2c0] sm:$0xff] }
 0x3fc   :  { %v4533_v49 = vpop.f32.mrf.mxu0 }
 0x3fd   :  { %v4730_v46 = vadd.f32 %v8073_v44, %v4662_v14  ;;  %5676 = vmatmul.msk.f32.gmra.mxu3 %vm146_vm1, %v5610_v7 }
 0x3fe   :  { %v3465_v25 = vpop.f32.mrf.mxu2 }
 0x3ff   :  { %4794 = vst [vmem:[#allocation2 + $0xf0] sm:$0xff] %v4730_v46  ;;  %v3595_v35 = vadd.f32 %v3465_v25, %v3060_v20  ;;  %5806 = vmatmul.msk.f32.gmra.mxu0 %vm146_vm1, %v5740_v29 }
 0x400   :  { %v2933_v43 = vpop.f32.mrf.mxu1  ;;  %v3999_v18 = vpop.f32.mrf.mxu3 }
 0x401   :  { %v4129_v53 = vadd.f32 %v3999_v18, %v3595_v35  ;;  %v3061_v6 = vadd.f32 %v2933_v43, %v7085_v47  ;;  %v5612_v47 = vld [vmem:[%s8354_s0 + $0x2a9] sm:$0xff] }
 0x403   :  { %v4663_v30 = vadd.f32 %v4533_v49, %v4129_v53  ;;  %5417 = vmatmul.msk.f32.gmra.mxu1 %vm146_vm1, %v5739_v16  ;;  %5547 = vmatmul.msk.f32.gmra.mxu2 %vm146_vm1, %v5481_v26  ;;  %v5485_v26 = vld [vmem:[%s8354_s0 + $0x2d0] sm:$0xff] }
 0x404   :  { %v4536_v0 = vpop.f32.mrf.mxu0 }
 0x405   :  { %v4731_v15 = vadd.f32 %v8073_v44, %v4663_v30  ;;  %5677 = vmatmul.msk.f32.gmra.mxu3 %vm146_vm1, %v5611_v51 }
 0x406   :  { %v3468_v17 = vpop.f32.mrf.mxu2 }
 0x407   :  { %4795 = vst [vmem:[#allocation2 + $0xf8] sm:$0xff] %v4731_v15  ;;  %v3596_v40 = vadd.f32 %v3468_v17, %v3061_v6  ;;  %5807 = vmatmul.msk.f32.gmra.mxu0 %vm146_vm1, %v5741_v11 }
 0x408   :  { %v2936_v21 = vpop.f32.mrf.mxu1  ;;  %v4002_v54 = vpop.f32.mrf.mxu3 }
 0x409   :  { %v4130_v1 = vadd.f32 %v4002_v54, %v3596_v40  ;;  %v3062_v22 = vadd.f32 %v2936_v21, %v7101_v3  ;;  %v5613_v3 = vld [vmem:[%s8354_s0 + $0x2b9] sm:$0xff] }
 0x40a   :  { %v5486_v54 = vld [vmem:[%s8354_s0 + $0x2d8] sm:$0xff] }
 0x40b   :  { %v4664_v59 = vadd.f32 %v4536_v0, %v4130_v1  ;;  %5418 = vmatmul.msk.f32.gmra.mxu1 %vm146_vm1, %v5740_v29  ;;  %5548 = vmatmul.msk.f32.gmra.mxu2 %vm146_vm1, %v5482_v9  ;;  %v5744_v29 = vld [vmem:[%s8354_s0 + $0x2c2] sm:$0xff]  ;;  %v5745_v0 = vld [vmem:[%s8354_s0 + $0x2d2] sm:$0xff] }
 0x40c   :  { %v4539_v24 = vpop.f32.mrf.mxu0 }
 0x40d   :  { %v4732_v19 = vadd.f32 %v8073_v44, %v4664_v59  ;;  %5678 = vmatmul.msk.f32.gmra.mxu3 %vm146_vm1, %v5612_v47  ;;  %v5746_v59 = vld [vmem:[%s8354_s0 + $0x2da] sm:$0xff] }
 0x40e   :  { %v3471_v52 = vpop.f32.mrf.mxu2 }
 0x40f   :  { %4796 = vst [vmem:[#allocation2 + $0x100] sm:$0xff] %v4732_v19  ;;  %v3597_v37 = vadd.f32 %v3471_v52, %v3062_v22  ;;  %5808 = vmatmul.msk.f32.gmra.mxu0 %vm146_vm1, %v5742_v45 }
 0x410   :  { %v2939_v60 = vpop.f32.mrf.mxu1  ;;  %v4005_v28 = vpop.f32.mrf.mxu3 }
 0x411   :  { %v4131_v23 = vadd.f32 %v4005_v28, %v3597_v37  ;;  %v3063_v13 = vadd.f32 %v2939_v60, %v7117_v12  ;;  %v5614_v12 = vld [vmem:[%s8354_s0 + $0x2c1] sm:$0xff] }
 0x412   :  { %v5487_v60 = vld [vmem:[%s8354_s0 + $0x2e8] sm:$0xff] }
 0x413   :  { %v4665_v5 = vadd.f32 %v4539_v24, %v4131_v23  ;;  %5419 = vmatmul.msk.f32.gmra.mxu1 %vm146_vm1, %v5741_v11  ;;  %5549 = vmatmul.msk.f32.gmra.mxu2 %vm146_vm1, %v5483_v61 }
 0x414   :  { %v4542_v16 = vpop.f32.mrf.mxu0 }
 0x415   :  { %v4733_v2 = vadd.f32 %v8073_v44, %v4665_v5  ;;  %5679 = vmatmul.msk.f32.gmra.mxu3 %vm146_vm1, %v5613_v3  ;;  %v5747_v3 = vld [vmem:[%s8354_s0 + $0x2ea] sm:$0xff] }
 0x416   :  { %v3474_v34 = vpop.f32.mrf.mxu2 }
 0x417   :  { %4797 = vst [vmem:[#allocation2 + $0x108] sm:$0xff] %v4733_v2  ;;  %v3598_v56 = vadd.f32 %v3474_v34, %v3063_v13  ;;  %5809 = vmatmul.msk.f32.gmra.mxu0 %vm146_vm1, %v5743_v42 }
 0x418   :  { %v2942_v39 = vpop.f32.mrf.mxu1  ;;  %v4008_v57 = vpop.f32.mrf.mxu3 }
 0x419   :  { %v4132_v7 = vadd.f32 %v4008_v57, %v3598_v56  ;;  %v3064_v20 = vadd.f32 %v2942_v39, %v7133_v50  ;;  %v5615_v50 = vld [vmem:[%s8354_s0 + $0x2d1] sm:$0xff] }
 0x41a   :  { %v5488_v56 = vld [vmem:[%s8354_s0 + $0x2f0] sm:$0xff] }
 0x41b   :  { %v4666_v14 = vadd.f32 %v4542_v16, %v4132_v7  ;;  %5420 = vmatmul.msk.f32.gmra.mxu1 %vm146_vm1, %v5742_v45  ;;  %5550 = vmatmul.msk.f32.gmra.mxu2 %vm146_vm1, %v5484_v41  ;;  %v5748_v7 = vld [vmem:[%s8354_s0 + $0x2f2] sm:$0xff] }
 0x41c   :  { %v4545_v49 = vpop.f32.mrf.mxu0 }
 0x41d   :  { %v4734_v46 = vadd.f32 %v8073_v44, %v4666_v14  ;;  %5680 = vmatmul.msk.f32.gmra.mxu3 %vm146_vm1, %v5614_v12 }
 0x41e   :  { %v3477_v25 = vpop.f32.mrf.mxu2 }
 0x41f   :  { %4798 = vst [vmem:[#allocation2 + $0x110] sm:$0xff] %v4734_v46  ;;  %v3599_v35 = vadd.f32 %v3477_v25, %v3064_v20  ;;  %5810 = vmatmul.msk.f32.gmra.mxu0 %vm146_vm1, %v5744_v29  ;;  %v5489_v25 = vld [vmem:[%s8354_s0 + $0x300] sm:$0xff] }
 0x420   :  { %v2945_v43 = vpop.f32.mrf.mxu1  ;;  %v4011_v18 = vpop.f32.mrf.mxu3 }
 0x421   :  { %v4133_v53 = vadd.f32 %v4011_v18, %v3599_v35  ;;  %v3065_v11 = vadd.f32 %v2945_v43, %v7149_v8  ;;  %v5616_v8 = vld [vmem:[%s8354_s0 + $0x2d9] sm:$0xff] }
 0x423   :  { %v4667_v51 = vadd.f32 %v4545_v49, %v4133_v53  ;;  %5421 = vmatmul.msk.f32.gmra.mxu1 %vm146_vm1, %v5743_v42  ;;  %5551 = vmatmul.msk.f32.gmra.mxu2 %vm146_vm1, %v5485_v26  ;;  %v5749_v26 = vld [vmem:[%s8354_s0 + $0x302] sm:$0xff] }
 0x424   :  { %v4548_v30 = vpop.f32.mrf.mxu0 }
 0x425   :  { %v4735_v6 = vadd.f32 %v8073_v44, %v4667_v51  ;;  %5681 = vmatmul.msk.f32.gmra.mxu3 %vm146_vm1, %v5615_v50 }
 0x426   :  { %v3480_v15 = vpop.f32.mrf.mxu2 }
 0x427   :  { %4799 = vst [vmem:[#allocation2 + $0x118] sm:$0xff] %v4735_v6  ;;  %v3600_v17 = vadd.f32 %v3480_v15, %v3065_v11  ;;  %5811 = vmatmul.msk.f32.gmra.mxu0 %vm146_vm1, %v5745_v0  ;;  %v5490_v6 = vld [vmem:[%s8354_s0 + $0x308] sm:$0xff] }
 0x428   :  { %v2948_v40 = vpop.f32.mrf.mxu1  ;;  %v4014_v21 = vpop.f32.mrf.mxu3 }
 0x429   :  { %v4134_v9 = vadd.f32 %v4014_v21, %v3600_v17  ;;  %v3066_v24 = vadd.f32 %v2948_v40, %v7165_v36  ;;  %v5617_v36 = vld [vmem:[%s8354_s0 + $0x2e9] sm:$0xff] }
 0x42a   :  { %v5750_v21 = vld [vmem:[%s8354_s0 + $0x30a] sm:$0xff] }
 0x42b   :  { %v4668_v1 = vadd.f32 %v4548_v30, %v4134_v9  ;;  %5422 = vmatmul.msk.f32.gmra.mxu1 %vm146_vm1, %v5744_v29  ;;  %5552 = vmatmul.msk.f32.gmra.mxu2 %vm146_vm1, %v5486_v54 }
 0x42c   :  { %v4551_v47 = vpop.f32.mrf.mxu0 }
 0x42d   :  { %v4736_v45 = vadd.f32 %v8073_v44, %v4668_v1  ;;  %5682 = vmatmul.msk.f32.gmra.mxu3 %vm146_vm1, %v5616_v8 }
 0x42e   :  { %v3483_v22 = vpop.f32.mrf.mxu2 }
 0x42f   :  { %4800 = vst [vmem:[#allocation2 + $0x120] sm:$0xff] %v4736_v45  ;;  %v3601_v19 = vadd.f32 %v3483_v22, %v3066_v24  ;;  %5812 = vmatmul.msk.f32.gmra.mxu0 %vm146_vm1, %v5746_v59  ;;  %v5491_v24 = vld [vmem:[%s8354_s0 + $0x318] sm:$0xff] }
 0x430   :  { %v2951_v52 = vpop.f32.mrf.mxu1  ;;  %v4017_v37 = vpop.f32.mrf.mxu3 }
 0x431   :  { %v4135_v28 = vadd.f32 %v4017_v37, %v3601_v19  ;;  %v3067_v5 = vadd.f32 %v2951_v52, %v7181_v31  ;;  %v5618_v31 = vld [vmem:[%s8354_s0 + $0x2f1] sm:$0xff]  ;;  %v5751_v52 = vld [vmem:[%s8354_s0 + $0x31a] sm:$0xff] }
 0x433   :  { %v4669_v61 = vadd.f32 %v4551_v47, %v4135_v28  ;;  %5423 = vmatmul.msk.f32.gmra.mxu1 %vm146_vm1, %v5745_v0  ;;  %5553 = vmatmul.msk.f32.gmra.mxu2 %vm146_vm1, %v5487_v60 }
 0x434   :  { %v4554_v23 = vpop.f32.mrf.mxu0 }
 0x435   :  { %v4737_v16 = vadd.f32 %v8073_v44, %v4669_v61  ;;  %5683 = vmatmul.msk.f32.gmra.mxu3 %vm146_vm1, %v5617_v36 }
 0x436   :  { %v3486_v42 = vpop.f32.mrf.mxu2 }
 0x437   :  { %4801 = vst [vmem:[#allocation2 + $0x128] sm:$0xff] %v4737_v16  ;;  %v3602_v13 = vadd.f32 %v3486_v42, %v3067_v5  ;;  %5813 = vmatmul.msk.f32.gmra.mxu0 %vm146_vm1, %v5747_v3 }
 0x438   :  { %v2954_v2 = vpop.f32.mrf.mxu1  ;;  %v4020_v34 = vpop.f32.mrf.mxu3 }
 0x439   :  { %v4136_v39 = vadd.f32 %v4020_v34, %v3602_v13  ;;  %v3068_v12 = vadd.f32 %v2954_v2, %v7197_v62  ;;  %v5619_v62 = vld [vmem:[%s8354_s0 + $0x301] sm:$0xff] }
 0x43a   :  { %v5752_v13 = vld [vmem:[%s8354_s0 + $0x322] sm:$0xff] }
 0x43b   :  { %v4670_v57 = vadd.f32 %v4554_v23, %v4136_v39  ;;  %5424 = vmatmul.msk.f32.gmra.mxu1 %vm146_vm1, %v5746_v59  ;;  %5554 = vmatmul.msk.f32.gmra.mxu2 %vm146_vm1, %v5488_v56 }
 0x43c   :  { %v4557_v41 = vpop.f32.mrf.mxu0 }
 0x43d   :  { %v4738_v14 = vadd.f32 %v8073_v44, %v4670_v57  ;;  %5684 = vmatmul.msk.f32.gmra.mxu3 %vm146_vm1, %v5618_v31 }
 0x43e   :  { %v3489_v49 = vpop.f32.mrf.mxu2 }
 0x43f   :  { %4802 = vst [vmem:[#allocation2 + $0x130] sm:$0xff] %v4738_v14  ;;  %v3603_v29 = vadd.f32 %v3489_v49, %v3068_v12  ;;  %5814 = vmatmul.msk.f32.gmra.mxu0 %vm146_vm1, %v5748_v7  ;;  %v5753_v49 = vld [vmem:[%s8354_s0 + $0x332] sm:$0xff] }
 0x440   :  { %v2957_v20 = vpop.f32.mrf.mxu1  ;;  %v4023_v46 = vpop.f32.mrf.mxu3 }
 0x441   :  { %v4137_v35 = vadd.f32 %v4023_v46, %v3603_v29  ;;  %v3069_v53 = vadd.f32 %v2957_v20, %v7213_v58  ;;  %v5620_v58 = vld [vmem:[%s8354_s0 + $0x309] sm:$0xff] }
 0x443   :  { %v4671_v43 = vadd.f32 %v4557_v41, %v4137_v35  ;;  %5425 = vmatmul.msk.f32.gmra.mxu1 %vm146_vm1, %v5747_v3  ;;  %5555 = vmatmul.msk.f32.gmra.mxu2 %vm146_vm1, %v5489_v25  ;;  %v5492_v3 = vld [vmem:[%s8354_s0 + $0x320] sm:$0xff]  ;;  %v5493_v41 = vld [vmem:[%s8354_s0 + $0x330] sm:$0xff] }
 0x444   :  { %v4560_v18 = vpop.f32.mrf.mxu0 }
 0x445   :  { %v4739_v50 = vadd.f32 %v8073_v44, %v4671_v43  ;;  %5685 = vmatmul.msk.f32.gmra.mxu3 %vm146_vm1, %v5619_v62  ;;  %v5494_v43 = vld [vmem:[%s8354_s0 + $0x338] sm:$0xff] }
 0x446   :  { %v3492_v51 = vpop.f32.mrf.mxu2 }
 0x447   :  { %4803 = vst [vmem:[#allocation2 + $0x138] sm:$0xff] %v4739_v50  ;;  %v3604_v30 = vadd.f32 %v3492_v51, %v3069_v53  ;;  %5815 = vmatmul.msk.f32.gmra.mxu0 %vm146_vm1, %v5749_v26  ;;  %v5754_v50 = vld [vmem:[%s8354_s0 + $0x33a] sm:$0xff] }
 0x448   :  { %v2960_v0 = vpop.f32.mrf.mxu1  ;;  %v4026_v11 = vpop.f32.mrf.mxu3 }
 0x449   :  { %v4138_v15 = vadd.f32 %v4026_v11, %v3604_v30  ;;  %v3070_v54 = vadd.f32 %v2960_v0, %v7229_v33  ;;  %v5621_v33 = vld [vmem:[%s8354_s0 + $0x319] sm:$0xff] }
 0x44b   :  { %v4672_v17 = vadd.f32 %v4560_v18, %v4138_v15  ;;  %5426 = vmatmul.msk.f32.gmra.mxu1 %vm146_vm1, %v5748_v7  ;;  %5556 = vmatmul.msk.f32.gmra.mxu2 %vm146_vm1, %v5490_v6 }
 0x44c   :  { %v4563_v40 = vpop.f32.mrf.mxu0 }
 0x44d   :  { %v4740_v9 = vadd.f32 %v8073_v44, %v4672_v17  ;;  %5686 = vmatmul.msk.f32.gmra.mxu3 %vm146_vm1, %v5620_v58  ;;  %v5495_v58 = vld [vmem:[%s8354_s0 + $0x348] sm:$0xff] }
 0x44e   :  { %v3495_v8 = vpop.f32.mrf.mxu2 }
 0x44f   :  { %4804 = vst [vmem:[#allocation2 + $0x140] sm:$0xff] %v4740_v9  ;;  %v3605_v1 = vadd.f32 %v3495_v8, %v3070_v54  ;;  %5816 = vmatmul.msk.f32.gmra.mxu0 %vm146_vm1, %v5750_v21  ;;  %v5755_v54 = vld [vmem:[%s8354_s0 + $0x34a] sm:$0xff] }
 0x450   :  { %v2963_v47 = vpop.f32.mrf.mxu1  ;;  %v4029_v59 = vpop.f32.mrf.mxu3 }
 0x451   :  { %v4139_v45 = vadd.f32 %v4029_v59, %v3605_v1  ;;  %v3071_v37 = vadd.f32 %v2963_v47, %v7245_v32  ;;  %v5622_v32 = vld [vmem:[%s8354_s0 + $0x321] sm:$0xff] }
 0x453   :  { %v4673_v22 = vadd.f32 %v4563_v40, %v4139_v45  ;;  %5427 = vmatmul.msk.f32.gmra.mxu1 %vm146_vm1, %v5749_v26  ;;  %5557 = vmatmul.msk.f32.gmra.mxu2 %vm146_vm1, %v5491_v24  ;;  %v5496_v45 = vld [vmem:[%s8354_s0 + $0x350] sm:$0xff] }
 0x454   :  { %v4566_v19 = vpop.f32.mrf.mxu0 }
 0x455   :  { %v4741_v60 = vadd.f32 %v8073_v44, %v4673_v22  ;;  %5687 = vmatmul.msk.f32.gmra.mxu3 %vm146_vm1, %v5621_v33 }
 0x456   :  { %v3498_v28 = vpop.f32.mrf.mxu2 }
 0x457   :  { %4805 = vst [vmem:[#allocation2 + $0x148] sm:$0xff] %v4741_v60  ;;  %v3606_v36 = vadd.f32 %v3498_v28, %v3071_v37  ;;  %5817 = vmatmul.msk.f32.gmra.mxu0 %vm146_vm1, %v5751_v52 }
 0x458   :  { %v2966_v61 = vpop.f32.mrf.mxu1  ;;  %v4032_v23 = vpop.f32.mrf.mxu3 }
 0x459   :  { %v4140_v5 = vadd.f32 %v4032_v23, %v3606_v36  ;;  %v3072_v2 = vadd.f32 %v2966_v61, %v7261_v10  ;;  %v5623_v10 = vld [vmem:[%s8354_s0 + $0x331] sm:$0xff] }
 0x45b   :  { %v4674_v16 = vadd.f32 %v4566_v19, %v4140_v5  ;;  %5428 = vmatmul.msk.f32.gmra.mxu1 %vm146_vm1, %v5750_v21  ;;  %5558 = vmatmul.msk.f32.gmra.mxu2 %vm146_vm1, %v5492_v3 }
 0x45c   :  { %v4569_v42 = vpop.f32.mrf.mxu0 }
 0x45d   :  { %v4742_v34 = vadd.f32 %v8073_v44, %v4674_v16  ;;  %5688 = vmatmul.msk.f32.gmra.mxu3 %vm146_vm1, %v5622_v32 }
 0x45e   :  { %v3501_v56 = vpop.f32.mrf.mxu2 }
 0x45f   :  { %4806 = vst [vmem:[#allocation2 + $0x150] sm:$0xff] %v4742_v34  ;;  %v3607_v39 = vadd.f32 %v3501_v56, %v3072_v2  ;;  %5818 = vmatmul.msk.f32.gmra.mxu0 %vm146_vm1, %v5752_v13 }
 0x460   :  { %v2969_v31 = vpop.f32.mrf.mxu1  ;;  %v4035_v57 = vpop.f32.mrf.mxu3 }
 0x461   :  { %v4141_v7 = vadd.f32 %v4035_v57, %v3607_v39  ;;  %v3073_v29 = vadd.f32 %v2969_v31, %v7277_v63  ;;  %v5624_v63 = vld [vmem:[%s8354_s0 + $0x339] sm:$0xff]  ;;  %v8426_v57 = vld [vmem:[#allocation10_spill] sm:$0xff] }
 0x463   :  { %v4675_v12 = vadd.f32 %v4569_v42, %v4141_v7  ;;  %5429 = vmatmul.msk.f32.gmra.mxu1 %vm146_vm1, %v5751_v52  ;;  %5559 = vmatmul.msk.f32.gmra.mxu2 %vm146_vm1, %v5493_v41  ;;  %v5756_v52 = vld [vmem:[%s8354_s0 + $0x352] sm:$0xff] }
 0x464   :  { %v4572_v14 = vpop.f32.mrf.mxu0 }
 0x465   :  { %v4743_v20 = vadd.f32 %v8073_v44, %v4675_v12  ;;  %5689 = vmatmul.msk.f32.gmra.mxu3 %vm146_vm1, %v5623_v10 }
 0x466   :  { %v3504_v46 = vpop.f32.mrf.mxu2 }
 0x467   :  { %4807 = vst [vmem:[#allocation2 + $0x158] sm:$0xff] %v4743_v20  ;;  %v3608_v25 = vadd.f32 %v3504_v46, %v3073_v29  ;;  %5819 = vmatmul.msk.f32.gmra.mxu0 %vm146_vm1, %v5753_v49  ;;  %v8427_v46 = vld [vmem:[#allocation12_spill] sm:$0xff] }
 0x468   :  { %v2972_v35 = vpop.f32.mrf.mxu1  ;;  %v4038_v62 = vpop.f32.mrf.mxu3 }
 0x469   :  { %v4142_v18 = vadd.f32 %v4038_v62, %v3608_v25  ;;  %v3074_v51 = vadd.f32 %v2972_v35, %v7293_v55  ;;  %v5625_v55 = vld [vmem:[%s8354_s0 + $0x349] sm:$0xff] }
 0x46b   :  { %v4676_v26 = vadd.f32 %v4572_v14, %v4142_v18  ;;  %5430 = vmatmul.msk.f32.gmra.mxu1 %vm146_vm1, %v5752_v13  ;;  %5560 = vmatmul.msk.f32.gmra.mxu2 %vm146_vm1, %v5494_v43 }
 0x46c   :  { %v4575_v53 = vpop.f32.mrf.mxu0 }
 0x46d   :  { %v4744_v30 = vadd.f32 %v8073_v44, %v4676_v26  ;;  %5690 = vmatmul.msk.f32.gmra.mxu3 %vm146_vm1, %v5624_v63 }
 0x46e   :  { %v3507_v0 = vpop.f32.mrf.mxu2 }
 0x46f   :  { %4808 = vst [vmem:[#allocation2 + $0x160] sm:$0xff] %v4744_v30  ;;  %v3609_v11 = vadd.f32 %v3507_v0, %v3074_v51  ;;  %5820 = vmatmul.msk.f32.gmra.mxu0 %vm146_vm1, %v5754_v50  ;;  %v8428_v51 = vld [vmem:[#allocation14_spill] sm:$0xff] }
 0x470   :  { %v2975_v6 = vpop.f32.mrf.mxu1  ;;  %v4041_v15 = vpop.f32.mrf.mxu3 }
 0x471   :  { %v4143_v17 = vadd.f32 %v4041_v15, %v3609_v11  ;;  %v3075_v9 = vadd.f32 %v2975_v6, %v7309_v38  ;;  %v5626_v38 = vld [vmem:[%s8354_s0 + $0x351] sm:$0xff]  ;;  %s5857_s0 = smov [#allocation2]  }
 0x472   :  { %s4832_s18 = sshll.u32 %s5857_s0, 4  ;;  %s4833_s18 = int_to_ptr.vmem [resolvable:$true] %s4832_s18 }
 0x473   :  { %v4677_v40 = vadd.f32 %v4575_v53, %v4143_v17  ;;  %5431 = vmatmul.msk.f32.gmra.mxu1 %vm146_vm1, %v5753_v49  ;;  %5561 = vmatmul.msk.f32.gmra.mxu2 %vm146_vm1, %v5495_v58 }
 0x474   :  { %v4578_v21 = vpop.f32.mrf.mxu0 }
 0x475   :  { %v4745_v8 = vadd.f32 %v8073_v44, %v4677_v40  ;;  %5691 = vmatmul.msk.f32.gmra.mxu3 %vm146_vm1, %v5625_v55 }
 0x476   :  { %v3510_v1 = vpop.f32.mrf.mxu2 }
 0x477   :  { %4809 = vst [vmem:[#allocation2 + $0x168] sm:$0xff] %v4745_v8  ;;  %v3610_v47 = vadd.f32 %v3510_v1, %v3075_v9  ;;  %5821 = vmatmul.msk.f32.gmra.mxu0 %vm146_vm1, %v5755_v54 }
 0x478   :  { %v2978_v59 = vpop.f32.mrf.mxu1  ;;  %v4044_v24 = vpop.f32.mrf.mxu3 }
 0x479   :  { %v4144_v33 = vadd.f32 %v4044_v24, %v3610_v47  ;;  %v3076_v37 = vadd.f32 %v2978_v59, %v7328_v27 }
 0x47b   :  { %v4678_v22 = vadd.f32 %v4578_v21, %v4144_v33  ;;  %5432 = vmatmul.msk.f32.gmra.mxu1 %vm146_vm1, %v5754_v50  ;;  %5562 = vmatmul.msk.f32.gmra.mxu2 %vm146_vm1, %v5496_v45  ;;  %v8429_v21 = vld [vmem:[#allocation16_spill] sm:$0xff] }
 0x47c   :  { %v4581_v19 = vpop.f32.mrf.mxu0 }
 0x47d   :  { %v4746_v60 = vadd.f32 %v8073_v44, %v4678_v22  ;;  %5692 = vmatmul.msk.f32.gmra.mxu3 %vm146_vm1, %v5626_v38  ;;  %v8430_v38 = vld [vmem:[#allocation18_spill] sm:$0xff] }
 0x47e   :  { %v3513_v28 = vpop.f32.mrf.mxu2 }
 0x47f   :  { %4810 = vst [vmem:[#allocation2 + $0x170] sm:$0xff] %v4746_v60  ;;  %v3611_v36 = vadd.f32 %v3513_v28, %v3076_v37  ;;  %5822 = vmatmul.msk.f32.gmra.mxu0 %vm146_vm1, %v5756_v52 }
 0x480   :  { %v2981_v61 = vpop.f32.mrf.mxu1  ;;  %v4047_v23 = vpop.f32.mrf.mxu3 }
 0x481   :  { %v4145_v3 = vadd.f32 %v4047_v23, %v3611_v36  ;;  %v3077_v16 = vadd.f32 %v2981_v61, %v7347_v48 }
 0x483   :  { %v4679_v5 = vadd.f32 %v4581_v19, %v4145_v3  ;;  %v8431_v3 = vld [vmem:[#allocation20_spill] sm:$0xff] }
 0x484   :  { %v4584_v32 = vpop.f32.mrf.mxu0 }
 0x485   :  { %v4747_v42 = vadd.f32 %v8073_v44, %v4679_v5 }
 0x486   :  { %v3516_v13 = vpop.f32.mrf.mxu2 }
 0x487   :  { %4811 = vst [vmem:[#allocation2 + $0x178] sm:$0xff] %v4747_v42  ;;  %v3612_v27 = vadd.f32 %v3516_v13, %v3077_v16 }
 0x488   :  { %v2984_v2 = vpop.f32.mrf.mxu1  ;;  %v4050_v34 = vpop.f32.mrf.mxu3 }
 0x489   :  { %v4146_v56 = vadd.f32 %v4050_v34, %v3612_v27  ;;  %v3078_v41 = vadd.f32 %v2984_v2, %v8426_v57 }
 0x48b   :  { %v4680_v39 = vadd.f32 %v4584_v32, %v4146_v56 }
 0x48c   :  { %v4587_v31 = vpop.f32.mrf.mxu0 }
 0x48d   :  { %v4748_v7 = vadd.f32 %v8073_v44, %v4680_v39  ;;  %v8432_v39 = vld [vmem:[#allocation22_spill] sm:$0xff] }
 0x48e   :  { %v3519_v10 = vpop.f32.mrf.mxu2 }
 0x48f   :  { %4812 = vst [vmem:[#allocation2 + $0x180] sm:$0xff] %v4748_v7  ;;  %v3613_v12 = vadd.f32 %v3519_v10, %v3078_v41 }
 0x490   :  { %v2987_v14 = vpop.f32.mrf.mxu1  ;;  %v4053_v49 = vpop.f32.mrf.mxu3 }
 0x491   :  { %v4147_v48 = vadd.f32 %v4053_v49, %v3613_v12  ;;  %v3079_v25 = vadd.f32 %v2987_v14, %v8427_v46 }
 0x493   :  { %v4681_v29 = vadd.f32 %v4587_v31, %v4147_v48 }
 0x494   :  { %v4590_v20 = vpop.f32.mrf.mxu0 }
 0x495   :  { %v4749_v35 = vadd.f32 %v8073_v44, %v4681_v29  ;;  %v8433_v29 = vld [vmem:[#allocation24_spill] sm:$0xff] }
 0x496   :  { %v3522_v62 = vpop.f32.mrf.mxu2 }
 0x497   :  { %4813 = vst [vmem:[#allocation2 + $0x188] sm:$0xff] %v4749_v35  ;;  %v3614_v43 = vadd.f32 %v3522_v62, %v3079_v25 }
 0x498   :  { %v2990_v18 = vpop.f32.mrf.mxu1  ;;  %v4056_v63 = vpop.f32.mrf.mxu3 }
 0x499   :  { %v4148_v26 = vadd.f32 %v4056_v63, %v3614_v43  ;;  %v3080_v30 = vadd.f32 %v2990_v18, %v8428_v51 }
 0x49b   :  { %v4682_v53 = vadd.f32 %v4590_v20, %v4148_v26 }
 0x49c   :  { %v4593_v50 = vpop.f32.mrf.mxu0 }
 0x49d   :  { %v4750_v0 = vadd.f32 %v8073_v44, %v4682_v53  ;;  %v8434_v53 = vld [vmem:[#allocation26_spill] sm:$0xff] }
 0x49e   :  { %v3525_v11 = vpop.f32.mrf.mxu2 }
 0x49f   :  { %4814 = vst [vmem:[#allocation2 + $0x190] sm:$0xff] %v4750_v0  ;;  %v3615_v6 = vadd.f32 %v3525_v11, %v3080_v30 }
 0x4a0   :  { %v2993_v15 = vpop.f32.mrf.mxu1  ;;  %v4059_v58 = vpop.f32.mrf.mxu3 }
 0x4a1   :  { %v4149_v17 = vadd.f32 %v4059_v58, %v3615_v6  ;;  %v3081_v54 = vadd.f32 %v2993_v15, %v8429_v21 }
 0x4a3   :  { %v4683_v55 = vadd.f32 %v4593_v50, %v4149_v17 }
 0x4a4   :  { %v4596_v40 = vpop.f32.mrf.mxu0 }
 0x4a5   :  { %v4751_v9 = vadd.f32 %v8073_v44, %v4683_v55  ;;  %v8435_v55 = vld [vmem:[#allocation28_spill] sm:$0xff] }
 0x4a6   :  { %v3528_v8 = vpop.f32.mrf.mxu2 }
 0x4a7   :  { %4815 = vst [vmem:[#allocation2 + $0x198] sm:$0xff] %v4751_v9  ;;  %v3616_v1 = vadd.f32 %v3528_v8, %v3081_v54 }
 0x4a8   :  { %v2996_v47 = vpop.f32.mrf.mxu1  ;;  %v4062_v59 = vpop.f32.mrf.mxu3 }
 0x4a9   :  { %v4150_v24 = vadd.f32 %v4062_v59, %v3616_v1  ;;  %v3082_v22 = vadd.f32 %v2996_v47, %v8430_v38 }
 0x4ab   :  { %v4684_v45 = vadd.f32 %v4596_v40, %v4150_v24 }
 0x4ac   :  { %v4599_v33 = vpop.f32.mrf.mxu0 }
 0x4ad   :  { %v4752_v19 = vadd.f32 %v8073_v44, %v4684_v45  ;;  %v8436_v45 = vld [vmem:[#allocation30_spill] sm:$0xff] }
 0x4ae   :  { %v3531_v52 = vpop.f32.mrf.mxu2 }
 0x4af   :  { %4816 = vst [vmem:[#allocation2 + $0x1a0] sm:$0xff] %v4752_v19  ;;  %v3617_v37 = vadd.f32 %v3531_v52, %v3082_v22 }
 0x4b0   :  { %v2999_v60 = vpop.f32.mrf.mxu1  ;;  %v4065_v28 = vpop.f32.mrf.mxu3 }
 0x4b1   :  { %v4151_v36 = vadd.f32 %v4065_v28, %v3617_v37  ;;  %v3083_v5 = vadd.f32 %v2999_v60, %v8431_v3 }
 0x4b3   :  { %v4685_v61 = vadd.f32 %v4599_v33, %v4151_v36 }
 0x4b4   :  { %v4602_v23 = vpop.f32.mrf.mxu0 }
 0x4b5   :  { %v4753_v32 = vadd.f32 %v8073_v44, %v4685_v61  ;;  %v8437_v61 = vld [vmem:[#allocation5_spill] sm:$0xff] }
 0x4b6   :  { %v3534_v16 = vpop.f32.mrf.mxu2 }
 0x4b7   :  { %4817 = vst [vmem:[#allocation2 + $0x1a8] sm:$0xff] %v4753_v32  ;;  %v3618_v42 = vadd.f32 %v3534_v16, %v3083_v5 }
 0x4b8   :  { %v3002_v13 = vpop.f32.mrf.mxu1  ;;  %v4068_v27 = vpop.f32.mrf.mxu3 }
 0x4b9   :  { %v4152_v2 = vadd.f32 %v4068_v27, %v3618_v42  ;;  %v3084_v31 = vadd.f32 %v3002_v13, %v8432_v39 }
 0x4bb   :  { %v4686_v34 = vadd.f32 %v4602_v23, %v4152_v2 }
 0x4bc   :  { %v4605_v56 = vpop.f32.mrf.mxu0 }
 0x4bd   :  { %v4754_v57 = vadd.f32 %v8073_v44, %v4686_v34  ;;  %v8438_v34 = vld [vmem:[#allocation6_spill] sm:$0xff] }
 0x4be   :  { %v3537_v41 = vpop.f32.mrf.mxu2 }
 0x4bf   :  { %4818 = vst [vmem:[#allocation2 + $0x1b0] sm:$0xff] %v4754_v57  ;;  %v3619_v7 = vadd.f32 %v3537_v41, %v3084_v31 }
 0x4c0   :  { %v3005_v10 = vpop.f32.mrf.mxu1  ;;  %v4071_v12 = vpop.f32.mrf.mxu3 }
 0x4c1   :  { %v4153_v14 = vadd.f32 %v4071_v12, %v3619_v7  ;;  %v3085_v20 = vadd.f32 %v3005_v10, %v8433_v29 }
 0x4c3   :  { %v4687_v49 = vadd.f32 %v4605_v56, %v4153_v14  ;;  %v8439_v14 = vld [vmem:[#allocation7_spill] sm:$0xff] }
 0x4c4   :  { %v4608_v48 = vpop.f32.mrf.mxu0 }
 0x4c5   :  { %v4755_v46 = vadd.f32 %v8073_v44, %v4687_v49 }
 0x4c6   :  { %v3540_v25 = vpop.f32.mrf.mxu2 }
 0x4c7   :  { %4819 = vst [vmem:[#allocation2 + $0x1b8] sm:$0xff] %v4755_v46  ;;  %v3620_v35 = vadd.f32 %v3540_v25, %v3085_v20 }
 0x4c8   :  { %v3008_v62 = vpop.f32.mrf.mxu1  ;;  %v4074_v43 = vpop.f32.mrf.mxu3 }
 0x4c9   :  { %v4154_v18 = vadd.f32 %v4074_v43, %v3620_v35  ;;  %v3086_v50 = vadd.f32 %v3008_v62, %v8434_v53 }
 0x4cb   :  { %v4688_v63 = vadd.f32 %v4608_v48, %v4154_v18 }
 0x4cc   :  { %v4611_v26 = vpop.f32.mrf.mxu0 }
 0x4cd   :  { %v4756_v51 = vadd.f32 %v8073_v44, %v4688_v63 }
 0x4ce   :  { %v3543_v30 = vpop.f32.mrf.mxu2 }
 0x4cf   :  { %4820 = vst [vmem:[#allocation2 + $0x1c0] sm:$0xff] %v4756_v51  ;;  %v3621_v0 = vadd.f32 %v3543_v30, %v3086_v50 }
 0x4d0   :  { %v3011_v11 = vpop.f32.mrf.mxu1  ;;  %v4077_v6 = vpop.f32.mrf.mxu3 }
 0x4d1   :  { %v4155_v15 = vadd.f32 %v4077_v6, %v3621_v0  ;;  %v3087_v40 = vadd.f32 %v3011_v11, %v8435_v55 }
 0x4d3   :  { %v4689_v58 = vadd.f32 %v4611_v26, %v4155_v15 }
 0x4d4   :  { %v4614_v17 = vpop.f32.mrf.mxu0 }
 0x4d5   :  { %v4757_v21 = vadd.f32 %v8073_v44, %v4689_v58 }
 0x4d6   :  { %v3546_v54 = vpop.f32.mrf.mxu2 }
 0x4d7   :  { %4821 = vst [vmem:[#allocation2 + $0x1c8] sm:$0xff] %v4757_v21  ;;  %v3622_v9 = vadd.f32 %v3546_v54, %v3087_v40 }
 0x4d8   :  { %v3014_v8 = vpop.f32.mrf.mxu1  ;;  %v4080_v1 = vpop.f32.mrf.mxu3 }
 0x4d9   :  { %v4156_v47 = vadd.f32 %v4080_v1, %v3622_v9  ;;  %v3088_v33 = vadd.f32 %v3014_v8, %v8436_v45 }
 0x4db   :  { %v4690_v59 = vadd.f32 %v4614_v17, %v4156_v47 }
 0x4dc   :  { %v4617_v24 = vpop.f32.mrf.mxu0 }
 0x4dd   :  { %v4758_v38 = vadd.f32 %v8073_v44, %v4690_v59 }
 0x4de   :  { %v3549_v22 = vpop.f32.mrf.mxu2 }
 0x4df   :  { %4822 = vst [vmem:[#allocation2 + $0x1d0] sm:$0xff] %v4758_v38  ;;  %v3623_v19 = vadd.f32 %v3549_v22, %v3088_v33 }
 0x4e0   :  { %v3017_v52 = vpop.f32.mrf.mxu1  ;;  %v4083_v37 = vpop.f32.mrf.mxu3 }
 0x4e1   :  { %v4157_v60 = vadd.f32 %v4083_v37, %v3623_v19  ;;  %v3089_v23 = vadd.f32 %v3017_v52, %v8437_v61 }
 0x4e3   :  { %v4691_v28 = vadd.f32 %v4617_v24, %v4157_v60 }
 0x4e4   :  { %v4620_v36 = vpop.f32.mrf.mxu0 }
 0x4e5   :  { %v4759_v3 = vadd.f32 %v8073_v44, %v4691_v28 }
 0x4e6   :  { %v3552_v5 = vpop.f32.mrf.mxu2 }
 0x4e7   :  { %4823 = vst [vmem:[#allocation2 + $0x1d8] sm:$0xff] %v4759_v3  ;;  %v3624_v32 = vadd.f32 %v3552_v5, %v3089_v23 }
 0x4e8   :  { %v3020_v16 = vpop.f32.mrf.mxu1  ;;  %v4086_v42 = vpop.f32.mrf.mxu3 }
 0x4e9   :  { %v4158_v13 = vadd.f32 %v4086_v42, %v3624_v32  ;;  %v3090_v56 = vadd.f32 %v3020_v16, %v8438_v34 }
 0x4eb   :  { %v4692_v27 = vadd.f32 %v4620_v36, %v4158_v13 }
 0x4ec   :  { %v4623_v2 = vpop.f32.mrf.mxu0 }
 0x4ed   :  { %v4760_v39 = vadd.f32 %v8073_v44, %v4692_v27 }
 0x4ee   :  { %v3555_v31 = vpop.f32.mrf.mxu2 }
 0x4ef   :  { %4824 = vst [vmem:[#allocation2 + $0x1e0] sm:$0xff] %v4760_v39  ;;  %v3625_v57 = vadd.f32 %v3555_v31, %v3090_v56 }
 0x4f0   :  { %v3023_v41 = vpop.f32.mrf.mxu1  ;;  %v4089_v7 = vpop.f32.mrf.mxu3 }
 0x4f1   :  { %v4159_v10 = vadd.f32 %v4089_v7, %v3625_v57  ;;  %v3091_v49 = vadd.f32 %v3023_v41, %v8439_v14 }
 0x4f3   :  { %v4693_v12 = vadd.f32 %v4623_v2, %v4159_v10 }
 0x4f4   :  { %v4626_v20 = vpop.f32.mrf.mxu0 }
 0x4f5   :  { %v4761_v48 = vadd.f32 %v8073_v44, %v4693_v12 }
 0x4f6   :  { %v3558_v29 = vpop.f32.mrf.mxu2 }
 0x4f7   :  { %4825 = vst [vmem:[#allocation2 + $0x1e8] sm:$0xff] %v4761_v48  ;;  %v3626_v46 = vadd.f32 %v3558_v29, %v3091_v49 }
 0x4f8   :  { %v4092_v25 = vpop.f32.mrf.mxu3  ;;  %v3026_v62 = vpop.f32.mrf.mxu1 }
 0x4f9   :  { %v4160_v35 = vadd.f32 %v4092_v25, %v3626_v46  ;;  %v3092_v18 = vadd.f32 %v3026_v62, %v7587_v4 }
 0x4fb   :  { %v4694_v43 = vadd.f32 %v4626_v20, %v4160_v35 }
 0x4fc   :  { %v4629_v51 = vpop.f32.mrf.mxu0 }
 0x4fd   :  { %v4762_v63 = vadd.f32 %v8073_v44, %v4694_v43 }
 0x4fe   :  { %v3561_v26 = vpop.f32.mrf.mxu2 }
 0x4ff   :  { %4826 = vst [vmem:[#allocation2 + $0x1f0] sm:$0xff] %v4762_v63  ;;  %v3627_v53 = vadd.f32 %v3561_v26, %v3092_v18 }
 0x500   :  { %v4095_v50 = vpop.f32.mrf.mxu3 }
 0x501   :  { %v4161_v30 = vadd.f32 %v4095_v50, %v3627_v53 }
 0x503   :  { %v4695_v0 = vadd.f32 %v4629_v51, %v4161_v30 }
 0x505   :  { %v4763_v11 = vadd.f32 %v8073_v44, %v4695_v0 }
 0x507   :  { %4827 = vst [vmem:[#allocation2 + $0x1f8] sm:$0xff] %v4763_v11 }
 0x508   :  { %4840 = dma.vmem_to_hbm [thread:$0]  %s4833_s18, 8192, %s4835_s21, [#allocation3], %s5858_s22, %s5858_s22, %s5859_s23  }
 0x509   :  { %5855 = dma.done.wait [#allocation3], 8192  }
 0x50a   :  { %5856 = vsyncadd [#allocation3], 4294959104 }
 0x50b   :  { %4845 = vsyncpa [#allocation3], 1 }

</bundles_post_ra>
